<compile_context>
chip_gen: v6e
topology: v6e:2x2x1
jax: 0.10.0
libtpu: 0.0.40
codegen_flags: <defaults>
</compile_context>

<pallas_src>
import jax
import jax.numpy as jnp
from jax.experimental import pallas as pl
from jax.experimental.pallas import tpu as pltpu


def _round_up(x, m):
    return (x + m - 1) // m * m


def _softmax(x):
    m = jnp.max(x, axis=-1, keepdims=True)
    e = jnp.exp(x - m)
    s = jnp.sum(e, axis=-1, keepdims=True)
    return e * pl.reciprocal(s, approx=False)


def _fwd_kernel(
    uA_ref, uB_ref, spk_ref,
    wA_ref, wB_ref, wg1a_ref, wg1b_ref, wg2_ref,
    wp1a_ref, wp1b_ref, wp1s_ref, wp2_ref, wp3_ref, wp4_ref,
    vS_ref, vP_ref, vH2_ref, vH3_ref, vC_ref,
    out_ref,
):
    f32 = jnp.float32
    cdt = wA_ref.dtype  # matmul/compute dtype (f32 or bf16)

    # Packed per-feature vectors (kept in f32; elementwise math stays f32).
    bA    = vS_ref[0:1, :]
    bB    = vS_ref[1:2, :]
    bnA_s = vS_ref[2:3, :]
    bnA_b = vS_ref[3:4, :]
    bnB_s = vS_ref[4:5, :]
    bnB_b = vS_ref[5:6, :]
    bg2   = vS_ref[6:7, :]
    bn1_s = vS_ref[7:8, :]
    bn1_b = vS_ref[8:9, :]   # bp1 already folded in
    bg1   = vP_ref[0:1, :]
    bn2_s = vH2_ref[0:1, :]
    bn2_b = vH2_ref[1:2, :]  # bp2 already folded in
    bn3_s = vH3_ref[0:1, :]
    bn3_b = vH3_ref[1:2, :]  # bp3 already folded in
    bp4   = vC_ref[0:1, :]

    def mm(x, w_ref):
        # Cast the (f32) activation to the compute dtype for the MXU, but
        # always accumulate in f32.
        return jnp.dot(x.astype(cdt), w_ref[...], preferred_element_type=f32)

    # Shared projections: BatchNorm(ReLU(Linear(u)))  (BN folded to scale/shift)
    sA = jnp.maximum(
        jnp.dot(uA_ref[...], wA_ref[...], preferred_element_type=f32) + bA, 0.0
    ) * bnA_s + bnA_b
    sB = jnp.maximum(
        jnp.dot(uB_ref[...], wB_ref[...], preferred_element_type=f32) + bB, 0.0
    ) * bnB_s + bnB_b

    def attention_aggregator(feA, feB):
        # attention: softmax(collab_gate_1(cat(feA, feB)), dim=1)
        att = _softmax(mm(feA, wg1a_ref) + mm(feB, wg1b_ref) + bg1)
        # aggregator: softmax(collab_gate_2(att), dim=1)
        return _softmax(mm(att, wg2_ref) + bg2)

    upd_A = sA * attention_aggregator(sA, sB)
    upd_B = sB * attention_aggregator(sB, sA)

    # pred_module: [Linear -> BN -> ReLU -> Dropout] x3 -> Linear(num_classes)
    h1 = (mm(upd_A, wp1a_ref) + mm(upd_B, wp1b_ref)
          + jnp.dot(spk_ref[...], wp1s_ref[...], preferred_element_type=f32))
    h1 = jnp.maximum(h1 * bn1_s + bn1_b, 0.0)
    h2 = jnp.maximum(mm(h1, wp2_ref) * bn2_s + bn2_b, 0.0)
    h3 = jnp.maximum(mm(h2, wp3_ref) * bn3_s + bn3_b, 0.0)
    out_ref[...] = (mm(h3, wp4_ref) + bp4).astype(out_ref.dtype)


def forward_pallas(params, uA, uB, speaker_embedding, *,
                   tile_b=128, compute_dtype=jnp.float32):
    p = params
    B = uA.shape[0]
    C = p["wp4"].shape[1]
    S = p["wA"].shape[1]
    P = p["wg2"].shape[0]
    H2 = p["wp2"].shape[1]
    H3 = p["wp3"].shape[1]
    Cpad = _round_up(max(C, 128), 128)

    # Batch tiling: round batch up to a sublane multiple / tile multiple.
    tile_b = min(tile_b, _round_up(B, 8))
    Bp = _round_up(B, tile_b)
    grid = (Bp // tile_b,)

    def pad_rows(x):
        return jnp.pad(x, ((0, Bp - B), (0, 0))) if Bp != B else x

    cdt = compute_dtype
    uA_p = pad_rows(uA).astype(cdt)
    uB_p = pad_rows(uB).astype(cdt)
    spk_p = pad_rows(speaker_embedding).astype(cdt)

    # Fold pred-module biases into the (already folded) BN shifts host-side.
    bn1_b = p["bp1"] * p["bn1_s"] + p["bn1_b"]
    bn2_b = p["bp2"] * p["bn2_s"] + p["bn2_b"]
    bn3_b = p["bp3"] * p["bn3_s"] + p["bn3_b"]

    # Pack all (1, N) vectors by feature width (kept in f32).
    vecS = jnp.concatenate(
        [p["bA"], p["bB"], p["bnA_s"], p["bnA_b"], p["bnB_s"], p["bnB_b"],
         p["bg2"], p["bn1_s"], bn1_b], axis=0).astype(jnp.float32)
    vecP = p["bg1"].astype(jnp.float32)
    vecH2 = jnp.concatenate([p["bn2_s"], bn2_b], axis=0).astype(jnp.float32)
    vecH3 = jnp.concatenate([p["bn3_s"], bn3_b], axis=0).astype(jnp.float32)
    vecC = jnp.pad(p["bp4"], ((0, 0), (0, Cpad - C))).astype(jnp.float32)

    # Pad the classifier weight so the output store is lane-dense (128 lanes).
    wp4_pad = jnp.pad(p["wp4"], ((0, 0), (0, Cpad - C)))

    weights = [p["wA"], p["wB"], p["wg1a"], p["wg1b"], p["wg2"],
               p["wp1a"], p["wp1b"], p["wp1s"], p["wp2"], p["wp3"], wp4_pad]
    weights = [w.astype(cdt) for w in weights]
    vectors = [vecS, vecP, vecH2, vecH3, vecC]

    def act_spec(feat):
        return pl.BlockSpec((tile_b, feat), lambda i: (i, 0))

    def const_spec(arr):
        # Whole array resident in VMEM; constant block index -> no re-fetch
        # across grid steps.
        return pl.BlockSpec(arr.shape, lambda i: (0, 0))

    in_specs = [act_spec(uA_p.shape[1]), act_spec(uB_p.shape[1]),
                act_spec(spk_p.shape[1])]
    in_specs += [const_spec(w) for w in weights]
    in_specs += [const_spec(v) for v in vectors]

    nA, nB, nS = uA.shape[1], uB.shape[1], speaker_embedding.shape[1]
    flops = 2 * Bp * (
        nA * S + nB * S                      # shared projections
        + 2 * (2 * S * P + P * S)            # two attention aggregators
        + 2 * S * S + nS * S                 # pred layer 1
        + S * H2 + H2 * H3 + H3 * Cpad)      # pred layers 2-4
    transcendentals = 2 * Bp * (P + S)       # four softmaxes (exp)
    bytes_accessed = int(sum(int(x.size) * x.dtype.itemsize for x in
                             ([uA_p, uB_p, spk_p] + weights + vectors))
                         + Bp * Cpad * 4)
    cost = pl.CostEstimate(flops=int(flops),
                           transcendentals=int(transcendentals),
                           bytes_accessed=bytes_accessed)

    out = pl.pallas_call(
        _fwd_kernel,
        grid=grid,
        out_shape=jax.ShapeDtypeStruct((Bp, Cpad), jnp.float32),
        in_specs=in_specs,
        out_specs=pl.BlockSpec((tile_b, Cpad), lambda i: (i, 0)),
        compiler_params=pltpu.CompilerParams(
            dimension_semantics=("parallel",),
            vmem_limit_bytes=64 * 1024 * 1024),
        cost_estimate=cost,
    )(uA_p, uB_p, spk_p, *weights, *vectors)

    return out[:B, :C]


def forward_ref(params, uA, uB, spk):
    """Pure-JAX reference mirroring the PyTorch forward (eval mode)."""
    p = params

    def lin(x, w, b):
        return x @ w + b

    sA = jnp.maximum(lin(uA, p["wA"], p["bA"]), 0.0) * p["bnA_s"] + p["bnA_b"]
    sB = jnp.maximum(lin(uB, p["wB"], p["bB"]), 0.0) * p["bnB_s"] + p["bnB_b"]

    def agg(feA, feB):
        att = jax.nn.softmax(feA @ p["wg1a"] + feB @ p["wg1b"] + p["bg1"], axis=-1)
        return jax.nn.softmax(att @ p["wg2"] + p["bg2"], axis=-1)

    upd_A = sA * agg(sA, sB)
    upd_B = sB * agg(sB, sA)
    h1 = upd_A @ p["wp1a"] + upd_B @ p["wp1b"] + spk @ p["wp1s"] + p["bp1"]
    h1 = jnp.maximum(h1 * p["bn1_s"] + p["bn1_b"], 0.0)
    h2 = jnp.maximum(lin(h1, p["wp2"], p["bp2"]) * p["bn2_s"] + p["bn2_b"], 0.0)
    h3 = jnp.maximum(lin(h2, p["wp3"], p["bp3"]) * p["bn3_s"] + p["bn3_b"], 0.0)
    return lin(h3, p["wp4"], p["bp4"])


def init_params(key, *, n_speaker=8, input_A=64, input_B=128,
                shared=64, projection=32, hidden2=512, hidden3=128,
                num_classes=5):
    """Deterministic synthetic parameters (BN folded into scale/shift)."""
    eps = 1e-5
    keys = iter(jax.random.split(key, 16))

    def linear(k, fan_in, fan_out):
        kw, kb = jax.random.split(k)
        lim = 1.0 / jnp.sqrt(jnp.float32(fan_in))
        w = jax.random.uniform(kw, (fan_in, fan_out), jnp.float32, -lim, lim)
        b = jax.random.uniform(kb, (1, fan_out), jnp.float32, -lim, lim)
        return w, b

    def bn(k, d):
        k1, k2, k3, k4 = jax.random.split(k, 4)
        gamma = 1.0 + 0.1 * jax.random.normal(k1, (1, d), jnp.float32)
        beta = 0.1 * jax.random.normal(k2, (1, d), jnp.float32)
        mean = 0.1 * jax.random.normal(k3, (1, d), jnp.float32)
        var = jax.random.uniform(k4, (1, d), jnp.float32, 0.5, 1.5)
        scale = gamma / jnp.sqrt(var + eps)
        shift = beta - mean * scale
        return scale, shift

    p = {}
    p["wA"], p["bA"] = linear(next(keys), input_A, shared)
    p["wB"], p["bB"] = linear(next(keys), input_B, shared)
    p["bnA_s"], p["bnA_b"] = bn(next(keys), shared)
    p["bnB_s"], p["bnB_b"] = bn(next(keys), shared)

    wg1, p["bg1"] = linear(next(keys), 2 * shared, projection)
    p["wg1a"], p["wg1b"] = wg1[:shared], wg1[shared:]
    p["wg2"], p["bg2"] = linear(next(keys), projection, shared)

    wp1, p["bp1"] = linear(next(keys), n_speaker + 2 * shared, shared)
    p["wp1a"] = wp1[:shared]
    p["wp1b"] = wp1[shared:2 * shared]
    p["wp1s"] = wp1[2 * shared:]
    p["bn1_s"], p["bn1_b"] = bn(next(keys), shared)

    p["wp2"], p["bp2"] = linear(next(keys), shared, hidden2)
    p["bn2_s"], p["bn2_b"] = bn(next(keys), hidden2)
    p["wp3"], p["bp3"] = linear(next(keys), hidden2, hidden3)
    p["bn3_s"], p["bn3_b"] = bn(next(keys), hidden3)
    p["wp4"], p["bp4"] = linear(next(keys), hidden3, num_classes)
    return p


if __name__ == "__main__":
    key = jax.random.PRNGKey(0)
    kp, ka, kb, ks = jax.random.split(key, 4)

    # Small shapes consistent with the module's forward signature.
    # Batch is not a tile multiple so both the grid and the padding path run.
    B = 200
    n_speaker, input_A, input_B = 8, 64, 128
    shared, projection, num_classes = 64, 32, 5

    params = init_params(
        kp, n_speaker=n_speaker, input_A=input_A, input_B=input_B,
        shared=shared, projection=projection, num_classes=num_classes)

    uA = jax.random.normal(ka, (B, input_A), jnp.float32)
    uB = jax.random.normal(kb, (B, input_B), jnp.float32)
    spk_ids = jax.random.randint(ks, (B,), 0, n_speaker)
    speaker_embedding = jax.nn.one_hot(spk_ids, n_speaker, dtype=jnp.float32)

    ref = forward_ref(params, uA, uB, speaker_embedding)

    # f32 compute path: strict check against the pure-JAX reference.
    out_f32 = jax.block_until_ready(
        forward_pallas(params, uA, uB, speaker_embedding,
                       tile_b=128, compute_dtype=jnp.float32))
    assert out_f32.shape == (B, num_classes), out_f32.shape
    assert jnp.allclose(out_f32, ref, rtol=1e-4, atol=1e-4), \
        float(jnp.max(jnp.abs(out_f32 - ref)))

    # bf16 matmul path (f32 accumulation, f32 elementwise): loose check.
    out_bf16 = jax.block_until_ready(
        forward_pallas(params, uA, uB, speaker_embedding,
                       tile_b=128, compute_dtype=jnp.bfloat16))
    rel_err = float(jnp.max(jnp.abs(out_bf16 - ref))
                    / (jnp.max(jnp.abs(ref)) + 1e-6))
    assert rel_err < 0.1, rel_err

    print("KERNEL_OK")
</pallas_src>

<mosaic_0001>
module attributes {stable_mosaic.version = 11 : i64} {
  func.func @_fwd_kernel(%arg0: i32, %arg1: memref<128x64xf32, #tpu.memory_space<vmem>>, %arg2: memref<128x128xf32, #tpu.memory_space<vmem>>, %arg3: memref<128x8xf32, #tpu.memory_space<vmem>>, %arg4: memref<64x64xf32, #tpu.memory_space<vmem>>, %arg5: memref<128x64xf32, #tpu.memory_space<vmem>>, %arg6: memref<64x32xf32, #tpu.memory_space<vmem>>, %arg7: memref<64x32xf32, #tpu.memory_space<vmem>>, %arg8: memref<32x64xf32, #tpu.memory_space<vmem>>, %arg9: memref<64x64xf32, #tpu.memory_space<vmem>>, %arg10: memref<64x64xf32, #tpu.memory_space<vmem>>, %arg11: memref<8x64xf32, #tpu.memory_space<vmem>>, %arg12: memref<64x512xf32, #tpu.memory_space<vmem>>, %arg13: memref<512x128xf32, #tpu.memory_space<vmem>>, %arg14: memref<128x128xf32, #tpu.memory_space<vmem>>, %arg15: memref<9x64xf32, #tpu.memory_space<vmem>>, %arg16: memref<1x32xf32, #tpu.memory_space<vmem>>, %arg17: memref<2x512xf32, #tpu.memory_space<vmem>>, %arg18: memref<2x128xf32, #tpu.memory_space<vmem>>, %arg19: memref<1x128xf32, #tpu.memory_space<vmem>>, %arg20: memref<128x128xf32, #tpu.memory_space<vmem>>) attributes {dimension_semantics = [#tpu.dimension_semantics<parallel>], iteration_bounds = array<i64: 2>, scalar_prefetch = 0 : i64, scratch_operands = 0 : i64, tpu.core_type = #tpu.core_type<tc>, window_params = [{transform_indices = @transform_0, window_bounds = array<i64: 128, 64>}, {transform_indices = @transform_1, window_bounds = array<i64: 128, 128>}, {transform_indices = @transform_2, window_bounds = array<i64: 128, 8>}, {pipeline_mode = #tpu.pipeline_mode<synchronous>, transform_indices = @transform_3, window_bounds = array<i64: 64, 64>}, {pipeline_mode = #tpu.pipeline_mode<synchronous>, transform_indices = @transform_4, window_bounds = array<i64: 128, 64>}, {pipeline_mode = #tpu.pipeline_mode<synchronous>, transform_indices = @transform_5, window_bounds = array<i64: 64, 32>}, {pipeline_mode = #tpu.pipeline_mode<synchronous>, transform_indices = @transform_6, window_bounds = array<i64: 64, 32>}, {pipeline_mode = #tpu.pipeline_mode<synchronous>, transform_indices = @transform_7, window_bounds = array<i64: 32, 64>}, {pipeline_mode = #tpu.pipeline_mode<synchronous>, transform_indices = @transform_8, window_bounds = array<i64: 64, 64>}, {pipeline_mode = #tpu.pipeline_mode<synchronous>, transform_indices = @transform_9, window_bounds = array<i64: 64, 64>}, {pipeline_mode = #tpu.pipeline_mode<synchronous>, transform_indices = @transform_10, window_bounds = array<i64: 8, 64>}, {pipeline_mode = #tpu.pipeline_mode<synchronous>, transform_indices = @transform_11, window_bounds = array<i64: 64, 512>}, {pipeline_mode = #tpu.pipeline_mode<synchronous>, transform_indices = @transform_12, window_bounds = array<i64: 512, 128>}, {pipeline_mode = #tpu.pipeline_mode<synchronous>, transform_indices = @transform_13, window_bounds = array<i64: 128, 128>}, {pipeline_mode = #tpu.pipeline_mode<synchronous>, transform_indices = @transform_14, window_bounds = array<i64: 9, 64>}, {pipeline_mode = #tpu.pipeline_mode<synchronous>, transform_indices = @transform_15, window_bounds = array<i64: 1, 32>}, {pipeline_mode = #tpu.pipeline_mode<synchronous>, transform_indices = @transform_16, window_bounds = array<i64: 2, 512>}, {pipeline_mode = #tpu.pipeline_mode<synchronous>, transform_indices = @transform_17, window_bounds = array<i64: 2, 128>}, {pipeline_mode = #tpu.pipeline_mode<synchronous>, transform_indices = @transform_18, window_bounds = array<i64: 1, 128>}, {transform_indices = @transform_19, window_bounds = array<i64: 128, 128>}]} {
    %c0 = arith.constant 0 : index
    %c0_0 = arith.constant 0 : index
    %0 = vector.load %arg15[%c0, %c0_0] : memref<9x64xf32, #tpu.memory_space<vmem>>, vector<1x64xf32>
    %c1 = arith.constant 1 : index
    %c0_1 = arith.constant 0 : index
    %1 = vector.load %arg15[%c1, %c0_1] : memref<9x64xf32, #tpu.memory_space<vmem>>, vector<1x64xf32>
    %c2 = arith.constant 2 : index
    %c0_2 = arith.constant 0 : index
    %2 = vector.load %arg15[%c2, %c0_2] : memref<9x64xf32, #tpu.memory_space<vmem>>, vector<1x64xf32>
    %c3 = arith.constant 3 : index
    %c0_3 = arith.constant 0 : index
    %3 = vector.load %arg15[%c3, %c0_3] : memref<9x64xf32, #tpu.memory_space<vmem>>, vector<1x64xf32>
    %c4 = arith.constant 4 : index
    %c0_4 = arith.constant 0 : index
    %4 = vector.load %arg15[%c4, %c0_4] : memref<9x64xf32, #tpu.memory_space<vmem>>, vector<1x64xf32>
    %c5 = arith.constant 5 : index
    %c0_5 = arith.constant 0 : index
    %5 = vector.load %arg15[%c5, %c0_5] : memref<9x64xf32, #tpu.memory_space<vmem>>, vector<1x64xf32>
    %c6 = arith.constant 6 : index
    %c0_6 = arith.constant 0 : index
    %6 = vector.load %arg15[%c6, %c0_6] : memref<9x64xf32, #tpu.memory_space<vmem>>, vector<1x64xf32>
    %c7 = arith.constant 7 : index
    %c0_7 = arith.constant 0 : index
    %7 = vector.load %arg15[%c7, %c0_7] : memref<9x64xf32, #tpu.memory_space<vmem>>, vector<1x64xf32>
    %c8 = arith.constant 8 : index
    %c0_8 = arith.constant 0 : index
    %8 = vector.load %arg15[%c8, %c0_8] : memref<9x64xf32, #tpu.memory_space<vmem>>, vector<1x64xf32>
    %c0_9 = arith.constant 0 : index
    %c0_10 = arith.constant 0 : index
    %9 = vector.load %arg16[%c0_9, %c0_10] : memref<1x32xf32, #tpu.memory_space<vmem>>, vector<1x32xf32>
    %c0_11 = arith.constant 0 : index
    %c0_12 = arith.constant 0 : index
    %10 = vector.load %arg17[%c0_11, %c0_12] : memref<2x512xf32, #tpu.memory_space<vmem>>, vector<1x512xf32>
    %c1_13 = arith.constant 1 : index
    %c0_14 = arith.constant 0 : index
    %11 = vector.load %arg17[%c1_13, %c0_14] : memref<2x512xf32, #tpu.memory_space<vmem>>, vector<1x512xf32>
    %c0_15 = arith.constant 0 : index
    %c0_16 = arith.constant 0 : index
    %12 = vector.load %arg18[%c0_15, %c0_16] : memref<2x128xf32, #tpu.memory_space<vmem>>, vector<1x128xf32>
    %c1_17 = arith.constant 1 : index
    %c0_18 = arith.constant 0 : index
    %13 = vector.load %arg18[%c1_17, %c0_18] : memref<2x128xf32, #tpu.memory_space<vmem>>, vector<1x128xf32>
    %c0_19 = arith.constant 0 : index
    %c0_20 = arith.constant 0 : index
    %14 = vector.load %arg19[%c0_19, %c0_20] : memref<1x128xf32, #tpu.memory_space<vmem>>, vector<1x128xf32>
    %c0_21 = arith.constant 0 : index
    %c0_22 = arith.constant 0 : index
    %15 = vector.load %arg1[%c0_21, %c0_22] : memref<128x64xf32, #tpu.memory_space<vmem>>, vector<128x64xf32>
    %c0_23 = arith.constant 0 : index
    %c0_24 = arith.constant 0 : index
    %16 = vector.load %arg4[%c0_23, %c0_24] : memref<64x64xf32, #tpu.memory_space<vmem>>, vector<64x64xf32>
    %cst = arith.constant dense<0.000000e+00> : vector<128x64xf32>
    %17 = tpu.matmul %15, %16, %cst {dimension_numbers = #tpu.dot_dimension_numbers<[1], [0], [0], [1], [0, 0, 1, 1], [], []>} : vector<128x64xf32>, vector<64x64xf32>, vector<128x64xf32> -> vector<128x64xf32>
    %18 = vector.broadcast %0 : vector<1x64xf32> to vector<128x64xf32>
    %19 = arith.addf %17, %18 : vector<128x64xf32>
    %cst_25 = arith.constant 0.000000e+00 : f32
    %20 = vector.broadcast %cst_25 : f32 to vector<128x64xf32>
    %21 = arith.maximumf %19, %20 : vector<128x64xf32>
    %22 = vector.broadcast %2 : vector<1x64xf32> to vector<128x64xf32>
    %23 = arith.mulf %21, %22 : vector<128x64xf32>
    %24 = vector.broadcast %3 : vector<1x64xf32> to vector<128x64xf32>
    %25 = arith.addf %23, %24 : vector<128x64xf32>
    %c0_26 = arith.constant 0 : index
    %c0_27 = arith.constant 0 : index
    %26 = vector.load %arg2[%c0_26, %c0_27] : memref<128x128xf32, #tpu.memory_space<vmem>>, vector<128x128xf32>
    %c0_28 = arith.constant 0 : index
    %c0_29 = arith.constant 0 : index
    %27 = vector.load %arg5[%c0_28, %c0_29] : memref<128x64xf32, #tpu.memory_space<vmem>>, vector<128x64xf32>
    %cst_30 = arith.constant dense<0.000000e+00> : vector<128x64xf32>
    %28 = tpu.matmul %26, %27, %cst_30 {dimension_numbers = #tpu.dot_dimension_numbers<[1], [0], [0], [1], [0, 0, 1, 1], [], []>} : vector<128x128xf32>, vector<128x64xf32>, vector<128x64xf32> -> vector<128x64xf32>
    %29 = vector.broadcast %1 : vector<1x64xf32> to vector<128x64xf32>
    %30 = arith.addf %28, %29 : vector<128x64xf32>
    %cst_31 = arith.constant 0.000000e+00 : f32
    %31 = vector.broadcast %cst_31 : f32 to vector<128x64xf32>
    %32 = arith.maximumf %30, %31 : vector<128x64xf32>
    %33 = vector.broadcast %4 : vector<1x64xf32> to vector<128x64xf32>
    %34 = arith.mulf %32, %33 : vector<128x64xf32>
    %35 = vector.broadcast %5 : vector<1x64xf32> to vector<128x64xf32>
    %36 = arith.addf %34, %35 : vector<128x64xf32>
    %c0_32 = arith.constant 0 : index
    %c0_33 = arith.constant 0 : index
    %37 = vector.load %arg6[%c0_32, %c0_33] : memref<64x32xf32, #tpu.memory_space<vmem>>, vector<64x32xf32>
    %cst_34 = arith.constant dense<0.000000e+00> : vector<128x32xf32>
    %38 = tpu.matmul %25, %37, %cst_34 {dimension_numbers = #tpu.dot_dimension_numbers<[1], [0], [0], [1], [0, 0, 1, 1], [], []>} : vector<128x64xf32>, vector<64x32xf32>, vector<128x32xf32> -> vector<128x32xf32>
    %c0_35 = arith.constant 0 : index
    %c0_36 = arith.constant 0 : index
    %39 = vector.load %arg7[%c0_35, %c0_36] : memref<64x32xf32, #tpu.memory_space<vmem>>, vector<64x32xf32>
    %cst_37 = arith.constant dense<0.000000e+00> : vector<128x32xf32>
    %40 = tpu.matmul %36, %39, %cst_37 {dimension_numbers = #tpu.dot_dimension_numbers<[1], [0], [0], [1], [0, 0, 1, 1], [], []>} : vector<128x64xf32>, vector<64x32xf32>, vector<128x32xf32> -> vector<128x32xf32>
    %41 = arith.addf %38, %40 : vector<128x32xf32>
    %42 = vector.broadcast %9 : vector<1x32xf32> to vector<128x32xf32>
    %43 = arith.addf %41, %42 : vector<128x32xf32>
    %cst_38 = arith.constant dense<0xFF800000> : vector<128xf32>
    %44 = vector.multi_reduction <maximumf>, %43, %cst_38 [1] : vector<128x32xf32> to vector<128xf32>
    %45 = vector.shape_cast %44 : vector<128xf32> to vector<128x1xf32>
    %46 = vector.broadcast %45 : vector<128x1xf32> to vector<128x32xf32>
    %47 = arith.subf %43, %46 : vector<128x32xf32>
    %48 = math.exp %47 : vector<128x32xf32>
    %cst_39 = arith.constant dense<0.000000e+00> : vector<128xf32>
    %49 = vector.multi_reduction <add>, %48, %cst_39 [1] : vector<128x32xf32> to vector<128xf32>
    %50 = vector.shape_cast %49 : vector<128xf32> to vector<128x1xf32>
    %51 = tpu.reciprocal %50 : vector<128x1xf32> -> vector<128x1xf32>
    %52 = vector.broadcast %51 : vector<128x1xf32> to vector<128x32xf32>
    %53 = arith.mulf %48, %52 : vector<128x32xf32>
    %c0_40 = arith.constant 0 : index
    %c0_41 = arith.constant 0 : index
    %54 = vector.load %arg8[%c0_40, %c0_41] : memref<32x64xf32, #tpu.memory_space<vmem>>, vector<32x64xf32>
    %cst_42 = arith.constant dense<0.000000e+00> : vector<128x64xf32>
    %55 = tpu.matmul %53, %54, %cst_42 {dimension_numbers = #tpu.dot_dimension_numbers<[1], [0], [0], [1], [0, 0, 1, 1], [], []>} : vector<128x32xf32>, vector<32x64xf32>, vector<128x64xf32> -> vector<128x64xf32>
    %56 = vector.broadcast %6 : vector<1x64xf32> to vector<128x64xf32>
    %57 = arith.addf %55, %56 : vector<128x64xf32>
    %cst_43 = arith.constant dense<0xFF800000> : vector<128xf32>
    %58 = vector.multi_reduction <maximumf>, %57, %cst_43 [1] : vector<128x64xf32> to vector<128xf32>
    %59 = vector.shape_cast %58 : vector<128xf32> to vector<128x1xf32>
    %60 = vector.broadcast %59 : vector<128x1xf32> to vector<128x64xf32>
    %61 = arith.subf %57, %60 : vector<128x64xf32>
    %62 = math.exp %61 : vector<128x64xf32>
    %cst_44 = arith.constant dense<0.000000e+00> : vector<128xf32>
    %63 = vector.multi_reduction <add>, %62, %cst_44 [1] : vector<128x64xf32> to vector<128xf32>
    %64 = vector.shape_cast %63 : vector<128xf32> to vector<128x1xf32>
    %65 = tpu.reciprocal %64 : vector<128x1xf32> -> vector<128x1xf32>
    %66 = vector.broadcast %65 : vector<128x1xf32> to vector<128x64xf32>
    %67 = arith.mulf %62, %66 : vector<128x64xf32>
    %68 = arith.mulf %25, %67 : vector<128x64xf32>
    %c0_45 = arith.constant 0 : index
    %c0_46 = arith.constant 0 : index
    %69 = vector.load %arg6[%c0_45, %c0_46] : memref<64x32xf32, #tpu.memory_space<vmem>>, vector<64x32xf32>
    %cst_47 = arith.constant dense<0.000000e+00> : vector<128x32xf32>
    %70 = tpu.matmul %36, %69, %cst_47 {dimension_numbers = #tpu.dot_dimension_numbers<[1], [0], [0], [1], [0, 0, 1, 1], [], []>} : vector<128x64xf32>, vector<64x32xf32>, vector<128x32xf32> -> vector<128x32xf32>
    %c0_48 = arith.constant 0 : index
    %c0_49 = arith.constant 0 : index
    %71 = vector.load %arg7[%c0_48, %c0_49] : memref<64x32xf32, #tpu.memory_space<vmem>>, vector<64x32xf32>
    %cst_50 = arith.constant dense<0.000000e+00> : vector<128x32xf32>
    %72 = tpu.matmul %25, %71, %cst_50 {dimension_numbers = #tpu.dot_dimension_numbers<[1], [0], [0], [1], [0, 0, 1, 1], [], []>} : vector<128x64xf32>, vector<64x32xf32>, vector<128x32xf32> -> vector<128x32xf32>
    %73 = arith.addf %70, %72 : vector<128x32xf32>
    %74 = vector.broadcast %9 : vector<1x32xf32> to vector<128x32xf32>
    %75 = arith.addf %73, %74 : vector<128x32xf32>
    %cst_51 = arith.constant dense<0xFF800000> : vector<128xf32>
    %76 = vector.multi_reduction <maximumf>, %75, %cst_51 [1] : vector<128x32xf32> to vector<128xf32>
    %77 = vector.shape_cast %76 : vector<128xf32> to vector<128x1xf32>
    %78 = vector.broadcast %77 : vector<128x1xf32> to vector<128x32xf32>
    %79 = arith.subf %75, %78 : vector<128x32xf32>
    %80 = math.exp %79 : vector<128x32xf32>
    %cst_52 = arith.constant dense<0.000000e+00> : vector<128xf32>
    %81 = vector.multi_reduction <add>, %80, %cst_52 [1] : vector<128x32xf32> to vector<128xf32>
    %82 = vector.shape_cast %81 : vector<128xf32> to vector<128x1xf32>
    %83 = tpu.reciprocal %82 : vector<128x1xf32> -> vector<128x1xf32>
    %84 = vector.broadcast %83 : vector<128x1xf32> to vector<128x32xf32>
    %85 = arith.mulf %80, %84 : vector<128x32xf32>
    %c0_53 = arith.constant 0 : index
    %c0_54 = arith.constant 0 : index
    %86 = vector.load %arg8[%c0_53, %c0_54] : memref<32x64xf32, #tpu.memory_space<vmem>>, vector<32x64xf32>
    %cst_55 = arith.constant dense<0.000000e+00> : vector<128x64xf32>
    %87 = tpu.matmul %85, %86, %cst_55 {dimension_numbers = #tpu.dot_dimension_numbers<[1], [0], [0], [1], [0, 0, 1, 1], [], []>} : vector<128x32xf32>, vector<32x64xf32>, vector<128x64xf32> -> vector<128x64xf32>
    %88 = vector.broadcast %6 : vector<1x64xf32> to vector<128x64xf32>
    %89 = arith.addf %87, %88 : vector<128x64xf32>
    %cst_56 = arith.constant dense<0xFF800000> : vector<128xf32>
    %90 = vector.multi_reduction <maximumf>, %89, %cst_56 [1] : vector<128x64xf32> to vector<128xf32>
    %91 = vector.shape_cast %90 : vector<128xf32> to vector<128x1xf32>
    %92 = vector.broadcast %91 : vector<128x1xf32> to vector<128x64xf32>
    %93 = arith.subf %89, %92 : vector<128x64xf32>
    %94 = math.exp %93 : vector<128x64xf32>
    %cst_57 = arith.constant dense<0.000000e+00> : vector<128xf32>
    %95 = vector.multi_reduction <add>, %94, %cst_57 [1] : vector<128x64xf32> to vector<128xf32>
    %96 = vector.shape_cast %95 : vector<128xf32> to vector<128x1xf32>
    %97 = tpu.reciprocal %96 : vector<128x1xf32> -> vector<128x1xf32>
    %98 = vector.broadcast %97 : vector<128x1xf32> to vector<128x64xf32>
    %99 = arith.mulf %94, %98 : vector<128x64xf32>
    %100 = arith.mulf %36, %99 : vector<128x64xf32>
    %c0_58 = arith.constant 0 : index
    %c0_59 = arith.constant 0 : index
    %101 = vector.load %arg9[%c0_58, %c0_59] : memref<64x64xf32, #tpu.memory_space<vmem>>, vector<64x64xf32>
    %cst_60 = arith.constant dense<0.000000e+00> : vector<128x64xf32>
    %102 = tpu.matmul %68, %101, %cst_60 {dimension_numbers = #tpu.dot_dimension_numbers<[1], [0], [0], [1], [0, 0, 1, 1], [], []>} : vector<128x64xf32>, vector<64x64xf32>, vector<128x64xf32> -> vector<128x64xf32>
    %c0_61 = arith.constant 0 : index
    %c0_62 = arith.constant 0 : index
    %103 = vector.load %arg10[%c0_61, %c0_62] : memref<64x64xf32, #tpu.memory_space<vmem>>, vector<64x64xf32>
    %cst_63 = arith.constant dense<0.000000e+00> : vector<128x64xf32>
    %104 = tpu.matmul %100, %103, %cst_63 {dimension_numbers = #tpu.dot_dimension_numbers<[1], [0], [0], [1], [0, 0, 1, 1], [], []>} : vector<128x64xf32>, vector<64x64xf32>, vector<128x64xf32> -> vector<128x64xf32>
    %105 = arith.addf %102, %104 : vector<128x64xf32>
    %c0_64 = arith.constant 0 : index
    %c0_65 = arith.constant 0 : index
    %106 = vector.load %arg3[%c0_64, %c0_65] : memref<128x8xf32, #tpu.memory_space<vmem>>, vector<128x8xf32>
    %c0_66 = arith.constant 0 : index
    %c0_67 = arith.constant 0 : index
    %107 = vector.load %arg11[%c0_66, %c0_67] : memref<8x64xf32, #tpu.memory_space<vmem>>, vector<8x64xf32>
    %cst_68 = arith.constant dense<0.000000e+00> : vector<128x64xf32>
    %108 = tpu.matmul %106, %107, %cst_68 {dimension_numbers = #tpu.dot_dimension_numbers<[1], [0], [0], [1], [0, 0, 1, 1], [], []>} : vector<128x8xf32>, vector<8x64xf32>, vector<128x64xf32> -> vector<128x64xf32>
    %109 = arith.addf %105, %108 : vector<128x64xf32>
    %110 = vector.broadcast %7 : vector<1x64xf32> to vector<128x64xf32>
    %111 = arith.mulf %109, %110 : vector<128x64xf32>
    %112 = vector.broadcast %8 : vector<1x64xf32> to vector<128x64xf32>
    %113 = arith.addf %111, %112 : vector<128x64xf32>
    %cst_69 = arith.constant 0.000000e+00 : f32
    %114 = vector.broadcast %cst_69 : f32 to vector<128x64xf32>
    %115 = arith.maximumf %113, %114 : vector<128x64xf32>
    %c0_70 = arith.constant 0 : index
    %c0_71 = arith.constant 0 : index
    %116 = vector.load %arg12[%c0_70, %c0_71] : memref<64x512xf32, #tpu.memory_space<vmem>>, vector<64x512xf32>
    %cst_72 = arith.constant dense<0.000000e+00> : vector<128x512xf32>
    %117 = tpu.matmul %115, %116, %cst_72 {dimension_numbers = #tpu.dot_dimension_numbers<[1], [0], [0], [1], [0, 0, 1, 1], [], []>} : vector<128x64xf32>, vector<64x512xf32>, vector<128x512xf32> -> vector<128x512xf32>
    %118 = vector.broadcast %10 : vector<1x512xf32> to vector<128x512xf32>
    %119 = arith.mulf %117, %118 : vector<128x512xf32>
    %120 = vector.broadcast %11 : vector<1x512xf32> to vector<128x512xf32>
    %121 = arith.addf %119, %120 : vector<128x512xf32>
    %cst_73 = arith.constant 0.000000e+00 : f32
    %122 = vector.broadcast %cst_73 : f32 to vector<128x512xf32>
    %123 = arith.maximumf %121, %122 : vector<128x512xf32>
    %c0_74 = arith.constant 0 : index
    %c0_75 = arith.constant 0 : index
    %124 = vector.load %arg13[%c0_74, %c0_75] : memref<512x128xf32, #tpu.memory_space<vmem>>, vector<512x128xf32>
    %cst_76 = arith.constant dense<0.000000e+00> : vector<128x128xf32>
    %125 = tpu.matmul %123, %124, %cst_76 {dimension_numbers = #tpu.dot_dimension_numbers<[1], [0], [0], [1], [0, 0, 1, 1], [], []>} : vector<128x512xf32>, vector<512x128xf32>, vector<128x128xf32> -> vector<128x128xf32>
    %126 = vector.broadcast %12 : vector<1x128xf32> to vector<128x128xf32>
    %127 = arith.mulf %125, %126 : vector<128x128xf32>
    %128 = vector.broadcast %13 : vector<1x128xf32> to vector<128x128xf32>
    %129 = arith.addf %127, %128 : vector<128x128xf32>
    %cst_77 = arith.constant 0.000000e+00 : f32
    %130 = vector.broadcast %cst_77 : f32 to vector<128x128xf32>
    %131 = arith.maximumf %129, %130 : vector<128x128xf32>
    %c0_78 = arith.constant 0 : index
    %c0_79 = arith.constant 0 : index
    %132 = vector.load %arg14[%c0_78, %c0_79] : memref<128x128xf32, #tpu.memory_space<vmem>>, vector<128x128xf32>
    %cst_80 = arith.constant dense<0.000000e+00> : vector<128x128xf32>
    %133 = tpu.matmul %131, %132, %cst_80 {dimension_numbers = #tpu.dot_dimension_numbers<[1], [0], [0], [1], [0, 0, 1, 1], [], []>} : vector<128x128xf32>, vector<128x128xf32>, vector<128x128xf32> -> vector<128x128xf32>
    %134 = vector.broadcast %14 : vector<1x128xf32> to vector<128x128xf32>
    %135 = arith.addf %133, %134 : vector<128x128xf32>
    %c0_81 = arith.constant 0 : index
    %c0_82 = arith.constant 0 : index
    %136 = vector.load %arg20[%c0_81, %c0_82] : memref<128x128xf32, #tpu.memory_space<vmem>>, vector<128x128xf32>
    tpu.vector_store %arg20[%c0_81, %c0_82], %135 {strides = array<i32>} : memref<128x128xf32, #tpu.memory_space<vmem>>, vector<128x128xf32>,
    return
  }
  func.func @transform_0(%arg0: i32) -> (i32, i32) {
    %c0_i32 = arith.constant 0 : i32
    %c0_i32_0 = arith.constant 0 : i32
    return %arg0, %c0_i32 : i32, i32
  }
  func.func @transform_1(%arg0: i32) -> (i32, i32) {
    %c0_i32 = arith.constant 0 : i32
    %c0_i32_0 = arith.constant 0 : i32
    return %arg0, %c0_i32 : i32, i32
  }
  func.func @transform_2(%arg0: i32) -> (i32, i32) {
    %c0_i32 = arith.constant 0 : i32
    %c0_i32_0 = arith.constant 0 : i32
    return %arg0, %c0_i32 : i32, i32
  }
  func.func @transform_3(%arg0: i32) -> (i32, i32) {
    %c0_i32 = arith.constant 0 : i32
    %c0_i32_0 = arith.constant 0 : i32
    %c0_i32_1 = arith.constant 0 : i32
    return %c0_i32, %c0_i32_0 : i32, i32
  }
  func.func @transform_4(%arg0: i32) -> (i32, i32) {
    %c0_i32 = arith.constant 0 : i32
    %c0_i32_0 = arith.constant 0 : i32
    %c0_i32_1 = arith.constant 0 : i32
    return %c0_i32, %c0_i32_0 : i32, i32
  }
  func.func @transform_5(%arg0: i32) -> (i32, i32) {
    %c0_i32 = arith.constant 0 : i32
    %c0_i32_0 = arith.constant 0 : i32
    %c0_i32_1 = arith.constant 0 : i32
    return %c0_i32, %c0_i32_0 : i32, i32
  }
  func.func @transform_6(%arg0: i32) -> (i32, i32) {
    %c0_i32 = arith.constant 0 : i32
    %c0_i32_0 = arith.constant 0 : i32
    %c0_i32_1 = arith.constant 0 : i32
    return %c0_i32, %c0_i32_0 : i32, i32
  }
  func.func @transform_7(%arg0: i32) -> (i32, i32) {
    %c0_i32 = arith.constant 0 : i32
    %c0_i32_0 = arith.constant 0 : i32
    %c0_i32_1 = arith.constant 0 : i32
    return %c0_i32, %c0_i32_0 : i32, i32
  }
  func.func @transform_8(%arg0: i32) -> (i32, i32) {
    %c0_i32 = arith.constant 0 : i32
    %c0_i32_0 = arith.constant 0 : i32
    %c0_i32_1 = arith.constant 0 : i32
    return %c0_i32, %c0_i32_0 : i32, i32
  }
  func.func @transform_9(%arg0: i32) -> (i32, i32) {
    %c0_i32 = arith.constant 0 : i32
    %c0_i32_0 = arith.constant 0 : i32
    %c0_i32_1 = arith.constant 0 : i32
    return %c0_i32, %c0_i32_0 : i32, i32
  }
  func.func @transform_10(%arg0: i32) -> (i32, i32) {
    %c0_i32 = arith.constant 0 : i32
    %c0_i32_0 = arith.constant 0 : i32
    %c0_i32_1 = arith.constant 0 : i32
    return %c0_i32, %c0_i32_0 : i32, i32
  }
  func.func @transform_11(%arg0: i32) -> (i32, i32) {
    %c0_i32 = arith.constant 0 : i32
    %c0_i32_0 = arith.constant 0 : i32
    %c0_i32_1 = arith.constant 0 : i32
    return %c0_i32, %c0_i32_0 : i32, i32
  }
  func.func @transform_12(%arg0: i32) -> (i32, i32) {
    %c0_i32 = arith.constant 0 : i32
    %c0_i32_0 = arith.constant 0 : i32
    %c0_i32_1 = arith.constant 0 : i32
    return %c0_i32, %c0_i32_0 : i32, i32
  }
  func.func @transform_13(%arg0: i32) -> (i32, i32) {
    %c0_i32 = arith.constant 0 : i32
    %c0_i32_0 = arith.constant 0 : i32
    %c0_i32_1 = arith.constant 0 : i32
    return %c0_i32, %c0_i32_0 : i32, i32
  }
  func.func @transform_14(%arg0: i32) -> (i32, i32) {
    %c0_i32 = arith.constant 0 : i32
    %c0_i32_0 = arith.constant 0 : i32
    %c0_i32_1 = arith.constant 0 : i32
    return %c0_i32, %c0_i32_0 : i32, i32
  }
  func.func @transform_15(%arg0: i32) -> (i32, i32) {
    %c0_i32 = arith.constant 0 : i32
    %c0_i32_0 = arith.constant 0 : i32
    %c0_i32_1 = arith.constant 0 : i32
    return %c0_i32, %c0_i32_0 : i32, i32
  }
  func.func @transform_16(%arg0: i32) -> (i32, i32) {
    %c0_i32 = arith.constant 0 : i32
    %c0_i32_0 = arith.constant 0 : i32
    %c0_i32_1 = arith.constant 0 : i32
    return %c0_i32, %c0_i32_0 : i32, i32
  }
  func.func @transform_17(%arg0: i32) -> (i32, i32) {
    %c0_i32 = arith.constant 0 : i32
    %c0_i32_0 = arith.constant 0 : i32
    %c0_i32_1 = arith.constant 0 : i32
    return %c0_i32, %c0_i32_0 : i32, i32
  }
  func.func @transform_18(%arg0: i32) -> (i32, i32) {
    %c0_i32 = arith.constant 0 : i32
    %c0_i32_0 = arith.constant 0 : i32
    %c0_i32_1 = arith.constant 0 : i32
    return %c0_i32, %c0_i32_0 : i32, i32
  }
  func.func @transform_19(%arg0: i32) -> (i32, i32) {
    %c0_i32 = arith.constant 0 : i32
    %c0_i32_0 = arith.constant 0 : i32
    return %arg0, %c0_i32 : i32, i32
  }
}

</mosaic_0001>

<bundles_post_ra>
// kernel: tpu_custom_call.1
= control target key start
LH: loop header
LB: loop body
LE: loop exit
PB: predicated region body
PF: predicated region fallthrough
CT: control target
= control target key end

     0   :  { %s9508_s0 = inlined_call_operand.vmem [shape: f32[256,64], index: 0, kind: input, shape index: {}]   ;;  %s9509_s1 = inlined_call_operand.vmem [shape: f32[256,128], index: 1, kind: input, shape index: {}]   ;;  %s9510_s2 = inlined_call_operand.vmem [shape: f32[256,8], index: 2, kind: input, shape index: {}]   ;;  %s9511_s3 = inlined_call_operand.hbm [shape: f32[64,64], index: 3, kind: input, shape index: {}]   ;;  %s9512_s4 = inlined_call_operand.vmem [shape: f32[128,64], index: 4, kind: input, shape index: {}]   ;;  %s9513_s5 = inlined_call_operand.vmem [shape: f32[64,32], index: 5, kind: input, shape index: {}]   ;;  %s9514_s6 = inlined_call_operand.vmem [shape: f32[64,32], index: 6, kind: input, shape index: {}]   ;;  %s9515_s7 = inlined_call_operand.hbm [shape: f32[32,64], index: 7, kind: input, shape index: {}]   ;;  %s9516_s8 = inlined_call_operand.hbm [shape: f32[64,64], index: 8, kind: input, shape index: {}]   ;;  %s9517_s9 = inlined_call_operand.hbm [shape: f32[64,64], index: 9, kind: input, shape index: {}]   ;;  %s9518_s10 = inlined_call_operand.hbm [shape: f32[8,64], index: 10, kind: input, shape index: {}]   ;;  %s9519_s11 = inlined_call_operand.vmem [shape: f32[64,512], index: 11, kind: input, shape index: {}]   ;;  %s9520_s12 = inlined_call_operand.vmem [shape: f32[512,128], index: 12, kind: input, shape index: {}]   ;;  %s9521_s13 = inlined_call_operand.hbm [shape: f32[128,128], index: 13, kind: input, shape index: {}]   ;;  %s9522_s14 = inlined_call_operand.vmem [shape: f32[9,64], index: 14, kind: input, shape index: {}]   ;;  %s9523_s15 = inlined_call_operand.vmem [shape: f32[1,32], index: 15, kind: input, shape index: {}]   ;;  %s9524_s16 = inlined_call_operand.hbm [shape: f32[2,512], index: 16, kind: input, shape index: {}]   ;;  %s9525_s17 = inlined_call_operand.vmem [shape: f32[2,128], index: 17, kind: input, shape index: {}]   ;;  %s9526_s18 = inlined_call_operand.vmem [shape: f32[1,128], index: 18, kind: input, shape index: {}]   ;;  %s9527_s19 = inlined_call_operand.hbm [shape: f32[256,128], index: 19, kind: output, shape index: {}]  }
   0x1   :  { %9552 = sst [smem:[#allocation40_spill]] %s9508_s0 }
   0x2   :  { %9553 = sst [smem:[#allocation41_spill]] %s9509_s1 }
   0x3   :  { %9554 = sst [smem:[#allocation42_spill]] %s9510_s2 }
   0x4   :  { %9555 = sst [smem:[#allocation43_spill]] %s9511_s3 }
   0x5   :  { %9556 = sst [smem:[#allocation44_spill]] %s9515_s7 }
   0x6   :  { %9557 = sst [smem:[#allocation45_spill]] %s9527_s19 }
   0x7   :  { %24 = vsyncpa [#allocation3], 0 }
   0x8   :  { %25 = vsyncpa [#allocation6], 0 }
   0x9   :  { %26 = vsyncpa [#allocation9], 0 }
   0xa   :  { %27 = vsyncpa [#allocation12], 0 }
   0xb   :  { %28 = vsyncpa [#allocation4], 0 }
   0xc   :  { %30 = vsyncpa [#allocation4 + $0x1], 0  ;;  %s7156_s0 = smov 0   ;;  %s7158_s30 = smov 0  }
   0xd   :  { %s7160_s20 = smov 0   ;;  %s7162_s21 = smov 0  }
   0xe LB: > { %9558 = sst [smem:[#allocation20_spill]] %s7029_s0  ;;  %s7177_s1 = sadd.s32 4294967295, %s7041_s21   ;;  %s7041_s21 = sphi %s7162_s21, %s9618_s21   ;;  %s7037_s20 = sphi %s7160_s20, %s9620_s20   ;;  %s7033_s30 = sphi %s7158_s30, %s9622_s30   ;;  %s7029_s0 = sphi %s7156_s0, %s9621_s0  }
   0xf   : > { %9559 = sst [smem:[#allocation21_spill]] %s7037_s20  ;;  %s5221_s22 = sadd.s32 4294967294, %s7041_s21  }
  0x10   : > { %9560 = sst [smem:[#allocation22_spill]] %s7041_s21  ;;  %s7181_s2 = sadd.s32 1, %s7041_s21  }
  0x11   : > { %9561 = sst [smem:[#allocation23_spill]] %s7181_s2  ;;  %s457_s23 = sadd.s32 1, %s7037_s20 }
  0x12   : > { %s454_s24 = ssub.s32 %s7041_s21, %s7181_s2  ;;  %p467_p0 = scmp.ne.s32.totalorder %s7037_s20, %s7033_s30 }
  0x13   : > { %p455_p1 = scmp.eq.s32.totalorder %s454_s24, 0  ;;  %p468_p2 = scmp.eq.s32.totalorder %s7177_s1, 1 }
  0x14   : > { %p473_p3 = scmp.ne.s32.totalorder %s7033_s30, %s7029_s0  ;;  %p474_p4 = scmp.eq.s32.totalorder %s5221_s22, 1 }
  0x15   : > { %s7192_s25 = scalar_select %p455_p1, %s7037_s20, %s457_s23  }
  0x16   : > { %p7194_p5 = por %p468_p2, %p467_p0  ;;  %p7198_p6 = por %p474_p4, %p473_p3 }
  0x17   : > { %9562 = sst [smem:[#allocation24_spill]] %s7192_s25  ;;  %p5222_p7 = scmp.ge.s32.totalorder %s7041_s21, 1 }
  0x18   : > { %s9563_s3 = scalar_select %p7194_p5, 1, 0 }
  0x19   : > { %s9564_s26 = scalar_select %p7198_p6, 1, 0 }
  0x1a   : > { %p481_p8 = scmp.lt.s32.totalorder %s7041_s21, 3  ;;  %p9535_p9 = scmp.eq.s32.totalorder %s7177_s1, 0 }
  0x1b   : > { %9565 = sst [smem:[#allocation25_spill]] %s9564_s26  ;;  %s7043_s28 = smov [#allocation5]  }
  0x1c   : > { %p7205_p10 = pnand %p5222_p7, %p481_p8  ;;  %s515_s29 = sshll.u32 %s7043_s28, 4  ;;  %s516_s29 = int_to_ptr.vmem [resolvable:$true] %s515_s29 }
  0x1d   : > { %s7044_s23 = smov [#allocation8]   ;;  %s7045_s25 = smov [#allocation11]  }
  0x1e   : > { %s9566_s27 = scalar_select %p7205_p10, 1, 0 }
  0x1f   : > { %p6434_p11 = pneg %p7205_p10  ;;  %s541_s24 = sshll.u32 %s7044_s23, 4  ;;  %s542_s24 = int_to_ptr.vmem [resolvable:$true] %s541_s24 }
  0x20   : > { %s571_s20 = sshll.u32 %s7045_s25, 4  ;;  %s6794_s26 = scalar_lea.vmem %s516_s29, 512  ;;  %s572_s20 = int_to_ptr.vmem [resolvable:$true] %s571_s20 }
  0x21   : > { %p7213_p12 = pnand %p9535_p9, %p6434_p11  ;;  %p6795_p0 = scmp.ne.s32.totalorder %s516_s29, %s6794_s26 }
  0x22   : > { %p6802_p3 = scmp.lt.s32.totalorder %s516_s29, %s516_s29  ;;  %p6803_p4 = scmp.lt.s32.totalorder %s6794_s26, %s6794_s26 }
  0x23   : > { %p7219_p13 = pneg %p7213_p12 }
  0x24   : > { %p6804_p7 = por %p6803_p4, %p6802_p3 }
  0x25   : > { %p6797_p1 = pnand %p6795_p0, %p7219_p13 }
  0x27   : > { %p6798_p2 = pneg %p6797_p1 }
  0x29   : > { %p6805_p8 = pnand %p6804_p7, %p6798_p2 }
  0x2b   : > { %6808 = shalt.err (!%p6805_p8)
}
  0x2c   : > { %s7046_s28 = smov 128   ;;  %s7047_s25 = smov 8  }
  0x2d   : > { %s9569_s7 = sld [smem:[#allocation44_spill]]  ;;  %s6820_s21 = scalar_lea.vmem %s542_s24, 1024 }
  0x2e   : > { %p6821_p11 = scmp.ne.s32.totalorder %s542_s24, %s6820_s21  ;;  %p6828_p3 = scmp.lt.s32.totalorder %s542_s24, %s542_s24 }
  0x2f   : > { %p6829_p2 = scmp.lt.s32.totalorder %s6820_s21, %s6820_s21 }
  0x30   : > { %p6823_p0 = pnand %p6821_p11, %p7219_p13 }
  0x31   : > { %p6830_p4 = por %p6829_p2, %p6828_p3 }
  0x32   : > { %p6824_p1 = pneg %p6823_p0 }
  0x33   : > { %6440 = dma.hbm_to_vmem [thread:$0]  (!%p7213_p12), %s9569_s7, 512, %s516_s29, [#allocation6], %s7046_s28, %s7046_s28, %s7047_s25  }
  0x34   : > { %p6831_p7 = pnand %p6830_p4, %p6824_p1 }
  0x36   : > { %6834 = shalt.err (!%p6831_p7)
}
  0x37   : > { %6446 = dma.hbm_to_vmem [thread:$0]  (!%p7213_p12), %s9517_s9, 1024, %s542_s24, [#allocation9], %s7046_s28, %s7046_s28, %s7047_s25  }
  0x38   : > { %s6846_s0 = scalar_lea.vmem %s572_s20, 2048  ;;  %p6854_p9 = scmp.lt.s32.totalorder %s572_s20, %s572_s20 }
  0x39   : > { %p6847_p8 = scmp.ne.s32.totalorder %s572_s20, %s6846_s0  ;;  %p6855_p3 = scmp.lt.s32.totalorder %s6846_s0, %s6846_s0 }
  0x3b   : > { %p6849_p11 = pnand %p6847_p8, %p7219_p13  ;;  %p6856_p1 = por %p6855_p3, %p6854_p9 }
  0x3d   : > { %p6850_p0 = pneg %p6849_p11 }
  0x3f   : > { %p6857_p2 = pnand %p6856_p1, %p6850_p0 }
  0x41   : > { %6860 = shalt.err (!%p6857_p2)
}
  0x42   : > { %6452 = dma.hbm_to_vmem [thread:$0]  (!%p7213_p12), %s9521_s13, 2048, %s572_s20, [#allocation12], %s7046_s28, %s7046_s28, %s7047_s25  }
  0x43   : > { %s7048_s29 = smov [#allocation2]   ;;  %s7049_s23 = smov [#allocation7]  }
  0x44   : > { %s493_s24 = sshll.u32 %s7048_s29, 4  ;;  %s528_s26 = sshll.u32 %s7049_s23, 4  ;;  %s494_s24 = int_to_ptr.vmem [resolvable:$true] %s493_s24  ;;  %s529_s26 = int_to_ptr.vmem [resolvable:$true] %s528_s26 }
  0x45   : > { %s6872_s7 = scalar_lea.vmem %s494_s24, 1024  ;;  %p6880_p8 = scmp.lt.s32.totalorder %s494_s24, %s494_s24 }
  0x46   : > { %p6873_p4 = scmp.ne.s32.totalorder %s494_s24, %s6872_s7  ;;  %p6881_p11 = scmp.lt.s32.totalorder %s6872_s7, %s6872_s7 }
  0x48   : > { %p6875_p9 = pnand %p6873_p4, %p7219_p13  ;;  %p6882_p0 = por %p6881_p11, %p6880_p8 }
  0x4a   : > { %p6876_p7 = pneg %p6875_p9 }
  0x4c   : > { %p6883_p3 = pnand %p6882_p0, %p6876_p7 }
  0x4e   : > { %6886 = shalt.err (!%p6883_p3)
}
  0x4f   : > { %s9570_s21 = sld [smem:[#allocation43_spill]]  ;;  %s6898_s19 = scalar_lea.vmem %s529_s26, 1024 }
  0x50   : > { %p6899_p1 = scmp.ne.s32.totalorder %s529_s26, %s6898_s19  ;;  %p6906_p9 = scmp.lt.s32.totalorder %s529_s26, %s529_s26 }
  0x51   : > { %p6907_p8 = scmp.lt.s32.totalorder %s6898_s19, %s6898_s19 }
  0x52   : > { %p6901_p2 = pnand %p6899_p1, %p7219_p13 }
  0x53   : > { %p6908_p7 = por %p6907_p8, %p6906_p9 }
  0x54   : > { %p6902_p4 = pneg %p6901_p2 }
  0x55   : > { %6437 = dma.hbm_to_vmem [thread:$0]  (!%p7213_p12), %s9570_s21, 1024, %s494_s24, [#allocation3], %s7046_s28, %s7046_s28, %s7047_s25  }
  0x56   : > { %p6909_p11 = pnand %p6908_p7, %p6902_p4 }
  0x58   : > { %6912 = shalt.err (!%p6909_p11)
}
  0x59   : > { %6443 = dma.hbm_to_vmem [thread:$0]  (!%p7213_p12), %s9516_s8, 1024, %s529_s26, [#allocation6], %s7046_s28, %s7046_s28, %s7047_s25  }
  0x5a   : > { %s7050_s24 = smov [#allocation10]   ;;  %s7051_s20 = smov [#allocation13]  }
  0x5b   : > { %s555_s23 = sshll.u32 %s7050_s24, 4  ;;  %s591_s0 = sshll.u32 %s7051_s20, 4  ;;  %s556_s23 = int_to_ptr.vmem [resolvable:$true] %s555_s23  ;;  %s592_s0 = int_to_ptr.vmem [resolvable:$true] %s591_s0 }
  0x5c   : > { %s6924_s21 = scalar_lea.vmem %s556_s23, 128  ;;  %p6932_p2 = scmp.lt.s32.totalorder %s556_s23, %s556_s23 }
  0x5d   : > { %p6925_p0 = scmp.ne.s32.totalorder %s556_s23, %s6924_s21  ;;  %p6933_p4 = scmp.lt.s32.totalorder %s6924_s21, %s6924_s21 }
  0x5f   : > { %p6927_p3 = pnand %p6925_p0, %p7219_p13  ;;  %p6934_p9 = por %p6933_p4, %p6932_p2 }
  0x61   : > { %p6928_p1 = pneg %p6927_p3 }
  0x63   : > { %p6935_p8 = pnand %p6934_p9, %p6928_p1 }
  0x65   : > { %6938 = shalt.err (!%p6935_p8)
}
  0x66   : > { %6449 = dma.hbm_to_vmem [thread:$0]  (!%p7213_p12), %s9518_s10, 128, %s556_s23, [#allocation9]  }
  0x67   : > { %s6950_s28 = scalar_lea.vmem %s592_s0, 128  ;;  %p6958_p0 = scmp.lt.s32.totalorder %s592_s0, %s592_s0 }
  0x68   : > { %p6951_p7 = scmp.ne.s32.totalorder %s592_s0, %s6950_s28  ;;  %p6959_p3 = scmp.lt.s32.totalorder %s6950_s28, %s6950_s28 }
  0x6a   : > { %p6953_p11 = pnand %p6951_p7, %p7219_p13  ;;  %p6960_p5 = por %p6959_p3, %p6958_p0 }
  0x6c   : > { %p6954_p6 = pneg %p6953_p11 }
  0x6e   : > { %p6961_p10 = pnand %p6960_p5, %p6954_p6 }
  0x70   : > { %6964 = shalt.err (!%p6961_p10)
}
  0x71   : > { %6455 = dma.hbm_to_vmem [thread:$0]  (!%p7213_p12), %s9524_s16, 128, %s592_s0, [#allocation12]  }
  0x72   : > { %p9571_p1 = scmp.ne.s32.totalorder %s9566_s27, 0 }
  0x74   : > { %637 = sbr.rel (%p9571_p1) target bundleno = 2891 (0xb4b), region = 96 }
  0x79   : > { %p9572_p2 = scmp.eq.s32.totalorder %s7177_s1, 0 }
  0x7b   : > { %7008 = dma.done.wait (%p9572_p2), [#allocation3], 1024   ;;  %p9573_p13 = pmov %p9572_p2 }
  0x7c   : > { %p9574_p4 = pmov %p9572_p2 }
  0x7d   : > { %7010 = vsyncadd (%p9573_p13), [#allocation3], 4294966272 }
  0x7e   : > { %7012 = dma.done.wait (%p9574_p4), [#allocation6], 1536   ;;  %p9575_p5 = pmov %p9572_p2 }
  0x7f   : > { %p9576_p6 = pmov %p9572_p2 }
  0x80   : > { %7014 = vsyncadd (%p9575_p5), [#allocation6], 4294965760 }
  0x81   : > { %7016 = dma.done.wait (%p9576_p6), [#allocation9], 1152   ;;  %p9577_p10 = pmov %p9572_p2 }
  0x82   : > { %p9578_p12 = pmov %p9572_p2 }
  0x83   : > { %7018 = vsyncadd (%p9577_p10), [#allocation9], 4294966144 }
  0x84   : > { %7020 = dma.done.wait (%p9578_p12), [#allocation12], 2176   ;;  %p9579_p9 = pmov %p9572_p2 }
  0x85   : > { %s5240_s2 = sshll.u32 %s7177_s1, 4  ;;  %v1071_v0 = vld [vmem:[%s9512_s4 + $0x78] sm:$0xff]  ;;  %v1070_v1 = vld [vmem:[%s9512_s4 + $0x70] sm:$0xff]  ;;  %v1069_v2 = vld [vmem:[%s9512_s4 + $0x68] sm:$0xff]  ;;  %s9580_s0 = sld [smem:[#allocation40_spill]]  ;;  %vm790_vm0 = vcmask 523264  }
  0x86   : > { %7022 = vsyncadd (%p9579_p9), [#allocation12], 4294965120  ;;  %5946 = vmatprep.subr.mxu1 %v1071_v0  ;;  %v785_v3 = vld [vmem:[#allocation2 + $0x38] sm:$0xff]  ;;  %v784_v4 = vld [vmem:[#allocation2 + $0x30] sm:$0xff]  ;;  %p728_p8 = scmp.lt.s32.totalorder %s5240_s2, 31  ;;  %s9581_s27 = sld [smem:[#allocation41_spill]] }
  0x87   : > { %5947 = vmatpush3.msra.mxu1 %v1071_v0  ;;  %5906 = vmatprep.subr.mxu0 %v785_v3  ;;  %v1068_v5 = vld [vmem:[%s9512_s4 + $0x60] sm:$0xff]  ;;  %v783_v6 = vld [vmem:[#allocation2 + $0x28] sm:$0xff]  ;;  %v1067_v7 = vld [vmem:[%s9512_s4 + $0x58] sm:$0xff]  ;;  %vm1701_vm1 = vcmask 261120   ;;  %vm3557_vm2 = vcmask 64512   ;;  %s724_s28 = sand.u32 1, %s7033_s30  }
  0x88   : > { %5948 = vmatprep.subr.mxu1 %v1070_v1  ;;  %5907 = vmatpush3.msra.mxu0 %v785_v3  ;;  %v782_v8 = vld [vmem:[#allocation2 + $0x20] sm:$0xff]  ;;  %s9624_s2 = smov (!%p728_p8, %s5240_s2), 31  ;;  %v1066_v9 = vld [vmem:[%s9512_s4 + $0x50] sm:$0xff]  ;;  %v781_v10 = vld [vmem:[#allocation2 + $0x18] sm:$0xff]  ;;  %s5239_s25 = sshll.u32 %s724_s28, 7 }
  0x89   : > { %5949 = vmatpush3.msra.mxu1 %v1070_v1  ;;  %5908 = vmatprep.subr.mxu0 %v784_v4  ;;  %v1065_v11 = vld [vmem:[%s9512_s4 + $0x48] sm:$0xff]  ;;  %v780_v12 = vld [vmem:[#allocation2 + $0x10] sm:$0xff]  ;;  %s7327_s22 = sshll.u32 %s9624_s2, 3  ;;  %v1064_v13 = vld [vmem:[%s9512_s4 + $0x40] sm:$0xff]  ;;  %s5456_s24 = sshll.u32 %s7177_s1, 11 }
  0x8a   : > { %5950 = vmatprep.subr.mxu1 %v1069_v2  ;;  %5909 = vmatpush3.msra.mxu0 %v784_v4  ;;  %v779_v14 = vld [vmem:[#allocation2 + $0x8] sm:$0xff]  ;;  %v1063_v15 = vld [vmem:[%s9512_s4 + $0x38] sm:$0xff]  ;;  %v778_v16 = vld [vmem:[#allocation2] sm:$0xff]  ;;  %s9468_s19 = scalar_lea.sflag [#allocation4], %s724_s28  ;;  %p9613_p11 = scmp.ne.s32.totalorder %s9563_s3, 0 }
  0x8b   : > { %5951 = vmatpush3.msra.mxu1 %v1069_v2  ;;  %5910 = vmatprep.subr.mxu0 %v783_v6  ;;  %s7336_s21 = scalar_lea.vmem %s9580_s0, %s7327_s22  ;;  %v1062_v17 = vld [vmem:[%s9512_s4 + $0x30] sm:$0xff]  ;;  %v1061_v20 = vld [vmem:[%s9512_s4 + $0x28] sm:$0xff]  ;;  %v1060_v23 = vld [vmem:[%s9512_s4 + $0x20] sm:$0xff]  ;;  %s7053_s7 = smov [#allocation14]  }
  0x8c   : > { %5952 = vmatprep.subr.mxu1 %v1068_v5  ;;  %5911 = vmatpush3.msra.mxu0 %v783_v6  ;;  %v762_v18 = vld [vmem:[%s7336_s21] sm:$0xff]  ;;  %s7349_s29 = scalar_lea.vmem %s9581_s27, %s7327_s22  ;;  %v763_v19 = vld [vmem:[%s7336_s21 + $0x8] sm:$0xff]  ;;  %v764_v21 = vld [vmem:[%s7336_s21 + $0x10] sm:$0xff] }
  0x8d   : > { %5953 = vmatpush3.msra.mxu1 %v1068_v5  ;;  %5912 = vmatprep.subr.mxu0 %v782_v8  ;;  %v1040_v22 = vld [vmem:[%s7349_s29] sm:$0xff]  ;;  %v7365_v24 = vld [vmem:[%s9514_s6 + $0x38] sm:$0xff]  ;;  %v1058_v28 = vld [vmem:[%s9512_s4 + $0x10] sm:$0xff] }
  0x8e   : > { %5954 = vmatprep.subr.mxu1 %v1067_v7  ;;  %5913 = vmatpush3.msra.mxu0 %v782_v8  ;;  %v765_v25 = vld [vmem:[%s7336_s21 + $0x18] sm:$0xff]  ;;  %v766_v27 = vld [vmem:[%s7336_s21 + $0x20] sm:$0xff]  ;;  %v7381_v29 = vld [vmem:[%s9514_s6 + $0x30] sm:$0xff] }
  0x8f   : > { %5955 = vmatpush3.msra.mxu1 %v1067_v7  ;;  %5914 = vmatprep.subr.mxu0 %v781_v10  ;;  %v1059_v26 = vld [vmem:[%s9512_s4 + $0x18] sm:$0xff]  ;;  %v767_v30 = vld [vmem:[%s7336_s21 + $0x28] sm:$0xff]  ;;  %v768_v32 = vld [vmem:[%s7336_s21 + $0x30] sm:$0xff] }
  0x90   : > { %5956 = vmatprep.subr.mxu1 %v1066_v9  ;;  %5915 = vmatpush3.msra.mxu0 %v781_v10  ;;  %v1057_v31 = vld [vmem:[%s9512_s4 + $0x8] sm:$0xff]  ;;  %v1056_v33 = vld [vmem:[%s9512_s4] sm:$0xff]  ;;  %v769_v35 = vld [vmem:[%s7336_s21 + $0x38] sm:$0xff] }
  0x91   : > { %5957 = vmatpush3.msra.mxu1 %v1066_v9  ;;  %5916 = vmatprep.subr.mxu0 %v780_v12  ;;  %v7398_v34 = vld [vmem:[%s9514_s6 + $0x28] sm:$0xff]  ;;  %v770_v37 = vld [vmem:[%s7336_s21 + $0x40] sm:$0xff]  ;;  %v1042_v38 = vld [vmem:[%s7349_s29 + $0x10] sm:$0xff] }
  0x92   : > { %5958 = vmatprep.subr.mxu1 %v1065_v11  ;;  %5917 = vmatpush3.msra.mxu0 %v780_v12  ;;  %v1041_v36 = vld [vmem:[%s7349_s29 + $0x8] sm:$0xff]  ;;  %v7411_v39 = vld [vmem:[%s9514_s6 + $0x20] sm:$0xff]  ;;  %v1043_v41 = vld [vmem:[%s7349_s29 + $0x18] sm:$0xff] }
  0x93   : > { %5959 = vmatpush3.msra.mxu1 %v1065_v11  ;;  %5918 = vmatprep.subr.mxu0 %v779_v14  ;;  %v771_v40 = vld [vmem:[%s7336_s21 + $0x48] sm:$0xff]  ;;  %v772_v42 = vld [vmem:[%s7336_s21 + $0x50] sm:$0xff]  ;;  %v1044_v43 = vld [vmem:[%s7349_s29 + $0x20] sm:$0xff] }
  0x94   : > { %5960 = vmatprep.subr.mxu1 %v1064_v13  ;;  %5919 = vmatpush3.msra.mxu0 %v779_v14  ;;  %v773_v44 = vld [vmem:[%s7336_s21 + $0x58] sm:$0xff]  ;;  %v1045_v45 = vld [vmem:[%s7349_s29 + $0x28] sm:$0xff]  ;;  %v774_v46 = vld [vmem:[%s7336_s21 + $0x60] sm:$0xff] }
  0x95   : > { %5961 = vmatpush3.msra.mxu1 %v1064_v13  ;;  %5920 = vmatprep.subr.mxu0 %v778_v16  ;;  %v1046_v47 = vld [vmem:[%s7349_s29 + $0x30] sm:$0xff]  ;;  %v775_v48 = vld [vmem:[%s7336_s21 + $0x68] sm:$0xff]  ;;  %v1047_v49 = vld [vmem:[%s7349_s29 + $0x38] sm:$0xff] }
  0x96   : > { %5962 = vmatprep.subr.mxu1 %v1063_v15  ;;  %5921 = vmatpush3.msra.mxu0 %v778_v16  ;;  %v776_v50 = vld [vmem:[%s7336_s21 + $0x70] sm:$0xff]  ;;  %v1048_v51 = vld [vmem:[%s7349_s29 + $0x40] sm:$0xff]  ;;  %v777_v52 = vld [vmem:[%s7336_s21 + $0x78] sm:$0xff]  ;;  %s9439_s21 = scalar_lea.vmem [#allocation14], %s5239_s25  ;;  %s6969_s25 = sshll.u32 %s7053_s7, 4  ;;  %s6970_s25 = int_to_ptr.vmem [resolvable:$false] %s6969_s25 }
  0x97   : > { %5963 = vmatpush3.msra.mxu1 %v1063_v15  ;;  %5922 = vmatprep.mubr.msk.f32.mxu0 %vm790_vm0, %v762_v18  ;;  %v1049_v53 = vld [vmem:[%s7349_s29 + $0x48] sm:$0xff]  ;;  %v1050_v54 = vld [vmem:[%s7349_s29 + $0x50] sm:$0xff]  ;;  %v1051_v55 = vld [vmem:[%s7349_s29 + $0x58] sm:$0xff]  ;;  %s5066_s23 = sshll.u32 %s9439_s21, 4  ;;  %s6971_s26 = scalar_lea.vmem %s6970_s25, 4096  ;;  %s9462_s23 = int_to_ptr.vmem [resolvable:$true] %s5066_s23 }
  0x98   : > { %5964 = vmatprep.subr.mxu1 %v1062_v17  ;;  %5923 = vmatmul.mubr.msk.f32.vlgmr.msra.gmra.mxu0 %vm790_vm0, %v763_v19  ;;  %v1052_v56 = vld [vmem:[%s7349_s29 + $0x60] sm:$0xff]  ;;  %v1053_v57 = vld [vmem:[%s7349_s29 + $0x68] sm:$0xff]  ;;  %v1054_v58 = vld [vmem:[%s7349_s29 + $0x70] sm:$0xff]  ;;  %s6965_s1 = scalar_lea.vmem %s9462_s23, 2048  ;;  %p6972_p1 = scmp.lt.s32.totalorder %s9462_s23, %s6970_s25 }
  0x99   : > { %5965 = vmatpush3.msra.mxu1 %v1062_v17  ;;  %5925 = vmatprep.mubr.msk.f32.mxu0 %vm790_vm0, %v764_v21  ;;  %v1055_v59 = vld [vmem:[%s7349_s29 + $0x78] sm:$0xff]  ;;  %v7454_v61 = vld [vmem:[%s9514_s6 + $0x10] sm:$0xff]  ;;  %v7475_v0 = vld [vmem:[%s9513_s5 + $0x28] sm:$0xff]  ;;  %s9596_s29 = sld [smem:[#allocation42_spill]]  ;;  %p6966_p7 = scmp.ne.s32.totalorder %s9462_s23, %s6965_s1 }
  0x9a   : > { %5966 = vmatprep.subr.mxu1 %v1061_v20  ;;  %5978 = vmatprep.mubr.f32.mxu1 %v1040_v22  ;;  %v7447_v60 = vld [vmem:[%s9514_s6 + $0x18] sm:$0xff]  ;;  %v7468_v63 = vld [vmem:[%s9513_s5 + $0x30] sm:$0xff]  ;;  %v7482_v1 = vld [vmem:[%s9513_s5 + $0x20] sm:$0xff]  ;;  %p6973_p2 = scmp.lt.s32.totalorder %s6971_s26, %s6965_s1 }
  0x9b   : > { %5967 = vmatpush3.msra.mxu1 %v1061_v20  ;;  %6002 = vmatprep.subr.mxu0 %v7365_v24  ;;  %v7459_v62 = vld [vmem:[%s9513_s5 + $0x38] sm:$0xff]  ;;  %v7494_v3 = vld [vmem:[%s9514_s6 + $0x8] sm:$0xff]  ;;  %v7502_v4 = vld [vmem:[%s9513_s5 + $0x10] sm:$0xff]  ;;  %p6967_p0 = pnand %p6966_p7, %p9613_p11 }
  0x9c   : > { %5968 = vmatprep.subr.mxu1 %v1060_v23  ;;  %5926 = vmatmul.mubr.msk.f32.gmra.mxu0 %vm790_vm0, %v765_v25  ;;  %v7489_v2 = vld [vmem:[%s9513_s5 + $0x18] sm:$0xff]  ;;  %v7508_v5 = vld [vmem:[%s9514_s6] sm:$0xff]  ;;  %v7516_v6 = vld [vmem:[%s9513_s5 + $0x8] sm:$0xff]  ;;  %p6974_p13 = por %p6973_p2, %p6972_p1 }
  0x9d   : > { %5969 = vmatpush3.msra.mxu1 %v1060_v23  ;;  %5928 = vmatprep.mubr.msk.f32.mxu0 %vm790_vm0, %v766_v27  ;;  %v7525_v7 = vld [vmem:[%s9513_s5] sm:$0xff]  ;;  %p6968_p3 = pneg %p6967_p0 }
  0x9e   : > { %5970 = vmatprep.subr.mxu1 %v1059_v26  ;;  %6003 = vmatpush3.msra.mxu0 %v7365_v24  ;;  %v7535_v11 = vld [vmem:[%s9522_s14] ss:$0 sm:$0xff]  ;;  %v7543_v15 = vld [vmem:[%s9522_s14 + $0x2] ss:$0 sm:$0xff]  ;;  %v7548_v17 = vld [vmem:[%s9522_s14 + $0x1] ss:$0 sm:$0xff] }
  0x9f   : > { %5971 = vmatpush3.msra.mxu1 %v1059_v26  ;;  %6004 = vmatprep.subr.mxu0 %v7381_v29  ;;  %v7554_v21 = vld [vmem:[%s9522_s14 + $0x3] ss:$0 sm:$0xff]  ;;  %s8736_s0 = scalar_lea.vmem %s9596_s29, %s7327_s22  ;;  %p6975_p4 = pnand %p6974_p13, %p6968_p3 }
  0xa0   : > { %5972 = vmatprep.subr.mxu1 %v1058_v28  ;;  %5929 = vmatmul.mubr.msk.f32.gmra.mxu0 %vm790_vm0, %v767_v30 }
  0xa1   : > { %5973 = vmatpush3.msra.mxu1 %v1058_v28  ;;  %5931 = vmatprep.mubr.msk.f32.mxu0 %vm790_vm0, %v768_v32 }
  0xa2   : > { %5974 = vmatprep.subr.mxu1 %v1057_v31  ;;  %6005 = vmatpush3.msra.mxu0 %v7381_v29 }
  0xa3   : > { %5975 = vmatpush3.msra.mxu1 %v1057_v31  ;;  %6006 = vmatprep.subr.mxu0 %v7398_v34 }
  0xa4   : > { %5976 = vmatprep.subr.mxu1 %v1056_v33  ;;  %5932 = vmatmul.mubr.msk.f32.gmra.mxu0 %vm790_vm0, %v769_v35 }
  0xa5   : > { %5977 = vmatpush3.msra.mxu1 %v1056_v33  ;;  %5934 = vmatprep.mubr.msk.f32.mxu0 %vm790_vm0, %v770_v37 }
  0xa6   : > { %5979 = vmatmul.mubr.f32.vlgmr.msra.gmra.mxu1 %v1041_v36  ;;  %6007 = vmatpush3.msra.mxu0 %v7398_v34  ;;  %v7567_v36 = vld [vmem:[%s9522_s14 + $0x4] ss:$0 sm:$0xff] }
  0xa7   : > { %5981 = vmatprep.mubr.f32.mxu1 %v1042_v38  ;;  %6008 = vmatprep.subr.mxu0 %v7411_v39 }
  0xa8   : > { %5935 = vmatmul.mubr.msk.f32.gmra.mxu0 %vm790_vm0, %v771_v40  ;;  %6388 = vmatprep.subr.mxu1 %v7459_v62 }
  0xa9   : > { %5937 = vmatprep.mubr.msk.f32.mxu0 %vm790_vm0, %v772_v42  ;;  %6009 = vmatpush3.msra.mxu0 %v7411_v39 }
  0xaa   : > { %5982 = vmatmul.mubr.f32.gmra.mxu1 %v1043_v41  ;;  %6010 = vmatprep.subr.mxu0 %v7447_v60 }
  0xab   : > { %5984 = vmatprep.mubr.f32.mxu1 %v1044_v43  ;;  %6011 = vmatpush3.msra.mxu0 %v7447_v60 }
  0xac   : > { %5938 = vmatmul.mubr.msk.f32.gmra.mxu0 %vm790_vm0, %v773_v44  ;;  %6012 = vmatprep.subr.mxu0 %v7454_v61 }
  0xad   : > { %5940 = vmatprep.mubr.msk.f32.mxu0 %vm790_vm0, %v774_v46  ;;  %6013 = vmatpush3.msra.mxu0 %v7454_v61 }
  0xae   : > { %5985 = vmatmul.mubr.f32.gmra.mxu1 %v1045_v45  ;;  %6014 = vmatprep.subr.mxu0 %v7494_v3 }
  0xaf   : > { %5987 = vmatprep.mubr.f32.mxu1 %v1046_v47  ;;  %6396 = vmatpush3.msra.mxu1 %v7459_v62 }
  0xb0   : > { %5941 = vmatmul.mubr.msk.f32.gmra.mxu0 %vm790_vm0, %v775_v48  ;;  %6389 = vmatprep.subr.mxu1 %v7468_v63 }
  0xb1   : > { %5943 = vmatprep.mubr.msk.f32.mxu0 %vm790_vm0, %v776_v50  ;;  %6397 = vmatpush3.msra.mxu1 %v7468_v63 }
  0xb2   : > { %5988 = vmatmul.mubr.f32.gmra.mxu1 %v1047_v49  ;;  %6390 = vmatprep.subr.mxu1 %v7475_v0 }
  0xb3   : > { %5990 = vmatprep.mubr.f32.mxu1 %v1048_v51  ;;  %6398 = vmatpush3.msra.mxu1 %v7475_v0 }
  0xb4   : > { %5944 = vmatmul.mubr.msk.f32.gmra.mxu0 %vm790_vm0, %v777_v52  ;;  %6391 = vmatprep.subr.mxu1 %v7482_v1 }
  0xb5   : > { %6399 = vmatpush3.msra.mxu1 %v7482_v1  ;;  %6015 = vmatpush3.msra.mxu0 %v7494_v3 }
  0xb6   : > { %5991 = vmatmul.mubr.f32.gmra.mxu1 %v1049_v53  ;;  %6392 = vmatprep.subr.mxu1 %v7489_v2 }
  0xb7   : > { %5993 = vmatprep.mubr.f32.mxu1 %v1050_v54  ;;  %6400 = vmatpush3.msra.mxu1 %v7489_v2 }
  0xb8   : > { %6393 = vmatprep.subr.mxu1 %v7502_v4  ;;  %6016 = vmatprep.subr.mxu0 %v7508_v5 }
  0xb9   : > { %6401 = vmatpush3.msra.mxu1 %v7502_v4  ;;  %6017 = vmatpush3.msra.mxu0 %v7508_v5 }
  0xba   : > { %5994 = vmatmul.mubr.f32.gmra.mxu1 %v1051_v55  ;;  %6394 = vmatprep.subr.mxu1 %v7516_v6 }
  0xbb   : > { %5996 = vmatprep.mubr.f32.mxu1 %v1052_v56  ;;  %6042 = vmatprep.subr.mxu0 %v7459_v62 }
  0xbc   : > { %6402 = vmatpush3.msra.mxu1 %v7516_v6 }
  0xbd   : > { %6395 = vmatprep.subr.mxu1 %v7525_v7 }
  0xbe   : > { %5997 = vmatmul.mubr.f32.gmra.mxu1 %v1053_v57  ;;  %v7591_v57 = vld [vmem:[%s9522_s14 + $0x5] ss:$0 sm:$0xff] }
  0xbf   : > { %5999 = vmatprep.mubr.f32.mxu1 %v1054_v58  ;;  %6403 = vmatpush3.msra.mxu1 %v7525_v7 }
  0xc0   : > { %6114 = vmatprep.subr.mxu1 %v7365_v24 }
  0xc2   : > { %6000 = vmatmul.mubr.f32.gmra.mxu1 %v1055_v59 }
 0x158   : > { %v5924_v8 = vpop.f32.mrf.mxu0 }
 0x159   : > { %v7559_v27 = vadd.f32 %v5924_v8, %v7535_v11 }
 0x15a   : > { %v905_v9 = vpop.f32.mrf.mxu0 }
 0x15b   : > { %v985_v47 = vmax.f32 %v7559_v27, 0.0  ;;  %v7580_v48 = vadd.f32 %v7535_v11, %v905_v9 }
 0x15c   : > { %v7530_v10 = vpop.f32.mrf.mxu0 }
 0x15e   : > { %v7537_v12 = vpop.f32.mrf.mxu0 }
 0x160   : > { %v5930_v13 = vpop.f32.mrf.mxu0 }
 0x161   : > { %v931_v14 = vadd.f32 %v5930_v13, %v7535_v11 }
 0x162   : > { %v925_v16 = vpop.f32.mrf.mxu0 }
 0x163   : > { %v989_v18 = vmax.f32 %v931_v14, 0.0  ;;  %v926_v19 = vadd.f32 %v7535_v11, %v925_v16 }
 0x164   : > { %v5933_v20 = vpop.f32.mrf.mxu0 }
 0x165   : > { %v1009_v23 = vmul.f32 %v7543_v15, %v989_v18  ;;  %v988_v25 = vmax.f32 %v926_v19, 0.0  ;;  %v941_v26 = vadd.f32 %v5933_v20, %v7535_v11 }
 0x166   : > { %v5980_v22 = vpop.f32.mrf.mxu1  ;;  %v935_v30 = vpop.f32.mrf.mxu0 }
 0x167   : > { %v1148_v28 = vadd.f32 %v5980_v22, %v7548_v17  ;;  %v1008_v32 = vmul.f32 %v7543_v15, %v988_v25  ;;  %v991_v33 = vmax.f32 %v941_v26, 0.0  ;;  %v936_v35 = vadd.f32 %v7535_v11, %v935_v30 }
 0x168   : > { %v1142_v31 = vpop.f32.mrf.mxu1  ;;  %v7571_v40 = vadd.f32 %v7554_v21, %v1009_v23  ;;  %v5936_v41 = vpop.f32.mrf.mxu0 }
 0x169   : > { %v1222_v37 = vmax.f32 %v1148_v28, 0.0  ;;  %v1143_v38 = vadd.f32 %v7548_v17, %v1142_v31  ;;  %v7574_v43 = vadd.f32 %v7554_v21, %v1008_v32  ;;  %v1011_v44 = vmul.f32 %v7543_v15, %v991_v33 }
 0x16a   : > { %9582 = vst [vmem:[#allocation26_spill] sm:$0xff] %v7571_v40  ;;  %v5983_v42 = vpop.f32.mrf.mxu1  ;;  %v990_v45 = vmax.f32 %v936_v35, 0.0  ;;  %v951_v46 = vadd.f32 %v5936_v41, %v7535_v11  ;;  %v945_v51 = vpop.f32.mrf.mxu0 }
 0x16b   : > { %9583 = vst [vmem:[#allocation27_spill] sm:$0xff] %v7574_v43  ;;  %v1221_v49 = vmax.f32 %v1143_v38, 0.0  ;;  %v1158_v50 = vadd.f32 %v5983_v42, %v7548_v17  ;;  %v1242_v52 = vmul.f32 %v7567_v36, %v1222_v37  ;;  %v946_v56 = vadd.f32 %v7535_v11, %v945_v51  ;;  %6064 = vmatprep.mubr.msk.f32.mxu1 %vm790_vm0, %v7574_v43 }
 0x16c   : > { %v1152_v53 = vpop.f32.mrf.mxu1  ;;  %v1010_v54 = vmul.f32 %v7543_v15, %v990_v45  ;;  %v993_v55 = vmax.f32 %v951_v46, 0.0  ;;  %v7596_v9 = vadd.f32 %v7554_v21, %v1011_v44  ;;  %v5939_v13 = vpop.f32.mrf.mxu0  ;;  %6065 = vmatmul.mubr.msk.f32.vlgmr.msra.gmra.mxu1 %vm790_vm0, %v7571_v40 }
 0x16d   : > { %v1241_v58 = vmul.f32 %v7567_v36, %v1221_v49  ;;  %v1224_v59 = vmax.f32 %v1158_v50, 0.0  ;;  %v1153_v8 = vadd.f32 %v7548_v17, %v1152_v53  ;;  %v992_v19 = vmax.f32 %v946_v56, 0.0  ;;  %6115 = vmatpush3.msra.mxu1 %v7365_v24 }
 0x16e   : > { %9584 = vst [vmem:[#allocation28_spill] sm:$0xff] %v7596_v9  ;;  %v5986_v14 = vpop.f32.mrf.mxu1  ;;  %v7601_v16 = vadd.f32 %v7554_v21, %v1010_v54  ;;  %v1013_v18 = vmul.f32 %v7543_v15, %v993_v55  ;;  %v961_v20 = vadd.f32 %v5939_v13, %v7535_v11  ;;  %v955_v28 = vpop.f32.mrf.mxu0  ;;  %6116 = vmatprep.subr.mxu1 %v7381_v29 }
 0x16f   : > { %v7607_v22 = vadd.f32 %v7591_v57, %v1241_v58  ;;  %v1244_v23 = vmul.f32 %v7567_v36, %v1224_v59  ;;  %v1223_v25 = vmax.f32 %v1153_v8, 0.0  ;;  %v1168_v26 = vadd.f32 %v5986_v14, %v7548_v17  ;;  %6117 = vmatpush3.msra.mxu1 %v7381_v29 }
 0x170   : > { %9585 = vst [vmem:[#allocation29_spill] sm:$0xff] %v7601_v16  ;;  %v7613_v30 = vadd.f32 %v7591_v57, %v1242_v52  ;;  %v1162_v31 = vpop.f32.mrf.mxu1  ;;  %v1012_v32 = vmul.f32 %v7543_v15, %v992_v19  ;;  %v995_v33 = vmax.f32 %v961_v20, 0.0  ;;  %v956_v24 = vadd.f32 %v7535_v11, %v955_v28  ;;  %6067 = vmatprep.mubr.msk.f32.mxu1 %vm790_vm0, %v7601_v16  ;;  %v5942_v42 = vpop.f32.mrf.mxu0 }
 0x171   : > { %v1243_v35 = vmul.f32 %v7567_v36, %v1223_v25  ;;  %v1226_v37 = vmax.f32 %v1168_v26, 0.0  ;;  %v1163_v38 = vadd.f32 %v7548_v17, %v1162_v31  ;;  %v7623_v41 = vadd.f32 %v7554_v21, %v1013_v18  ;;  %6018 = vmatprep.mubr.msk.f32.mxu0 %vm790_vm0, %v7607_v22  ;;  %6068 = vmatmul.mubr.msk.f32.gmra.mxu1 %vm790_vm0, %v7596_v9 }
 0x172   : > { %v5989_v44 = vpop.f32.mrf.mxu1  ;;  %6019 = vmatmul.mubr.msk.f32.vlgmr.msra.gmra.mxu0 %vm790_vm0, %v7613_v30  ;;  %v7632_v29 = vadd.f32 %v7554_v21, %v1012_v32  ;;  %v1015_v45 = vmul.f32 %v7543_v15, %v995_v33  ;;  %v994_v46 = vmax.f32 %v956_v24, 0.0  ;;  %v971_v49 = vadd.f32 %v5942_v42, %v7535_v11  ;;  %6118 = vmatprep.subr.mxu1 %v7398_v34  ;;  %v965_v54 = vpop.f32.mrf.mxu0 }
 0x173   : > { %9586 = vst [vmem:[#allocation30_spill] sm:$0xff] %v7623_v41  ;;  %v7638_v50 = vadd.f32 %v7591_v57, %v1244_v23  ;;  %v7641_v51 = vadd.f32 %v7591_v57, %v1243_v35  ;;  %v1225_v52 = vmax.f32 %v1163_v38, 0.0  ;;  %v1178_v53 = vadd.f32 %v5989_v44, %v7548_v17  ;;  %6043 = vmatpush3.msra.mxu0 %v7459_v62 }
 0x174   : > { %9587 = vst [vmem:[#allocation31_spill] sm:$0xff] %v7632_v29  ;;  %6119 = vmatpush3.msra.mxu1 %v7398_v34  ;;  %v1246_v55 = vmul.f32 %v7567_v36, %v1226_v37  ;;  %v1172_v56 = vpop.f32.mrf.mxu1  ;;  %6044 = vmatprep.subr.mxu0 %v7468_v63  ;;  %v1014_v58 = vmul.f32 %v7543_v15, %v994_v46  ;;  %v997_v59 = vmax.f32 %v971_v49, 0.0  ;;  %v5945_v19 = vpop.f32.mrf.mxu0 }
 0x175   : > { %v966_v8 = vadd.f32 %v7535_v11, %v965_v54  ;;  %6070 = vmatprep.mubr.msk.f32.mxu1 %vm790_vm0, %v7632_v29  ;;  %v1245_v13 = vmul.f32 %v7567_v36, %v1225_v52  ;;  %v1228_v14 = vmax.f32 %v1178_v53, 0.0  ;;  %v1173_v18 = vadd.f32 %v7548_v17, %v1172_v56  ;;  %6021 = vmatprep.mubr.msk.f32.mxu0 %vm790_vm0, %v7641_v51 }
 0x176   : > { %v7655_v34 = vadd.f32 %v7554_v21, %v1015_v45  ;;  %6045 = vmatpush3.msra.mxu0 %v7468_v63  ;;  %v5992_v20 = vpop.f32.mrf.mxu1  ;;  %v7663_v23 = vadd.f32 %v7554_v21, %v1014_v58  ;;  %v1017_v25 = vmul.f32 %v7543_v15, %v997_v59  ;;  %v981_v28 = vadd.f32 %v5945_v19, %v7535_v11  ;;  %v975_v24 = vpop.f32.mrf.mxu0 }
 0x177   : > { %6022 = vmatmul.mubr.msk.f32.gmra.mxu0 %vm790_vm0, %v7638_v50  ;;  %6046 = vmatprep.subr.mxu0 %v7475_v0  ;;  %v996_v26 = vmax.f32 %v966_v8, 0.0  ;;  %v7669_v31 = vadd.f32 %v7591_v57, %v1245_v13  ;;  %v1248_v63 = vmul.f32 %v7567_v36, %v1228_v14  ;;  %v1227_v32 = vmax.f32 %v1173_v18, 0.0 }
 0x178   : > { %9588 = vst [vmem:[#allocation32_spill] sm:$0xff] %v7655_v34  ;;  %9589 = vst [vmem:[#allocation33_spill] sm:$0xff] %v7663_v23  ;;  %v1188_v33 = vadd.f32 %v5992_v20, %v7548_v17  ;;  %6047 = vmatpush3.msra.mxu0 %v7475_v0  ;;  %6071 = vmatmul.mubr.msk.f32.gmra.mxu1 %vm790_vm0, %v7623_v41  ;;  %v7677_v35 = vadd.f32 %v7591_v57, %v1246_v55  ;;  %v1182_v37 = vpop.f32.mrf.mxu1  ;;  %v999_v42 = vmax.f32 %v981_v28, 0.0 }
 0x179   : > { %v1016_v38 = vmul.f32 %v7543_v15, %v996_v26  ;;  %6048 = vmatprep.subr.mxu0 %v7482_v1  ;;  %v976_v44 = vadd.f32 %v7535_v11, %v975_v24  ;;  %6073 = vmatprep.mubr.msk.f32.mxu1 %vm790_vm0, %v7663_v23  ;;  %v984_v0 = vmax.f32 %v7580_v48, 0.0  ;;  %v1247_v45 = vmul.f32 %v7567_v36, %v1227_v32 }
 0x17a   : > { %v1230_v46 = vmax.f32 %v1188_v33, 0.0  ;;  %v1183_v49 = vadd.f32 %v7548_v17, %v1182_v37  ;;  %6024 = vmatprep.mubr.msk.f32.mxu0 %vm790_vm0, %v7669_v31  ;;  %6049 = vmatpush3.msra.mxu0 %v7482_v1  ;;  %v916_v52 = vadd.f32 %v7535_v11, %v7537_v12  ;;  %v7693_v53 = vadd.f32 %v7554_v21, %v1017_v25  ;;  %v5995_v54 = vpop.f32.mrf.mxu1 }
 0x17b   : > { %6025 = vmatmul.mubr.msk.f32.gmra.mxu0 %vm790_vm0, %v7677_v35  ;;  %v7698_v48 = vadd.f32 %v7554_v21, %v1016_v38  ;;  %v998_v55 = vmax.f32 %v976_v44, 0.0  ;;  %6050 = vmatprep.subr.mxu0 %v7489_v2  ;;  %v7702_v56 = vadd.f32 %v7591_v57, %v1248_v63  ;;  %v7705_v1 = vadd.f32 %v7591_v57, %v1247_v45 }
 0x17c   : > { %9590 = vst [vmem:[#allocation34_spill] sm:$0xff] %v7693_v53  ;;  %v1229_v12 = vmax.f32 %v1183_v49, 0.0  ;;  %v1198_v58 = vadd.f32 %v5995_v54, %v7548_v17  ;;  %6074 = vmatmul.mubr.msk.f32.gmra.mxu1 %vm790_vm0, %v7655_v34  ;;  %6051 = vmatpush3.msra.mxu0 %v7489_v2  ;;  %v1250_v59 = vmul.f32 %v7567_v36, %v1230_v46  ;;  %v1192_v8 = vpop.f32.mrf.mxu1  ;;  %v986_v26 = vmax.f32 %v916_v52, 0.0 }
 0x17d   : > { %9591 = vst [vmem:[#allocation35_spill] sm:$0xff] %v7698_v48  ;;  %v1019_v13 = vmul.f32 %v7543_v15, %v999_v42  ;;  %v1018_v14 = vmul.f32 %v7543_v15, %v998_v55  ;;  %6120 = vmatprep.subr.mxu1 %v7411_v39  ;;  %6076 = vmatprep.mubr.msk.f32.mxu1 %vm790_vm0, %v7698_v48 }
 0x17e   : > { %v921_v18 = vadd.f32 %v7530_v10, %v7535_v11  ;;  %v1249_v19 = vmul.f32 %v7567_v36, %v1229_v12  ;;  %v1232_v20 = vmax.f32 %v1198_v58, 0.0  ;;  %v1193_v2 = vadd.f32 %v7548_v17, %v1192_v8  ;;  %6027 = vmatprep.mubr.msk.f32.mxu0 %vm790_vm0, %v7705_v1  ;;  %6121 = vmatpush3.msra.mxu1 %v7411_v39  ;;  %v5998_v28 = vpop.f32.mrf.mxu1 }
 0x17f   : > { %v1005_v25 = vmul.f32 %v7543_v15, %v985_v47  ;;  %6028 = vmatmul.mubr.msk.f32.gmra.mxu0 %vm790_vm0, %v7702_v56  ;;  %v7730_v10 = vadd.f32 %v7554_v21, %v1018_v14  ;;  %6052 = vmatprep.subr.mxu0 %v7502_v4  ;;  %v1004_v11 = vmul.f32 %v7543_v15, %v984_v0 }
 0x180   : > { %v7735_v63 = vadd.f32 %v7591_v57, %v1249_v19  ;;  %v1231_v39 = vmax.f32 %v1193_v2, 0.0  ;;  %v1208_v27 = vadd.f32 %v5998_v28, %v7548_v17  ;;  %6077 = vmatmul.mubr.msk.f32.gmra.mxu1 %vm790_vm0, %v7693_v53  ;;  %6122 = vmatprep.subr.mxu1 %v7447_v60  ;;  %v7742_v47 = vadd.f32 %v7591_v57, %v1250_v59  ;;  %v1202_v24 = vpop.f32.mrf.mxu1 }
 0x181   : > { %9592 = vst [vmem:[#allocation36_spill] sm:$0xff] %v7730_v10  ;;  %v1252_v32 = vmul.f32 %v7567_v36, %v1232_v20  ;;  %v7746_v33 = vadd.f32 %v7554_v21, %v1019_v13  ;;  %6053 = vmatpush3.msra.mxu0 %v7502_v4  ;;  %6123 = vmatpush3.msra.mxu1 %v7447_v60  ;;  %v987_v37 = vmax.f32 %v921_v18, 0.0 }
 0x182   : > { %v1251_v38 = vmul.f32 %v7567_v36, %v1231_v39  ;;  %v1234_v42 = vmax.f32 %v1208_v27, 0.0  ;;  %v1203_v44 = vadd.f32 %v7548_v17, %v1202_v24  ;;  %6030 = vmatprep.mubr.msk.f32.mxu0 %vm790_vm0, %v7735_v63  ;;  %6124 = vmatprep.subr.mxu1 %v7454_v61  ;;  %v1006_v0 = vmul.f32 %v7543_v15, %v986_v26  ;;  %v6001_v45 = vpop.f32.mrf.mxu1 }
 0x183   : > { %9593 = vst [vmem:[#allocation37_spill] sm:$0xff] %v7746_v33  ;;  %6031 = vmatmul.mubr.msk.f32.gmra.mxu0 %vm790_vm0, %v7742_v47  ;;  %6079 = vmatprep.mubr.msk.f32.mxu1 %vm790_vm0, %v7730_v10  ;;  %v7761_v60 = vadd.f32 %v7554_v21, %v1004_v11  ;;  %v1218_v49 = vadd.f32 %v6001_v45, %v7548_v17 }
 0x184   : > { %v7764_v4 = vadd.f32 %v7591_v57, %v1251_v38  ;;  %v1233_v46 = vmax.f32 %v1203_v44, 0.0  ;;  %6125 = vmatpush3.msra.mxu1 %v7454_v61  ;;  %6054 = vmatprep.subr.mxu0 %v7516_v6  ;;  %v7770_v52 = vadd.f32 %v7554_v21, %v1005_v25  ;;  %v7773_v54 = vadd.f32 %v7591_v57, %v1252_v32  ;;  %v1212_v12 = vpop.f32.mrf.mxu1 }
 0x185   : > { %v1254_v55 = vmul.f32 %v7567_v36, %v1234_v42  ;;  %6080 = vmatmul.mubr.msk.f32.gmra.mxu1 %vm790_vm0, %v7746_v33  ;;  %6126 = vmatprep.subr.mxu1 %v7494_v3  ;;  %v1007_v58 = vmul.f32 %v7543_v15, %v987_v37  ;;  %v1236_v59 = vmax.f32 %v1218_v49, 0.0  ;;  %v1213_v8 = vadd.f32 %v7548_v17, %v1212_v12 }
 0x186   : > { %v1253_v61 = vmul.f32 %v7567_v36, %v1233_v46  ;;  %6033 = vmatprep.mubr.msk.f32.mxu0 %vm790_vm0, %v7764_v4  ;;  %6055 = vmatpush3.msra.mxu0 %v7516_v6  ;;  %v7786_v13 = vadd.f32 %v7554_v21, %v1006_v0 }
 0x187   : > { %6034 = vmatmul.mubr.msk.f32.gmra.mxu0 %vm790_vm0, %v7773_v54  ;;  %6127 = vmatpush3.msra.mxu1 %v7494_v3  ;;  %v1235_v14 = vmax.f32 %v1213_v8, 0.0  ;;  %v7798_v17 = vadd.f32 %v7591_v57, %v1254_v55  ;;  %v1256_v6 = vmul.f32 %v7567_v36, %v1236_v59  ;;  %v7804_v3 = vadd.f32 %v7554_v21, %v1007_v58  ;;  %v7867_v8 = vld [vmem:[%s9523_s15] ss:$0 sm:$0xff] }
 0x188   : > { %9594 = vst [vmem:[#allocation38_spill] sm:$0xff] %v7786_v13  ;;  %v7792_v15 = vadd.f32 %v7591_v57, %v1253_v61  ;;  %6128 = vmatprep.subr.mxu1 %v7508_v5  ;;  %6130 = vmatprep.mubr.msk.f32.mxu1 %vm790_vm0, %v7761_v60 }
 0x189   : > { %6129 = vmatpush3.msra.mxu1 %v7508_v5  ;;  %6056 = vmatprep.subr.mxu0 %v7525_v7  ;;  %9595 = vst [vmem:[#allocation39_spill] sm:$0xff] %v7804_v3  ;;  %v1255_v18 = vmul.f32 %v7567_v36, %v1235_v14  ;;  %v7820_v21 = vadd.f32 %v7591_v57, %v1256_v6 }
 0x18a   : > { %6036 = vmatprep.mubr.msk.f32.mxu0 %vm790_vm0, %v7792_v15  ;;  %6131 = vmatmul.mubr.msk.f32.vlgmr.msra.gmra.mxu1 %vm790_vm0, %v7770_v52 }
 0x18b   : > { %6037 = vmatmul.mubr.msk.f32.gmra.mxu0 %vm790_vm0, %v7798_v17  ;;  %6133 = vmatprep.mubr.msk.f32.mxu1 %vm790_vm0, %v7786_v13  ;;  %v7816_v5 = vadd.f32 %v7591_v57, %v1255_v18 }
 0x18c   : > { %6057 = vmatpush3.msra.mxu0 %v7525_v7 }
 0x18d   : > { %6039 = vmatprep.mubr.msk.f32.mxu0 %vm790_vm0, %v7816_v5 }
 0x18e   : > { %6134 = vmatmul.mubr.msk.f32.gmra.mxu1 %vm790_vm0, %v7804_v3 }
 0x18f   : > { %6040 = vmatmul.mubr.msk.f32.gmra.mxu0 %vm790_vm0, %v7820_v21  ;;  %6136 = vmatprep.mubr.msk.f32.mxu1 %vm790_vm0, %v7574_v43 }
 0x190   : > { %6058 = vmatprep.mubr.msk.f32.mxu0 %vm790_vm0, %v7761_v60 }
 0x192   : > { %6137 = vmatmul.mubr.msk.f32.gmra.mxu1 %vm790_vm0, %v7571_v40 }
 0x193   : > { %6059 = vmatmul.mubr.msk.f32.vlgmr.msra.gmra.mxu0 %vm790_vm0, %v7770_v52  ;;  %6139 = vmatprep.mubr.msk.f32.mxu1 %vm790_vm0, %v7601_v16 }
 0x194   : > { %6061 = vmatprep.mubr.msk.f32.mxu0 %vm790_vm0, %v7786_v13 }
 0x196   : > { %6140 = vmatmul.mubr.msk.f32.gmra.mxu1 %vm790_vm0, %v7596_v9 }
 0x197   : > { %6062 = vmatmul.mubr.msk.f32.gmra.mxu0 %vm790_vm0, %v7804_v3  ;;  %6142 = vmatprep.mubr.msk.f32.mxu1 %vm790_vm0, %v7632_v29 }
 0x19a   : > { %6143 = vmatmul.mubr.msk.f32.gmra.mxu1 %vm790_vm0, %v7623_v41 }
 0x19b   : > { %6145 = vmatprep.mubr.msk.f32.mxu1 %vm790_vm0, %v7663_v23 }
 0x19e   : > { %6146 = vmatmul.mubr.msk.f32.gmra.mxu1 %vm790_vm0, %v7655_v34 }
 0x19f   : > { %6148 = vmatprep.mubr.msk.f32.mxu1 %vm790_vm0, %v7698_v48 }
 0x1a2   : > { %6149 = vmatmul.mubr.msk.f32.gmra.mxu1 %vm790_vm0, %v7693_v53 }
 0x1a3   : > { %6151 = vmatprep.mubr.msk.f32.mxu1 %vm790_vm0, %v7730_v10 }
 0x1a6   : > { %6152 = vmatmul.mubr.msk.f32.gmra.mxu1 %vm790_vm0, %v7746_v33 }
 0x22c   : > { %v6066_v26 = vpop.f32.mrf.mxu1 }
 0x22e   : > { %v1620_v39 = vpop.f32.mrf.mxu1 }
 0x231   : > { %v6069_v24 = vpop.f32.mrf.mxu1 }
 0x232   : > { %v6020_v7 = vpop.f32.mrf.mxu0 }
 0x233   : > { %v1630_v42 = vpop.f32.mrf.mxu1 }
 0x234   : > { %v1407_v36 = vpop.f32.mrf.mxu0 }
 0x237   : > { %v6023_v57 = vpop.f32.mrf.mxu0 }
 0x238   : > { %v6072_v45 = vpop.f32.mrf.mxu1 }
 0x239   : > { %v1417_v19 = vpop.f32.mrf.mxu0 }
 0x23a   : > { %v1640_v55 = vpop.f32.mrf.mxu1 }
 0x23b   : > { %v6026_v20 = vpop.f32.mrf.mxu0 }
 0x23c   : > { %v6075_v18 = vpop.f32.mrf.mxu1 }
 0x23d   : > { %v1427_v2 = vpop.f32.mrf.mxu0 }
 0x23e   : > { %v1621_v6 = vadd.f32 %v1620_v39, %v1427_v2 }
 0x23f   : > { %v6029_v25 = vpop.f32.mrf.mxu0 }
 0x241   : > { %v1437_v28 = vpop.f32.mrf.mxu0 }
 0x242   : > { %v1631_v2 = vadd.f32 %v1630_v42, %v1437_v28 }
 0x243   : > { %v6032_v11 = vpop.f32.mrf.mxu0 }
 0x244   : > { %v7898_v42 = vadd.f32 %v7867_v8, %v1631_v2 }
 0x245   : > { %v1447_v27 = vpop.f32.mrf.mxu0 }
 0x247   : > { %v6035_v32 = vpop.f32.mrf.mxu0 }
 0x249   : > { %v1457_v37 = vpop.f32.mrf.mxu0 }
 0x24b   : > { %v7860_v38 = vpop.f32.mrf.mxu0 }
 0x24d   : > { %v1467_v44 = vpop.f32.mrf.mxu0 }
 0x24f   : > { %v7862_v0 = vpop.f32.mrf.mxu0 }
 0x251   : > { %v1477_v46 = vpop.f32.mrf.mxu0 }
 0x253   : > { %v6060_v49 = vpop.f32.mrf.mxu0 }
 0x254   : > { %v1606_v58 = vadd.f32 %v6060_v49, %v6020_v7  ;;  %v1626_v49 = vadd.f32 %v6066_v26, %v6026_v20  ;;  %v1641_v26 = vadd.f32 %v1640_v55, %v1447_v27  ;;  %v1720_v27 = vsel %vm1701_vm1, %v7898_v42, -inf }
 0x255   : > { %v1600_v12 = vpop.f32.mrf.mxu0 }
 0x256   : > { %v1601_v61 = vadd.f32 %v1600_v12, %v1407_v36  ;;  %v7875_v7 = vadd.f32 %v7867_v8, %v1606_v58  ;;  %v1650_v12 = vpop.f32.mrf.mxu1  ;;  %v7891_v20 = vadd.f32 %v7867_v8, %v1626_v49 }
 0x257   : > { %v6063_v59 = vpop.f32.mrf.mxu0 }
 0x258   : > { %v7870_v14 = vadd.f32 %v7867_v8, %v1601_v61  ;;  %v1616_v10 = vadd.f32 %v6063_v59, %v6023_v57  ;;  %v7881_v61 = vadd.f32 %v7867_v8, %v1621_v6  ;;  %v7908_v59 = vadd.f32 %v7867_v8, %v1641_v26 }
 0x259   : > { %v1610_v33 = vpop.f32.mrf.mxu0  ;;  %v1656_v6 = vadd.f32 %v6075_v18, %v6035_v32 }
 0x25a   : > { %v1611_v53 = vadd.f32 %v1610_v33, %v1417_v19  ;;  %v1702_v48 = vsel %vm1701_vm1, %v7870_v14, -inf  ;;  %v1705_v33 = vsel %vm1701_vm1, %v7875_v7, -inf  ;;  %v7888_v19 = vadd.f32 %v7867_v8, %v1616_v10 }
 0x25b   : > { %1703 = vmax.xlane.f32.xlu0 %v1702_v48  ;;  %v1636_v48 = vadd.f32 %v6069_v24, %v6029_v25  ;;  %v1714_v39 = vsel %vm1701_vm1, %v7881_v61, -inf  ;;  %v1646_v10 = vadd.f32 %v6072_v45, %v6032_v11  ;;  %v1717_v25 = vsel %vm1701_vm1, %v7891_v20, -inf }
 0x25c   : > { %v7878_v36 = vadd.f32 %v7867_v8, %v1611_v53  ;;  %v6078_v53 = vpop.f32.mrf.mxu1  ;;  %v1711_v28 = vsel %vm1701_vm1, %v7888_v19, -inf  ;;  %v1651_v24 = vadd.f32 %v1650_v12, %v1457_v37  ;;  %v1726_v12 = vsel %vm1701_vm1, %v7908_v59, -inf }
 0x25d   : > { %v7905_v55 = vadd.f32 %v7867_v8, %v1636_v48  ;;  %v7911_v11 = vadd.f32 %v7867_v8, %v1646_v10  ;;  %v7923_v18 = vadd.f32 %v7867_v8, %v1656_v6 }
 0x25e   : > { %v1708_v57 = vsel %vm1701_vm1, %v7878_v36, -inf  ;;  %v1660_v58 = vpop.f32.mrf.mxu1  ;;  %v7918_v2 = vadd.f32 %v7867_v8, %v1651_v24 }
 0x25f   : > { %1709 = vmax.xlane.f32.xlu1 %v1708_v57  ;;  %1706 = vmax.xlane.f32.xlu0 %v1705_v33  ;;  %v1661_v45 = vadd.f32 %v1660_v58, %v1467_v44  ;;  %v1723_v37 = vsel %vm1701_vm1, %v7905_v55, -inf  ;;  %v1729_v32 = vsel %vm1701_vm1, %v7911_v11, -inf  ;;  %v1666_v44 = vadd.f32 %v6078_v53, %v7860_v38 }
 0x260   : > { %v6081_v49 = vpop.f32.mrf.mxu1  ;;  %v1732_v48 = vsel %vm1701_vm1, %v7918_v2, -inf }
 0x261   : > { %v7929_v26 = vadd.f32 %v7867_v8, %v1661_v45  ;;  %v7937_v58 = vadd.f32 %v7867_v8, %v1666_v44 }
 0x262   : > { %v1670_v57 = vpop.f32.mrf.mxu1 }
 0x263   : > { %1712 = vmax.xlane.f32.xlu1 %v1711_v28  ;;  %1715 = vmax.xlane.f32.xlu0 %v1714_v39  ;;  %v1671_v33 = vadd.f32 %v1670_v57, %v1477_v46  ;;  %v1735_v28 = vsel %vm1701_vm1, %v7923_v18, -inf  ;;  %v1676_v39 = vadd.f32 %v6081_v49, %v7862_v0  ;;  %v1738_v10 = vsel %vm1701_vm1, %v7929_v26, -inf }
 0x264   : > { %v1741_v46 = vsel %vm1701_vm1, %v7937_v58, -inf }
 0x265   : > { %v7940_v38 = vadd.f32 %v7867_v8, %v1671_v33 }
 0x267   : > { %1718 = vmax.xlane.f32.xlu1 %v1717_v25  ;;  %1721 = vmax.xlane.f32.xlu0 %v1720_v27  ;;  %v1744_v53 = vsel %vm1701_vm1, %v7940_v38, -inf  ;;  %v7947_v25 = vadd.f32 %v7867_v8, %v1676_v39 }
 0x269   : > { %v1747_v0 = vsel %vm1701_vm1, %v7947_v25, -inf }
 0x26b   : > { %1724 = vmax.xlane.f32.xlu1 %v1723_v37  ;;  %1727 = vmax.xlane.f32.xlu0 %v1726_v12 }
 0x26f   : > { %1730 = vmax.xlane.f32.xlu1 %v1729_v32  ;;  %1733 = vmax.xlane.f32.xlu0 %v1732_v48 }
 0x273   : > { %1736 = vmax.xlane.f32.xlu1 %v1735_v28  ;;  %1739 = vmax.xlane.f32.xlu0 %v1738_v10 }
 0x277   : > { %1742 = vmax.xlane.f32.xlu1 %v1741_v46  ;;  %1745 = vmax.xlane.f32.xlu0 %v1744_v53 }
 0x27b   : > { %1748 = vmax.xlane.f32.xlu1 %v1747_v0 }
 0x2e4   : > { %v1704_v24 = vpop.xlane.xlu0 %1703 }
 0x2e5   : > { %v1750_v27 = vsub.f32 %v7870_v14, %v1704_v24 }
 0x2e7   : > { %v1766_v6 = vmul.f32 1.442695, %v1750_v27 }
 0x2e8   : > { %v1710_v49 = vpop.xlane.xlu1 %1709  ;;  %v1707_v45 = vpop.xlane.xlu0 %1706 }
 0x2e9   : > { %6519 = vpow2.f32 %v1766_v6  ;;  %v1752_v37 = vsub.f32 %v7878_v36, %v1710_v49  ;;  %v1751_v12 = vsub.f32 %v7875_v7, %v1707_v45 }
 0x2eb   : > { %v1770_v57 = vmul.f32 1.442695, %v1752_v37  ;;  %v1768_v32 = vmul.f32 1.442695, %v1751_v12 }
 0x2ec   : > { %v1713_v44 = vpop.xlane.xlu1 %1712  ;;  %v1716_v33 = vpop.xlane.xlu0 %1715 }
 0x2ed   : > { %6521 = vpow2.f32 %v1770_v57  ;;  %v1753_v48 = vsub.f32 %v7888_v19, %v1713_v44  ;;  %v1754_v28 = vsub.f32 %v7881_v61, %v1716_v33 }
 0x2ee   : > { %6523 = vpow2.f32 %v1768_v32 }
 0x2ef   : > { %v1772_v39 = vmul.f32 1.442695, %v1753_v48  ;;  %v1774_v14 = vmul.f32 1.442695, %v1754_v28 }
 0x2f0   : > { %v1719_v10 = vpop.xlane.xlu1 %1718  ;;  %v1722_v46 = vpop.xlane.xlu0 %1721 }
 0x2f1   : > { %6525 = vpow2.f32 %v1772_v39  ;;  %v1755_v53 = vsub.f32 %v7891_v20, %v1719_v10  ;;  %v1756_v36 = vsub.f32 %v7898_v42, %v1722_v46 }
 0x2f2   : > { %6527 = vpow2.f32 %v1774_v14 }
 0x2f3   : > { %v1776_v7 = vmul.f32 1.442695, %v1755_v53  ;;  %v1778_v0 = vmul.f32 1.442695, %v1756_v36 }
 0x2f4   : > { %v1725_v24 = vpop.xlane.xlu1 %1724  ;;  %v1728_v27 = vpop.xlane.xlu0 %1727 }
 0x2f5   : > { %6529 = vpow2.f32 %v1776_v7  ;;  %v1757_v19 = vsub.f32 %v7905_v55, %v1725_v24  ;;  %v1758_v61 = vsub.f32 %v7908_v59, %v1728_v27 }
 0x2f6   : > { %v7960_v6 = vpop.eup %6519  ;;  %6531 = vpow2.f32 %v1778_v0 }
 0x2f7   : > { %v1780_v49 = vmul.f32 1.442695, %v1757_v19  ;;  %v1782_v45 = vmul.f32 1.442695, %v1758_v61  ;;  %v1798_v20 = vsel %vm1701_vm1, %v7960_v6, 0.0 }
 0x2f8   : > { %v1731_v37 = vpop.xlane.xlu1 %1730  ;;  %1799 = vadd.xlane.f32.xlu0 %v1798_v20  ;;  %v1734_v42 = vpop.xlane.xlu0 %1733 }
 0x2f9   : > { %6533 = vpow2.f32 %v1780_v49  ;;  %v1759_v12 = vsub.f32 %v7911_v11, %v1731_v37  ;;  %v1760_v57 = vsub.f32 %v7918_v2, %v1734_v42 }
 0x2fa   : > { %v7966_v32 = vpop.eup %6521  ;;  %6535 = vpow2.f32 %v1782_v45 }
 0x2fb   : > { %v7968_v55 = vpop.eup %6523  ;;  %v1784_v59 = vmul.f32 1.442695, %v1759_v12  ;;  %v1786_v44 = vmul.f32 1.442695, %v1760_v57  ;;  %v1804_v33 = vsel %vm1701_vm1, %v7966_v32, 0.0 }
 0x2fc   : > { %v1737_v48 = vpop.xlane.xlu1 %1736  ;;  %1805 = vadd.xlane.f32.xlu0 %v1804_v33  ;;  %v1801_v28 = vsel %vm1701_vm1, %v7968_v55, 0.0  ;;  %v1740_v39 = vpop.xlane.xlu0 %1739 }
 0x2fd   : > { %6537 = vpow2.f32 %v1784_v59  ;;  %v1761_v11 = vsub.f32 %v7923_v18, %v1737_v48  ;;  %1802 = vadd.xlane.f32.xlu1 %v1801_v28  ;;  %v1762_v2 = vsub.f32 %v7929_v26, %v1740_v39 }
 0x2fe   : > { %v7976_v14 = vpop.eup %6525  ;;  %6539 = vpow2.f32 %v1786_v44 }
 0x2ff   : > { %v7978_v10 = vpop.eup %6527  ;;  %v1788_v46 = vmul.f32 1.442695, %v1761_v11  ;;  %v1790_v53 = vmul.f32 1.442695, %v1762_v2  ;;  %v1807_v36 = vsel %vm1701_vm1, %v7976_v14, 0.0  ;;  %v1881_v2 = vld [vmem:[#allocation5 + $0x18] sm:$0xff] }
 0x300   : > { %v1743_v7 = vpop.xlane.xlu1 %1742  ;;  %v1810_v0 = vsel %vm1701_vm1, %v7978_v10, 0.0  ;;  %v1746_v24 = vpop.xlane.xlu0 %1745  ;;  %6082 = vmatprep.subr.mxu0 %v1881_v2  ;;  %6194 = vmatprep.subr.mxu1 %v1881_v2 }
 0x301   : > { %6541 = vpow2.f32 %v1788_v46  ;;  %v1763_v18 = vsub.f32 %v7937_v58, %v1743_v7  ;;  %1808 = vadd.xlane.f32.xlu1 %v1807_v36  ;;  %1811 = vadd.xlane.f32.xlu0 %v1810_v0  ;;  %v1764_v26 = vsub.f32 %v7940_v38, %v1746_v24  ;;  %v1879_v24 = vld [vmem:[#allocation5 + $0x8] sm:$0xff] }
 0x302   : > { %v7986_v27 = vpop.eup %6529  ;;  %6543 = vpow2.f32 %v1790_v53  ;;  %v1880_v53 = vld [vmem:[#allocation5 + $0x10] sm:$0xff]  ;;  %6083 = vmatpush3.msra.mxu0 %v1881_v2  ;;  %6195 = vmatpush3.msra.mxu1 %v1881_v2 }
 0x303   : > { %v7988_v19 = vpop.eup %6531  ;;  %v1792_v61 = vmul.f32 1.442695, %v1763_v18  ;;  %v1794_v49 = vmul.f32 1.442695, %v1764_v26  ;;  %v1813_v45 = vsel %vm1701_vm1, %v7986_v27, 0.0  ;;  %6084 = vmatprep.subr.mxu0 %v1880_v53  ;;  %6196 = vmatprep.subr.mxu1 %v1880_v53  ;;  %v1878_v26 = vld [vmem:[#allocation5] sm:$0xff] }
 0x304   : > { %v1749_v20 = vpop.xlane.xlu1 %1748  ;;  %v1816_v37 = vsel %vm1701_vm1, %v7988_v19, 0.0  ;;  %6085 = vmatpush3.msra.mxu0 %v1880_v53  ;;  %6197 = vmatpush3.msra.mxu1 %v1880_v53 }
 0x305   : > { %6545 = vpow2.f32 %v1792_v61  ;;  %v1765_v58 = vsub.f32 %v7947_v25, %v1749_v20  ;;  %1814 = vadd.xlane.f32.xlu1 %v1813_v45  ;;  %1817 = vadd.xlane.f32.xlu0 %v1816_v37 }
 0x306   : > { %v7995_v38 = vpop.eup %6533  ;;  %6547 = vpow2.f32 %v1794_v49  ;;  %6086 = vmatprep.subr.mxu0 %v1879_v24  ;;  %6198 = vmatprep.subr.mxu1 %v1879_v24 }
 0x307   : > { %v7997_v42 = vpop.eup %6535  ;;  %v1796_v12 = vmul.f32 1.442695, %v1765_v58  ;;  %v1819_v57 = vsel %vm1701_vm1, %v7995_v38, 0.0  ;;  %6087 = vmatpush3.msra.mxu0 %v1879_v24  ;;  %6199 = vmatpush3.msra.mxu1 %v1879_v24 }
 0x308   : > { %v1822_v59 = vsel %vm1701_vm1, %v7997_v42, 0.0  ;;  %6088 = vmatprep.subr.mxu0 %v1878_v26  ;;  %6200 = vmatprep.subr.mxu1 %v1878_v26 }
 0x309   : > { %6549 = vpow2.f32 %v1796_v12  ;;  %1820 = vadd.xlane.f32.xlu1 %v1819_v57  ;;  %1823 = vadd.xlane.f32.xlu0 %v1822_v59 }
 0x30a   : > { %v8003_v44 = vpop.eup %6537  ;;  %6089 = vmatpush3.msra.mxu0 %v1878_v26  ;;  %6201 = vmatpush3.msra.mxu1 %v1878_v26 }
 0x30b   : > { %v8005_v25 = vpop.eup %6539  ;;  %v1825_v33 = vsel %vm1701_vm1, %v8003_v44, 0.0  ;;  %6154 = vmatprep.subr.mxu0 %v7459_v62 }
 0x30c   : > { %v1828_v48 = vsel %vm1701_vm1, %v8005_v25, 0.0 }
 0x30d   : > { %1826 = vadd.xlane.f32.xlu1 %v1825_v33  ;;  %1829 = vadd.xlane.f32.xlu0 %v1828_v48 }
 0x30e   : > { %v8011_v28 = vpop.eup %6541 }
 0x30f   : > { %v8013_v39 = vpop.eup %6543  ;;  %v1831_v11 = vsel %vm1701_vm1, %v8011_v28, 0.0 }
 0x310   : > { %v1834_v46 = vsel %vm1701_vm1, %v8013_v39, 0.0 }
 0x311   : > { %1832 = vadd.xlane.f32.xlu1 %v1831_v11  ;;  %1835 = vadd.xlane.f32.xlu0 %v1834_v46 }
 0x312   : > { %v8019_v36 = vpop.eup %6545 }
 0x313   : > { %v8021_v7 = vpop.eup %6547  ;;  %v1837_v0 = vsel %vm1701_vm1, %v8019_v36, 0.0 }
 0x314   : > { %v1840_v18 = vsel %vm1701_vm1, %v8021_v7, 0.0 }
 0x315   : > { %1838 = vadd.xlane.f32.xlu1 %v1837_v0  ;;  %1841 = vadd.xlane.f32.xlu0 %v1840_v18 }
 0x316   : > { %v8027_v61 = vpop.eup %6549 }
 0x317   : > { %v1843_v49 = vsel %vm1701_vm1, %v8027_v61, 0.0 }
 0x319   : > { %1844 = vadd.xlane.f32.xlu1 %v1843_v49 }
 0x381   : > { %v1800_v45 = vpop.xlane.xlu0 %1799 }
 0x382   : > { %6551 = vrcp.f32 %v1800_v45 }
 0x385   : > { %v1806_v20 = vpop.xlane.xlu0 %1805 }
 0x386   : > { %v1803_v37 = vpop.xlane.xlu1 %1802  ;;  %6553 = vrcp.f32 %v1806_v20 }
 0x387   : > { %6555 = vrcp.f32 %v1803_v37 }
 0x38a   : > { %v1809_v58 = vpop.xlane.xlu1 %1808  ;;  %v1812_v12 = vpop.xlane.xlu0 %1811 }
 0x38b   : > { %6557 = vrcp.f32 %v1809_v58  ;;  %v6777_v58 = vld [vmem:[%s9513_s5 + $0x28] sm:$0xff] }
 0x38c   : > { %6559 = vrcp.f32 %v1812_v12 }
 0x38e   : > { %v1815_v57 = vpop.xlane.xlu1 %1814  ;;  %v1818_v59 = vpop.xlane.xlu0 %1817 }
 0x38f   : > { %v6552_v33 = vpop.eup %6551  ;;  %6561 = vrcp.f32 %v1815_v57 }
 0x390   : > { %6563 = vrcp.f32 %v1818_v59  ;;  %v1862_v48 = vmul.f32 %v6552_v33, %v7960_v6  ;;  %v6775_v6 = vld [vmem:[%s9513_s5 + $0x38] sm:$0xff] }
 0x392   : > { %v1821_v11 = vpop.xlane.xlu1 %1820  ;;  %v1824_v62 = vpop.xlane.xlu0 %1823  ;;  %6090 = vmatprep.mubr.msk.f32.mxu0 %vm1701_vm1, %v1862_v48 }
 0x393   : > { %v6554_v2 = vpop.eup %6553  ;;  %6565 = vrcp.f32 %v1821_v11  ;;  %v6779_v11 = vld [vmem:[%s9513_s5 + $0x18] sm:$0xff] }
 0x394   : > { %v6556_v46 = vpop.eup %6555  ;;  %6567 = vrcp.f32 %v1824_v62  ;;  %v1864_v53 = vmul.f32 %v6554_v2, %v7966_v32  ;;  %v6776_v32 = vld [vmem:[%s9513_s5 + $0x30] sm:$0xff] }
 0x395   : > { %v1863_v0 = vmul.f32 %v6556_v46, %v7968_v55 }
 0x396   : > { %v1827_v24 = vpop.xlane.xlu1 %1826  ;;  %v1830_v18 = vpop.xlane.xlu0 %1829 }
 0x397   : > { %6569 = vrcp.f32 %v1827_v24  ;;  %6091 = vmatmul.mubr.msk.f32.vlgmr.msra.gmra.mxu0 %vm1701_vm1, %v1863_v0  ;;  %v6781_v0 = vld [vmem:[%s9513_s5 + $0x8] sm:$0xff] }
 0x398   : > { %v6558_v26 = vpop.eup %6557  ;;  %6571 = vrcp.f32 %v1830_v18  ;;  %6155 = vmatpush3.msra.mxu0 %v6775_v6  ;;  %6093 = vmatprep.mubr.msk.f32.mxu0 %vm1701_vm1, %v1864_v53 }
 0x399   : > { %v6560_v49 = vpop.eup %6559  ;;  %6156 = vmatprep.subr.mxu0 %v6776_v32  ;;  %v1865_v55 = vmul.f32 %v6558_v26, %v7976_v14 }
 0x39a   : > { %v1833_v45 = vpop.xlane.xlu1 %1832  ;;  %v1836_v20 = vpop.xlane.xlu0 %1835  ;;  %6157 = vmatpush3.msra.mxu0 %v6776_v32  ;;  %v1866_v37 = vmul.f32 %v6560_v49, %v7978_v10  ;;  %v6778_v10 = vld [vmem:[%s9513_s5 + $0x20] sm:$0xff] }
 0x39b   : > { %6573 = vrcp.f32 %v1833_v45  ;;  %6094 = vmatmul.mubr.msk.f32.gmra.mxu0 %vm1701_vm1, %v1865_v55  ;;  %6158 = vmatprep.subr.mxu0 %v6777_v58 }
 0x39c   : > { %v6562_v12 = vpop.eup %6561  ;;  %6575 = vrcp.f32 %v1836_v20  ;;  %6096 = vmatprep.mubr.msk.f32.mxu0 %vm1701_vm1, %v1866_v37  ;;  %6159 = vmatpush3.msra.mxu0 %v6777_v58 }
 0x39d   : > { %v6564_v57 = vpop.eup %6563  ;;  %v1867_v14 = vmul.f32 %v6562_v12, %v7986_v27  ;;  %6160 = vmatprep.subr.mxu0 %v6778_v10 }
 0x39e   : > { %v1839_v59 = vpop.xlane.xlu1 %1838  ;;  %v1842_v33 = vpop.xlane.xlu0 %1841  ;;  %v1868_v48 = vmul.f32 %v6564_v57, %v7988_v19  ;;  %6161 = vmatpush3.msra.mxu0 %v6778_v10  ;;  %v6780_v19 = vld [vmem:[%s9513_s5 + $0x10] sm:$0xff] }
 0x39f   : > { %6577 = vrcp.f32 %v1839_v59  ;;  %6097 = vmatmul.mubr.msk.f32.gmra.mxu0 %vm1701_vm1, %v1867_v14  ;;  %6162 = vmatprep.subr.mxu0 %v6779_v11 }
 0x3a0   : > { %v6566_v62 = vpop.eup %6565  ;;  %6579 = vrcp.f32 %v1842_v33  ;;  %6099 = vmatprep.mubr.msk.f32.mxu0 %vm1701_vm1, %v1868_v48  ;;  %6163 = vmatpush3.msra.mxu0 %v6779_v11 }
 0x3a1   : > { %v6568_v27 = vpop.eup %6567  ;;  %v1869_v2 = vmul.f32 %v6566_v62, %v7995_v38  ;;  %6164 = vmatprep.subr.mxu0 %v6780_v19 }
 0x3a2   : > { %v1845_v46 = vpop.xlane.xlu1 %1844  ;;  %v1870_v53 = vmul.f32 %v6568_v27, %v7997_v42  ;;  %6165 = vmatpush3.msra.mxu0 %v6780_v19  ;;  %v6782_v42 = vld [vmem:[%s9513_s5] sm:$0xff] }
 0x3a3   : > { %6581 = vrcp.f32 %v1845_v46  ;;  %6100 = vmatmul.mubr.msk.f32.gmra.mxu0 %vm1701_vm1, %v1869_v2  ;;  %6166 = vmatprep.subr.mxu0 %v6781_v0 }
 0x3a4   : > { %v6570_v24 = vpop.eup %6569  ;;  %6102 = vmatprep.mubr.msk.f32.mxu0 %vm1701_vm1, %v1870_v53  ;;  %6167 = vmatpush3.msra.mxu0 %v6781_v0 }
 0x3a5   : > { %v6572_v38 = vpop.eup %6571  ;;  %v1871_v18 = vmul.f32 %v6570_v24, %v8003_v44  ;;  %6168 = vmatprep.subr.mxu0 %v6782_v42 }
 0x3a6   : > { %v1872_v26 = vmul.f32 %v6572_v38, %v8005_v25  ;;  %6169 = vmatpush3.msra.mxu0 %v6782_v42 }
 0x3a7   : > { %6103 = vmatmul.mubr.msk.f32.gmra.mxu0 %vm1701_vm1, %v1871_v18 }
 0x3a8   : > { %v6574_v6 = vpop.eup %6573  ;;  %6105 = vmatprep.mubr.msk.f32.mxu0 %vm1701_vm1, %v1872_v26 }
 0x3a9   : > { %v6576_v49 = vpop.eup %6575  ;;  %v1873_v32 = vmul.f32 %v6574_v6, %v8011_v28 }
 0x3aa   : > { %v1874_v55 = vmul.f32 %v6576_v49, %v8013_v39 }
 0x3ab   : > { %6106 = vmatmul.mubr.msk.f32.gmra.mxu0 %vm1701_vm1, %v1873_v32 }
 0x3ac   : > { %v6578_v44 = vpop.eup %6577  ;;  %6108 = vmatprep.mubr.msk.f32.mxu0 %vm1701_vm1, %v1874_v55 }
 0x3ad   : > { %v6580_v45 = vpop.eup %6579  ;;  %v1875_v20 = vmul.f32 %v6578_v44, %v8019_v36  ;;  %v6132_v36 = vpop.f32.mrf.mxu1 }
 0x3ae   : > { %v1876_v25 = vmul.f32 %v6580_v45, %v8021_v7 }
 0x3af   : > { %6109 = vmatmul.mubr.msk.f32.gmra.mxu0 %vm1701_vm1, %v1875_v20  ;;  %v2337_v12 = vpop.f32.mrf.mxu1 }
 0x3b0   : > { %v6582_v37 = vpop.eup %6581  ;;  %6111 = vmatprep.mubr.msk.f32.mxu0 %vm1701_vm1, %v1876_v25 }
 0x3b1   : > { %v1877_v58 = vmul.f32 %v6582_v37, %v8027_v61  ;;  %v6135_v10 = vpop.f32.mrf.mxu1 }
 0x3b3   : > { %6112 = vmatmul.mubr.msk.f32.gmra.mxu0 %vm1701_vm1, %v1877_v58  ;;  %v2347_v48 = vpop.f32.mrf.mxu1 }
 0x3b4   : > { %6170 = vmatprep.mubr.msk.f32.mxu0 %vm790_vm0, %v7607_v22 }
 0x3b5   : > { %v6138_v62 = vpop.f32.mrf.mxu1 }
 0x3b7   : > { %6171 = vmatmul.mubr.msk.f32.vlgmr.msra.gmra.mxu0 %vm790_vm0, %v7613_v30  ;;  %v2357_v19 = vpop.f32.mrf.mxu1 }
 0x3b8   : > { %6173 = vmatprep.mubr.msk.f32.mxu0 %vm790_vm0, %v7641_v51 }
 0x3b9   : > { %v6141_v0 = vpop.f32.mrf.mxu1 }
 0x3bb   : > { %6174 = vmatmul.mubr.msk.f32.gmra.mxu0 %vm790_vm0, %v7638_v50  ;;  %v2367_v18 = vpop.f32.mrf.mxu1 }
 0x3bc   : > { %6176 = vmatprep.mubr.msk.f32.mxu0 %vm790_vm0, %v7669_v31 }
 0x3bd   : > { %v6144_v49 = vpop.f32.mrf.mxu1 }
 0x3bf   : > { %6177 = vmatmul.mubr.msk.f32.gmra.mxu0 %vm790_vm0, %v7677_v35  ;;  %v2377_v58 = vpop.f32.mrf.mxu1 }
 0x3c0   : > { %6179 = vmatprep.mubr.msk.f32.mxu0 %vm790_vm0, %v7705_v1 }
 0x3c3   : > { %6180 = vmatmul.mubr.msk.f32.gmra.mxu0 %vm790_vm0, %v7702_v56 }
 0x3c4   : > { %6182 = vmatprep.mubr.msk.f32.mxu0 %vm790_vm0, %v7735_v63 }
 0x3c7   : > { %6183 = vmatmul.mubr.msk.f32.gmra.mxu0 %vm790_vm0, %v7742_v47 }
 0x3c8   : > { %6185 = vmatprep.mubr.msk.f32.mxu0 %vm790_vm0, %v7764_v4 }
 0x3cb   : > { %6186 = vmatmul.mubr.msk.f32.gmra.mxu0 %vm790_vm0, %v7773_v54 }
 0x3cc   : > { %6188 = vmatprep.mubr.msk.f32.mxu0 %vm790_vm0, %v7792_v15 }
 0x3cf   : > { %6189 = vmatmul.mubr.msk.f32.gmra.mxu0 %vm790_vm0, %v7798_v17 }
 0x3d0   : > { %6191 = vmatprep.mubr.msk.f32.mxu0 %vm790_vm0, %v7816_v5 }
 0x3d3   : > { %6192 = vmatmul.mubr.msk.f32.gmra.mxu0 %vm790_vm0, %v7820_v21 }
 0x457   : > { %v8120_v28 = vpop.f32.mrf.mxu0 }
 0x459   : > { %v8122_v39 = vpop.f32.mrf.mxu0 }
 0x45b   : > { %v8124_v7 = vpop.f32.mrf.mxu0 }
 0x45d   : > { %v8126_v61 = vpop.f32.mrf.mxu0 }
 0x45f   : > { %v8128_v57 = vpop.f32.mrf.mxu0 }
 0x461   : > { %v8130_v14 = vpop.f32.mrf.mxu0 }
 0x463   : > { %v8132_v59 = vpop.f32.mrf.mxu0 }
 0x465   : > { %v8134_v33 = vpop.f32.mrf.mxu0 }
 0x467   : > { %v8136_v11 = vpop.f32.mrf.mxu0 }
 0x469   : > { %v8138_v27 = vpop.f32.mrf.mxu0 }
 0x46b   : > { %v8140_v2 = vpop.f32.mrf.mxu0 }
 0x46d   : > { %v8142_v46 = vpop.f32.mrf.mxu0 }
 0x46f   : > { %v8144_v53 = vpop.f32.mrf.mxu0 }
 0x471   : > { %v8146_v24 = vpop.f32.mrf.mxu0 }
 0x473   : > { %v8148_v38 = vpop.f32.mrf.mxu0 }
 0x475   : > { %v8150_v42 = vpop.f32.mrf.mxu0 }
 0x477   : > { %v6172_v26 = vpop.f32.mrf.mxu0 }
 0x478   : > { %v2488_v6 = vadd.f32 %v6172_v26, %v6132_v36 }
 0x479   : > { %v2482_v32 = vpop.f32.mrf.mxu0 }
 0x47a   : > { %v2483_v55 = vadd.f32 %v2482_v32, %v2337_v12  ;;  %v8153_v44 = vadd.f32 %v7867_v8, %v2488_v6 }
 0x47b   : > { %v6175_v45 = vpop.f32.mrf.mxu0 }
 0x47c   : > { %v2498_v20 = vadd.f32 %v6175_v45, %v6135_v10  ;;  %v2580_v25 = vsel %vm1701_vm1, %v8153_v44, -inf  ;;  %v8158_v37 = vadd.f32 %v7867_v8, %v2483_v55  ;;  %v6147_v55 = vpop.f32.mrf.mxu1 }
 0x47d   : > { %2581 = vmax.xlane.f32.xlu1 %v2580_v25  ;;  %v2492_v34 = vpop.f32.mrf.mxu0 }
 0x47e   : > { %v2493_v23 = vadd.f32 %v2492_v34, %v2347_v48  ;;  %v2577_v36 = vsel %vm1701_vm1, %v8158_v37, -inf  ;;  %v8163_v12 = vadd.f32 %v7867_v8, %v2498_v20 }
 0x47f   : > { %v6178_v26 = vpop.f32.mrf.mxu0  ;;  %2578 = vmax.xlane.f32.xlu0 %v2577_v36 }
 0x480   : > { %v2508_v6 = vadd.f32 %v6178_v26, %v6138_v62  ;;  %v2586_v10 = vsel %vm1701_vm1, %v8163_v12, -inf  ;;  %v8168_v32 = vadd.f32 %v7867_v8, %v2493_v23  ;;  %v2387_v23 = vpop.f32.mrf.mxu1 }
 0x481   : > { %2587 = vmax.xlane.f32.xlu1 %v2586_v10  ;;  %v2502_v45 = vpop.f32.mrf.mxu0 }
 0x482   : > { %v2503_v25 = vadd.f32 %v2502_v45, %v2357_v19  ;;  %v2583_v34 = vsel %vm1701_vm1, %v8168_v32, -inf  ;;  %v8173_v48 = vadd.f32 %v7867_v8, %v2508_v6 }
 0x483   : > { %v6181_v20 = vpop.f32.mrf.mxu0  ;;  %2584 = vmax.xlane.f32.xlu0 %v2583_v34 }
 0x484   : > { %v2518_v36 = vadd.f32 %v6181_v20, %v6141_v0  ;;  %v2592_v62 = vsel %vm1701_vm1, %v8173_v48, -inf  ;;  %v8178_v26 = vadd.f32 %v7867_v8, %v2503_v25  ;;  %v6150_v25 = vpop.f32.mrf.mxu1 }
 0x485   : > { %2593 = vmax.xlane.f32.xlu1 %v2592_v62  ;;  %v2512_v10 = vpop.f32.mrf.mxu0 }
 0x486   : > { %v2513_v41 = vadd.f32 %v2512_v10, %v2367_v18  ;;  %v2589_v19 = vsel %vm1701_vm1, %v8178_v26, -inf  ;;  %v8183_v45 = vadd.f32 %v7867_v8, %v2518_v36 }
 0x487   : > { %v6184_v6 = vpop.f32.mrf.mxu0  ;;  %2590 = vmax.xlane.f32.xlu0 %v2589_v19 }
 0x488   : > { %v2528_v34 = vadd.f32 %v6184_v6, %v6144_v49  ;;  %v2598_v0 = vsel %vm1701_vm1, %v8183_v45, -inf  ;;  %v8188_v20 = vadd.f32 %v7867_v8, %v2513_v41  ;;  %v2397_v41 = vpop.f32.mrf.mxu1 }
 0x489   : > { %2599 = vmax.xlane.f32.xlu1 %v2598_v0  ;;  %v2522_v62 = vpop.f32.mrf.mxu0 }
 0x48a   : > { %v2523_v29 = vadd.f32 %v2522_v62, %v2377_v58  ;;  %v2595_v18 = vsel %vm1701_vm1, %v8188_v20, -inf  ;;  %v8193_v10 = vadd.f32 %v7867_v8, %v2528_v34 }
 0x48b   : > { %v6187_v36 = vpop.f32.mrf.mxu0  ;;  %2596 = vmax.xlane.f32.xlu0 %v2595_v18 }
 0x48c   : > { %v2538_v19 = vadd.f32 %v6187_v36, %v6147_v55  ;;  %v2604_v49 = vsel %vm1701_vm1, %v8193_v10, -inf  ;;  %v8198_v6 = vadd.f32 %v7867_v8, %v2523_v29  ;;  %v6153_v29 = vpop.f32.mrf.mxu1 }
 0x48d   : > { %2605 = vmax.xlane.f32.xlu1 %v2604_v49  ;;  %v2532_v0 = vpop.f32.mrf.mxu0 }
 0x48e   : > { %v2533_v9 = vadd.f32 %v2532_v0, %v2387_v23  ;;  %v2601_v58 = vsel %vm1701_vm1, %v8198_v6, -inf  ;;  %v8203_v62 = vadd.f32 %v7867_v8, %v2538_v19 }
 0x48f   : > { %v6190_v34 = vpop.f32.mrf.mxu0  ;;  %2602 = vmax.xlane.f32.xlu0 %v2601_v58 }
 0x490   : > { %v2548_v18 = vadd.f32 %v6190_v34, %v6150_v25  ;;  %v2610_v55 = vsel %vm1701_vm1, %v8203_v62, -inf  ;;  %v8208_v36 = vadd.f32 %v7867_v8, %v2533_v9  ;;  %v2407_v9 = vpop.f32.mrf.mxu1 }
 0x491   : > { %2611 = vmax.xlane.f32.xlu1 %v2610_v55  ;;  %v2542_v49 = vpop.f32.mrf.mxu0 }
 0x492   : > { %v2543_v16 = vadd.f32 %v2542_v49, %v2397_v41  ;;  %v2607_v23 = vsel %vm1701_vm1, %v8208_v36, -inf  ;;  %v8213_v0 = vadd.f32 %v7867_v8, %v2548_v18 }
 0x493   : > { %v6193_v19 = vpop.f32.mrf.mxu0  ;;  %2608 = vmax.xlane.f32.xlu0 %v2607_v23 }
 0x494   : > { %v2558_v58 = vadd.f32 %v6193_v19, %v6153_v29  ;;  %v2616_v25 = vsel %vm1701_vm1, %v8213_v0, -inf  ;;  %v8218_v34 = vadd.f32 %v7867_v8, %v2543_v16 }
 0x495   : > { %2617 = vmax.xlane.f32.xlu1 %v2616_v25  ;;  %v2552_v55 = vpop.f32.mrf.mxu0 }
 0x496   : > { %v2553_v40 = vadd.f32 %v2552_v55, %v2407_v9  ;;  %v2613_v41 = vsel %vm1701_vm1, %v8218_v34, -inf  ;;  %v8223_v49 = vadd.f32 %v7867_v8, %v2558_v58 }
 0x497   : > { %2614 = vmax.xlane.f32.xlu0 %v2613_v41 }
 0x498   : > { %v2622_v18 = vsel %vm1701_vm1, %v8223_v49, -inf  ;;  %v8228_v29 = vadd.f32 %v7867_v8, %v2553_v40 }
 0x499   : > { %2623 = vmax.xlane.f32.xlu1 %v2622_v18 }
 0x49a   : > { %v2619_v16 = vsel %vm1701_vm1, %v8228_v29, -inf }
 0x49b   : > { %2620 = vmax.xlane.f32.xlu0 %v2619_v16 }
 0x506   : > { %v2582_v23 = vpop.xlane.xlu1 %2581 }
 0x507   : > { %v2626_v19 = vsub.f32 %v8153_v44, %v2582_v23 }
 0x508   : > { %v2579_v25 = vpop.xlane.xlu0 %2578 }
 0x509   : > { %v2643_v9 = vmul.f32 1.442695, %v2626_v19  ;;  %v2625_v58 = vsub.f32 %v8158_v37, %v2579_v25 }
 0x50a   : > { %v2588_v55 = vpop.xlane.xlu1 %2587 }
 0x50b   : > { %6583 = vpow2.f32 %v2643_v9  ;;  %v2641_v41 = vmul.f32 1.442695, %v2625_v58  ;;  %v2628_v43 = vsub.f32 %v8163_v12, %v2588_v55 }
 0x50c   : > { %v2585_v3 = vpop.xlane.xlu0 %2584 }
 0x50d   : > { %6585 = vpow2.f32 %v2641_v41  ;;  %v2647_v40 = vmul.f32 1.442695, %v2628_v43  ;;  %v2627_v8 = vsub.f32 %v8168_v32, %v2585_v3 }
 0x50e   : > { %v2594_v18 = vpop.xlane.xlu1 %2593 }
 0x50f   : > { %6587 = vpow2.f32 %v2647_v40  ;;  %v2645_v16 = vmul.f32 1.442695, %v2627_v8  ;;  %v2630_v13 = vsub.f32 %v8173_v48, %v2594_v18 }
 0x510   : > { %v2591_v44 = vpop.xlane.xlu0 %2590 }
 0x511   : > { %6589 = vpow2.f32 %v2645_v16  ;;  %v2651_v23 = vmul.f32 1.442695, %v2630_v13  ;;  %v2629_v37 = vsub.f32 %v8178_v26, %v2591_v44 }
 0x512   : > { %v2600_v19 = vpop.xlane.xlu1 %2599 }
 0x513   : > { %6591 = vpow2.f32 %v2651_v23  ;;  %v2649_v25 = vmul.f32 1.442695, %v2629_v37  ;;  %v2632_v12 = vsub.f32 %v8183_v45, %v2600_v19 }
 0x514   : > { %v2597_v9 = vpop.xlane.xlu0 %2596 }
 0x515   : > { %6593 = vpow2.f32 %v2649_v25  ;;  %v2655_v43 = vmul.f32 1.442695, %v2632_v12  ;;  %v2631_v3 = vsub.f32 %v8188_v20, %v2597_v9 }
 0x516   : > { %v2606_v32 = vpop.xlane.xlu1 %2605 }
 0x517   : > { %6595 = vpow2.f32 %v2655_v43  ;;  %v2653_v58 = vmul.f32 1.442695, %v2631_v3  ;;  %v2634_v48 = vsub.f32 %v8193_v10, %v2606_v32 }
 0x518   : > { %v8241_v55 = vpop.eup %6583  ;;  %v2603_v13 = vpop.xlane.xlu0 %2602 }
 0x519   : > { %6597 = vpow2.f32 %v2653_v58  ;;  %v2659_v26 = vmul.f32 1.442695, %v2634_v48  ;;  %v2633_v41 = vsub.f32 %v8198_v6, %v2603_v13  ;;  %v2676_v45 = vsel %vm1701_vm1, %v8241_v55, 0.0 }
 0x51a   : > { %v8246_v40 = vpop.eup %6585  ;;  %v2612_v8 = vpop.xlane.xlu1 %2611  ;;  %2677 = vadd.xlane.f32.xlu1 %v2676_v45 }
 0x51b   : > { %6599 = vpow2.f32 %v2659_v26  ;;  %v2657_v20 = vmul.f32 1.442695, %v2633_v41  ;;  %v2636_v18 = vsub.f32 %v8203_v62, %v2612_v8  ;;  %v2673_v10 = vsel %vm1701_vm1, %v8246_v40, 0.0 }
 0x51c   : > { %v8251_v16 = vpop.eup %6587  ;;  %2674 = vadd.xlane.f32.xlu0 %v2673_v10  ;;  %v2609_v44 = vpop.xlane.xlu0 %2608 }
 0x51d   : > { %6601 = vpow2.f32 %v2657_v20  ;;  %v2663_v6 = vmul.f32 1.442695, %v2636_v18  ;;  %v2635_v23 = vsub.f32 %v8208_v36, %v2609_v44  ;;  %v2682_v37 = vsel %vm1701_vm1, %v8251_v16, 0.0 }
 0x51e   : > { %v8256_v19 = vpop.eup %6589  ;;  %v2618_v25 = vpop.xlane.xlu1 %2617  ;;  %2683 = vadd.xlane.f32.xlu1 %v2682_v37 }
 0x51f   : > { %6603 = vpow2.f32 %v2663_v6  ;;  %v2661_v62 = vmul.f32 1.442695, %v2635_v23  ;;  %v2638_v12 = vsub.f32 %v8213_v0, %v2618_v25  ;;  %v2679_v9 = vsel %vm1701_vm1, %v8256_v19, 0.0 }
 0x520   : > { %v8261_v43 = vpop.eup %6591  ;;  %2680 = vadd.xlane.f32.xlu0 %v2679_v9  ;;  %v2615_v3 = vpop.xlane.xlu0 %2614 }
 0x521   : > { %6605 = vpow2.f32 %v2661_v62  ;;  %v2667_v36 = vmul.f32 1.442695, %v2638_v12  ;;  %v2637_v32 = vsub.f32 %v8218_v34, %v2615_v3  ;;  %v2688_v58 = vsel %vm1701_vm1, %v8261_v43, 0.0 }
 0x522   : > { %v8266_v48 = vpop.eup %6593  ;;  %2689 = vadd.xlane.f32.xlu1 %v2688_v58  ;;  %v2624_v13 = vpop.xlane.xlu1 %2623 }
 0x523   : > { %6607 = vpow2.f32 %v2667_v36  ;;  %v2665_v0 = vmul.f32 1.442695, %v2637_v32  ;;  %v2640_v26 = vsub.f32 %v8223_v49, %v2624_v13  ;;  %v2685_v41 = vsel %vm1701_vm1, %v8266_v48, 0.0 }
 0x524   : > { %v8271_v45 = vpop.eup %6595  ;;  %2686 = vadd.xlane.f32.xlu0 %v2685_v41  ;;  %v2621_v8 = vpop.xlane.xlu0 %2620 }
 0x525   : > { %6609 = vpow2.f32 %v2665_v0  ;;  %v2671_v34 = vmul.f32 1.442695, %v2640_v26  ;;  %v2639_v20 = vsub.f32 %v8228_v29, %v2621_v8  ;;  %v2694_v18 = vsel %vm1701_vm1, %v8271_v45, 0.0 }
 0x526   : > { %v8276_v10 = vpop.eup %6597  ;;  %2695 = vadd.xlane.f32.xlu1 %v2694_v18 }
 0x527   : > { %6611 = vpow2.f32 %v2671_v34  ;;  %v2669_v44 = vmul.f32 1.442695, %v2639_v20  ;;  %v2691_v49 = vsel %vm1701_vm1, %v8276_v10, 0.0 }
 0x528   : > { %v8280_v6 = vpop.eup %6599  ;;  %2692 = vadd.xlane.f32.xlu0 %v2691_v49 }
 0x529   : > { %6613 = vpow2.f32 %v2669_v44  ;;  %v2700_v23 = vsel %vm1701_vm1, %v8280_v6, 0.0 }
 0x52a   : > { %v8284_v37 = vpop.eup %6601  ;;  %2701 = vadd.xlane.f32.xlu1 %v2700_v23 }
 0x52b   : > { %v2697_v29 = vsel %vm1701_vm1, %v8284_v37, 0.0 }
 0x52c   : > { %v8288_v25 = vpop.eup %6603  ;;  %2698 = vadd.xlane.f32.xlu0 %v2697_v29 }
 0x52d   : > { %v2706_v62 = vsel %vm1701_vm1, %v8288_v25, 0.0 }
 0x52e   : > { %v8292_v12 = vpop.eup %6605  ;;  %2707 = vadd.xlane.f32.xlu1 %v2706_v62 }
 0x52f   : > { %v2703_v9 = vsel %vm1701_vm1, %v8292_v12, 0.0 }
 0x530   : > { %v8296_v3 = vpop.eup %6607  ;;  %2704 = vadd.xlane.f32.xlu0 %v2703_v9 }
 0x531   : > { %v2712_v36 = vsel %vm1701_vm1, %v8296_v3, 0.0 }
 0x532   : > { %v8300_v32 = vpop.eup %6609  ;;  %2713 = vadd.xlane.f32.xlu1 %v2712_v36 }
 0x533   : > { %v2709_v58 = vsel %vm1701_vm1, %v8300_v32, 0.0 }
 0x534   : > { %v8304_v13 = vpop.eup %6611  ;;  %2710 = vadd.xlane.f32.xlu0 %v2709_v58 }
 0x535   : > { %v2718_v0 = vsel %vm1701_vm1, %v8304_v13, 0.0 }
 0x536   : > { %v8308_v26 = vpop.eup %6613  ;;  %2719 = vadd.xlane.f32.xlu1 %v2718_v0 }
 0x537   : > { %v2715_v41 = vsel %vm1701_vm1, %v8308_v26, 0.0 }
 0x538   : > { %2716 = vadd.xlane.f32.xlu0 %v2715_v41 }
 0x5a3   : > { %v2678_v8 = vpop.xlane.xlu1 %2677 }
 0x5a4   : > { %6615 = vrcp.f32 %v2678_v8 }
 0x5a5   : > { %v2675_v34 = vpop.xlane.xlu0 %2674 }
 0x5a6   : > { %6617 = vrcp.f32 %v2675_v34 }
 0x5a7   : > { %v2684_v20 = vpop.xlane.xlu1 %2683 }
 0x5a8   : > { %6619 = vrcp.f32 %v2684_v20 }
 0x5a9   : > { %v2681_v18 = vpop.xlane.xlu0 %2680 }
 0x5aa   : > { %6621 = vrcp.f32 %v2681_v18 }
 0x5ab   : > { %v2690_v44 = vpop.xlane.xlu1 %2689 }
 0x5ac   : > { %6623 = vrcp.f32 %v2690_v44 }
 0x5ad   : > { %v2687_v49 = vpop.xlane.xlu0 %2686 }
 0x5ae   : > { %6625 = vrcp.f32 %v2687_v49 }
 0x5af   : > { %v2696_v23 = vpop.xlane.xlu1 %2695 }
 0x5b0   : > { %6627 = vrcp.f32 %v2696_v23 }
 0x5b1   : > { %v2693_v29 = vpop.xlane.xlu0 %2692  ;;  %v6616_v62 = vpop.eup %6615 }
 0x5b2   : > { %6629 = vrcp.f32 %v2693_v29  ;;  %v2738_v0 = vmul.f32 %v6616_v62, %v8241_v55 }
 0x5b3   : > { %v6618_v9 = vpop.eup %6617  ;;  %v2702_v36 = vpop.xlane.xlu1 %2701 }
 0x5b4   : > { %v2737_v58 = vmul.f32 %v6618_v9, %v8246_v40  ;;  %6631 = vrcp.f32 %v2702_v36 }
 0x5b5   : > { %v2699_v41 = vpop.xlane.xlu0 %2698  ;;  %v6620_v8 = vpop.eup %6619 }
 0x5b6   : > { %6633 = vrcp.f32 %v2699_v41  ;;  %6202 = vmatprep.mubr.msk.f32.mxu1 %vm1701_vm1, %v2737_v58  ;;  %v2740_v49 = vmul.f32 %v6620_v8, %v8251_v16 }
 0x5b7   : > { %v6622_v34 = vpop.eup %6621  ;;  %v2708_v20 = vpop.xlane.xlu1 %2707  ;;  %6203 = vmatmul.mubr.msk.f32.vlgmr.msra.gmra.mxu1 %vm1701_vm1, %v2738_v0 }
 0x5b8   : > { %v2739_v18 = vmul.f32 %v6622_v34, %v8256_v19  ;;  %6635 = vrcp.f32 %v2708_v20 }
 0x5b9   : > { %v2705_v44 = vpop.xlane.xlu0 %2704  ;;  %v6624_v23 = vpop.eup %6623 }
 0x5ba   : > { %6637 = vrcp.f32 %v2705_v44  ;;  %6205 = vmatprep.mubr.msk.f32.mxu1 %vm1701_vm1, %v2739_v18  ;;  %v2742_v9 = vmul.f32 %v6624_v23, %v8261_v43 }
 0x5bb   : > { %v6626_v55 = vpop.eup %6625  ;;  %v2714_v40 = vpop.xlane.xlu1 %2713  ;;  %6206 = vmatmul.mubr.msk.f32.gmra.mxu1 %vm1701_vm1, %v2740_v49 }
 0x5bc   : > { %v2741_v29 = vmul.f32 %v6626_v55, %v8266_v48  ;;  %6639 = vrcp.f32 %v2714_v40 }
 0x5bd   : > { %v2711_v62 = vpop.xlane.xlu0 %2710  ;;  %v6628_v36 = vpop.eup %6627 }
 0x5be   : > { %6641 = vrcp.f32 %v2711_v62  ;;  %6208 = vmatprep.mubr.msk.f32.mxu1 %vm1701_vm1, %v2741_v29  ;;  %v2744_v41 = vmul.f32 %v6628_v36, %v8271_v45 }
 0x5bf   : > { %v6630_v19 = vpop.eup %6629  ;;  %v2720_v16 = vpop.xlane.xlu1 %2719  ;;  %6209 = vmatmul.mubr.msk.f32.gmra.mxu1 %vm1701_vm1, %v2742_v9 }
 0x5c0   : > { %v2743_v58 = vmul.f32 %v6630_v19, %v8276_v10  ;;  %6643 = vrcp.f32 %v2720_v16 }
 0x5c1   : > { %v2717_v0 = vpop.xlane.xlu0 %2716  ;;  %v6632_v8 = vpop.eup %6631 }
 0x5c2   : > { %6645 = vrcp.f32 %v2717_v0  ;;  %6211 = vmatprep.mubr.msk.f32.mxu1 %vm1701_vm1, %v2743_v58  ;;  %v2746_v34 = vmul.f32 %v6632_v8, %v8280_v6 }
 0x5c3   : > { %v6634_v48 = vpop.eup %6633  ;;  %6212 = vmatmul.mubr.msk.f32.gmra.mxu1 %vm1701_vm1, %v2744_v41 }
 0x5c4   : > { %v2745_v43 = vmul.f32 %v6634_v48, %v8284_v37 }
 0x5c5   : > { %v6636_v20 = vpop.eup %6635 }
 0x5c6   : > { %6214 = vmatprep.mubr.msk.f32.mxu1 %vm1701_vm1, %v2745_v43  ;;  %v2748_v45 = vmul.f32 %v6636_v20, %v8288_v25 }
 0x5c7   : > { %v6638_v18 = vpop.eup %6637  ;;  %6215 = vmatmul.mubr.msk.f32.gmra.mxu1 %vm1701_vm1, %v2746_v34 }
 0x5c8   : > { %v2747_v10 = vmul.f32 %v6638_v18, %v8292_v12 }
 0x5c9   : > { %v6640_v44 = vpop.eup %6639 }
 0x5ca   : > { %6217 = vmatprep.mubr.msk.f32.mxu1 %vm1701_vm1, %v2747_v10  ;;  %v2750_v6 = vmul.f32 %v6640_v44, %v8296_v3 }
 0x5cb   : > { %v6642_v49 = vpop.eup %6641  ;;  %6218 = vmatmul.mubr.msk.f32.gmra.mxu1 %vm1701_vm1, %v2748_v45 }
 0x5cc   : > { %v2749_v37 = vmul.f32 %v6642_v49, %v8300_v32  ;;  %v8347_v32 = vld [vmem:[%s9522_s14 + $0x6] ss:$0 sm:$0xff] }
 0x5cd   : > { %v6644_v23 = vpop.eup %6643 }
 0x5ce   : > { %6220 = vmatprep.mubr.msk.f32.mxu1 %vm1701_vm1, %v2749_v37  ;;  %v2752_v25 = vmul.f32 %v6644_v23, %v8304_v13 }
 0x5cf   : > { %v6646_v55 = vpop.eup %6645  ;;  %6221 = vmatmul.mubr.msk.f32.gmra.mxu1 %vm1701_vm1, %v2750_v6 }
 0x5d0   : > { %v2751_v12 = vmul.f32 %v6646_v55, %v8308_v26 }
 0x5d2   : > { %6223 = vmatprep.mubr.msk.f32.mxu1 %vm1701_vm1, %v2751_v12 }
 0x5d3   : > { %6224 = vmatmul.mubr.msk.f32.gmra.mxu1 %vm1701_vm1, %v2752_v25 }
 0x677   : > { %v6204_v3 = vpop.f32.mrf.mxu1 }
 0x678   : > { %v8350_v40 = vadd.f32 %v6204_v3, %v8347_v32 }
 0x679   : > { %v2867_v29 = vpop.f32.mrf.mxu1 }
 0x67a   : > { %v8353_v62 = vadd.f32 %v8347_v32, %v2867_v29  ;;  %v2949_v13 = vsel %vm790_vm0, %v8350_v40, -inf }
 0x67b   : > { %2950 = vmax.xlane.f32.xlu1 %v2949_v13  ;;  %v6207_v26 = vpop.f32.mrf.mxu1 }
 0x67c   : > { %v8358_v9 = vadd.f32 %v6207_v26, %v8347_v32  ;;  %v2946_v36 = vsel %vm790_vm0, %v8353_v62, -inf }
 0x67d   : > { %2947 = vmax.xlane.f32.xlu0 %v2946_v36  ;;  %v2877_v19 = vpop.f32.mrf.mxu1 }
 0x67e   : > { %v8363_v16 = vadd.f32 %v8347_v32, %v2877_v19  ;;  %v2955_v58 = vsel %vm790_vm0, %v8358_v9, -inf }
 0x67f   : > { %2956 = vmax.xlane.f32.xlu1 %v2955_v58  ;;  %v6210_v0 = vpop.f32.mrf.mxu1 }
 0x680   : > { %v8368_v41 = vadd.f32 %v6210_v0, %v8347_v32  ;;  %v2952_v8 = vsel %vm790_vm0, %v8363_v16, -inf }
 0x681   : > { %2953 = vmax.xlane.f32.xlu0 %v2952_v8  ;;  %v2887_v48 = vpop.f32.mrf.mxu1 }
 0x682   : > { %v8373_v43 = vadd.f32 %v8347_v32, %v2887_v48  ;;  %v2961_v34 = vsel %vm790_vm0, %v8368_v41, -inf }
 0x683   : > { %2962 = vmax.xlane.f32.xlu1 %v2961_v34  ;;  %v6213_v20 = vpop.f32.mrf.mxu1 }
 0x684   : > { %v8378_v18 = vadd.f32 %v6213_v20, %v8347_v32  ;;  %v2958_v10 = vsel %vm790_vm0, %v8373_v43, -inf }
 0x685   : > { %2959 = vmax.xlane.f32.xlu0 %v2958_v10  ;;  %v2897_v45 = vpop.f32.mrf.mxu1 }
 0x686   : > { %v8383_v44 = vadd.f32 %v8347_v32, %v2897_v45  ;;  %v2967_v49 = vsel %vm790_vm0, %v8378_v18, -inf }
 0x687   : > { %2968 = vmax.xlane.f32.xlu1 %v2967_v49  ;;  %v6216_v37 = vpop.f32.mrf.mxu1 }
 0x688   : > { %v8388_v6 = vadd.f32 %v6216_v37, %v8347_v32  ;;  %v2964_v23 = vsel %vm790_vm0, %v8383_v44, -inf }
 0x689   : > { %2965 = vmax.xlane.f32.xlu0 %v2964_v23  ;;  %v2907_v55 = vpop.f32.mrf.mxu1  ;;  %v8424_v23 = vadd.f32 %v8120_v28, %v8347_v32 }
 0x68a   : > { %v8393_v12 = vadd.f32 %v8347_v32, %v2907_v55  ;;  %v2973_v25 = vsel %vm790_vm0, %v8388_v6, -inf }
 0x68b   : > { %2974 = vmax.xlane.f32.xlu1 %v2973_v25  ;;  %v6219_v3 = vpop.f32.mrf.mxu1  ;;  %v2082_v28 = vsel %vm790_vm0, %v8424_v23, -inf }
 0x68c   : > { %v8398_v29 = vadd.f32 %v6219_v3, %v8347_v32  ;;  %v2970_v13 = vsel %vm790_vm0, %v8393_v12, -inf  ;;  %v8433_v3 = vadd.f32 %v8347_v32, %v8122_v39 }
 0x68d   : > { %2971 = vmax.xlane.f32.xlu0 %v2970_v13  ;;  %v2917_v26 = vpop.f32.mrf.mxu1 }
 0x68e   : > { %v8403_v36 = vadd.f32 %v8347_v32, %v2917_v26  ;;  %v2979_v19 = vsel %vm790_vm0, %v8398_v29, -inf  ;;  %v8439_v26 = vadd.f32 %v8124_v7, %v8347_v32  ;;  %v2079_v39 = vsel %vm790_vm0, %v8433_v3, -inf }
 0x68f   : > { %2980 = vmax.xlane.f32.xlu1 %v2979_v19  ;;  %v6222_v58 = vpop.f32.mrf.mxu1  ;;  %v8445_v19 = vadd.f32 %v8347_v32, %v8126_v61 }
 0x690   : > { %v8408_v0 = vadd.f32 %v6222_v58, %v8347_v32  ;;  %v2976_v8 = vsel %vm790_vm0, %v8403_v36, -inf  ;;  %v8451_v58 = vadd.f32 %v8128_v57, %v8347_v32  ;;  %v2088_v7 = vsel %vm790_vm0, %v8439_v26, -inf }
 0x691   : > { %2977 = vmax.xlane.f32.xlu0 %v2976_v8  ;;  %v2927_v48 = vpop.f32.mrf.mxu1  ;;  %v8457_v8 = vadd.f32 %v8347_v32, %v8130_v14  ;;  %v2085_v61 = vsel %vm790_vm0, %v8445_v19, -inf }
 0x692   : > { %v8413_v34 = vadd.f32 %v8347_v32, %v2927_v48  ;;  %v2985_v20 = vsel %vm790_vm0, %v8408_v0, -inf  ;;  %v8463_v48 = vadd.f32 %v8132_v59, %v8347_v32  ;;  %v2094_v57 = vsel %vm790_vm0, %v8451_v58, -inf }
 0x693   : > { %2986 = vmax.xlane.f32.xlu1 %v2985_v20  ;;  %v6225_v10 = vpop.f32.mrf.mxu1  ;;  %v8469_v20 = vadd.f32 %v8347_v32, %v8134_v33  ;;  %v2091_v14 = vsel %vm790_vm0, %v8457_v8, -inf }
 0x694   : > { %v8418_v45 = vadd.f32 %v6225_v10, %v8347_v32  ;;  %v2982_v49 = vsel %vm790_vm0, %v8413_v34, -inf  ;;  %v8475_v10 = vadd.f32 %v8136_v11, %v8347_v32  ;;  %v2100_v59 = vsel %vm790_vm0, %v8463_v48, -inf }
 0x695   : > { %2983 = vmax.xlane.f32.xlu0 %v2982_v49  ;;  %v2937_v37 = vpop.f32.mrf.mxu1  ;;  %v8481_v49 = vadd.f32 %v8347_v32, %v8138_v27  ;;  %v2097_v33 = vsel %vm790_vm0, %v8469_v20, -inf }
 0x696   : > { %v8427_v55 = vadd.f32 %v8347_v32, %v2937_v37  ;;  %v2991_v25 = vsel %vm790_vm0, %v8418_v45, -inf  ;;  %v8487_v37 = vadd.f32 %v8140_v2, %v8347_v32  ;;  %v2106_v11 = vsel %vm790_vm0, %v8475_v10, -inf }
 0x697   : > { %2992 = vmax.xlane.f32.xlu1 %v2991_v25  ;;  %v8493_v25 = vadd.f32 %v8347_v32, %v8142_v46  ;;  %v2103_v27 = vsel %vm790_vm0, %v8481_v49, -inf }
 0x698   : > { %v2988_v13 = vsel %vm790_vm0, %v8427_v55, -inf  ;;  %v2112_v2 = vsel %vm790_vm0, %v8487_v37, -inf }
 0x699   : > { %2989 = vmax.xlane.f32.xlu0 %v2988_v13  ;;  %v8499_v13 = vadd.f32 %v8144_v53, %v8347_v32  ;;  %v2109_v46 = vsel %vm790_vm0, %v8493_v25, -inf }
 0x69b   : > { %2083 = vmax.xlane.f32.xlu1 %v2082_v28  ;;  %v8505_v28 = vadd.f32 %v8347_v32, %v8146_v24  ;;  %v2118_v53 = vsel %vm790_vm0, %v8499_v13, -inf }
 0x69d   : > { %2080 = vmax.xlane.f32.xlu0 %v2079_v39  ;;  %v8511_v39 = vadd.f32 %v8148_v38, %v8347_v32  ;;  %v2115_v24 = vsel %vm790_vm0, %v8505_v28, -inf }
 0x69f   : > { %2089 = vmax.xlane.f32.xlu1 %v2088_v7  ;;  %v8517_v7 = vadd.f32 %v8347_v32, %v8150_v42 }
 0x6a1   : > { %2086 = vmax.xlane.f32.xlu0 %v2085_v61  ;;  %v2124_v61 = vsel %vm790_vm0, %v8511_v39, -inf  ;;  %v2121_v38 = vsel %vm790_vm0, %v8517_v7, -inf }
 0x6a3   : > { %2095 = vmax.xlane.f32.xlu1 %v2094_v57  ;;  %v3153_v57 = vld [vmem:[#allocation8 + $0x38] sm:$0xff] }
 0x6a4   : > { %6226 = vmatprep.subr.mxu0 %v3153_v57 }
 0x6a5   : > { %2092 = vmax.xlane.f32.xlu0 %v2091_v14  ;;  %v3152_v14 = vld [vmem:[#allocation8 + $0x30] sm:$0xff]  ;;  %6227 = vmatpush3.msra.mxu0 %v3153_v57 }
 0x6a6   : > { %6228 = vmatprep.subr.mxu0 %v3152_v14 }
 0x6a7   : > { %2101 = vmax.xlane.f32.xlu1 %v2100_v59  ;;  %v3151_v59 = vld [vmem:[#allocation8 + $0x28] sm:$0xff]  ;;  %6229 = vmatpush3.msra.mxu0 %v3152_v14 }
 0x6a8   : > { %6230 = vmatprep.subr.mxu0 %v3151_v59 }
 0x6a9   : > { %2098 = vmax.xlane.f32.xlu0 %v2097_v33  ;;  %6231 = vmatpush3.msra.mxu0 %v3151_v59 }
 0x6ab   : > { %2107 = vmax.xlane.f32.xlu1 %v2106_v11 }
 0x6ad   : > { %2104 = vmax.xlane.f32.xlu0 %v2103_v27 }
 0x6af   : > { %2113 = vmax.xlane.f32.xlu1 %v2112_v2 }
 0x6b1   : > { %2110 = vmax.xlane.f32.xlu0 %v2109_v46 }
 0x6b3   : > { %2119 = vmax.xlane.f32.xlu1 %v2118_v53 }
 0x6b5   : > { %2116 = vmax.xlane.f32.xlu0 %v2115_v24 }
 0x6b7   : > { %2125 = vmax.xlane.f32.xlu1 %v2124_v61 }
 0x6b9   : > { %2122 = vmax.xlane.f32.xlu0 %v2121_v38 }
 0x704   : > { %v2951_v42 = vpop.xlane.xlu1 %2950 }
 0x705   : > { %v2995_v32 = vsub.f32 %v8350_v40, %v2951_v42 }
 0x706   : > { %v2948_v33 = vpop.xlane.xlu0 %2947 }
 0x707   : > { %v3012_v11 = vmul.f32 1.442695, %v2995_v32  ;;  %v2994_v27 = vsub.f32 %v8353_v62, %v2948_v33 }
 0x708   : > { %v2957_v2 = vpop.xlane.xlu1 %2956 }
 0x709   : > { %6647 = vpow2.f32 %v3012_v11  ;;  %v3010_v46 = vmul.f32 1.442695, %v2994_v27  ;;  %v2997_v53 = vsub.f32 %v8358_v9, %v2957_v2 }
 0x70a   : > { %v2954_v24 = vpop.xlane.xlu0 %2953 }
 0x70b   : > { %6649 = vpow2.f32 %v3010_v46  ;;  %v3016_v61 = vmul.f32 1.442695, %v2997_v53  ;;  %v2996_v38 = vsub.f32 %v8363_v16, %v2954_v24 }
 0x70c   : > { %v2963_v57 = vpop.xlane.xlu1 %2962 }
 0x70d   : > { %6651 = vpow2.f32 %v3016_v61  ;;  %v3014_v14 = vmul.f32 1.442695, %v2996_v38  ;;  %v2999_v59 = vsub.f32 %v8368_v41, %v2963_v57 }
 0x70e   : > { %v2960_v40 = vpop.xlane.xlu0 %2959 }
 0x70f   : > { %6653 = vpow2.f32 %v3014_v14  ;;  %v3020_v42 = vmul.f32 1.442695, %v2999_v59  ;;  %v2998_v62 = vsub.f32 %v8373_v43, %v2960_v40 }
 0x710   : > { %v2969_v32 = vpop.xlane.xlu1 %2968 }
 0x711   : > { %6655 = vpow2.f32 %v3020_v42  ;;  %v3018_v33 = vmul.f32 1.442695, %v2998_v62  ;;  %v3001_v9 = vsub.f32 %v8378_v18, %v2969_v32 }
 0x712   : > { %v2966_v11 = vpop.xlane.xlu0 %2965 }
 0x713   : > { %6657 = vpow2.f32 %v3018_v33  ;;  %v3024_v27 = vmul.f32 1.442695, %v3001_v9  ;;  %v3000_v16 = vsub.f32 %v8383_v44, %v2966_v11 }
 0x714   : > { %v2975_v2 = vpop.xlane.xlu1 %2974 }
 0x715   : > { %6659 = vpow2.f32 %v3024_v27  ;;  %v3022_v46 = vmul.f32 1.442695, %v3000_v16  ;;  %v3003_v41 = vsub.f32 %v8388_v6, %v2975_v2 }
 0x716   : > { %v8534_v53 = vpop.eup %6647  ;;  %v2972_v24 = vpop.xlane.xlu0 %2971 }
 0x717   : > { %6661 = vpow2.f32 %v3022_v46  ;;  %v3028_v43 = vmul.f32 1.442695, %v3003_v41  ;;  %v3002_v61 = vsub.f32 %v8393_v12, %v2972_v24  ;;  %v3045_v18 = vsel %vm790_vm0, %v8534_v53, 0.0 }
 0x718   : > { %v8539_v38 = vpop.eup %6649  ;;  %v2981_v57 = vpop.xlane.xlu1 %2980  ;;  %3046 = vadd.xlane.f32.xlu1 %v3045_v18 }
 0x719   : > { %6663 = vpow2.f32 %v3028_v43  ;;  %v3026_v44 = vmul.f32 1.442695, %v3002_v61  ;;  %v3005_v14 = vsub.f32 %v8398_v29, %v2981_v57  ;;  %v3042_v6 = vsel %vm790_vm0, %v8539_v38, 0.0 }
 0x71a   : > { %v8544_v59 = vpop.eup %6651  ;;  %v2978_v40 = vpop.xlane.xlu0 %2977  ;;  %3043 = vadd.xlane.f32.xlu0 %v3042_v6 }
 0x71b   : > { %6665 = vpow2.f32 %v3026_v44  ;;  %v3032_v12 = vmul.f32 1.442695, %v3005_v14  ;;  %v3004_v42 = vsub.f32 %v8403_v36, %v2978_v40  ;;  %v3051_v62 = vsel %vm790_vm0, %v8544_v59, 0.0 }
 0x71c   : > { %v8549_v32 = vpop.eup %6653  ;;  %v2987_v33 = vpop.xlane.xlu1 %2986  ;;  %3052 = vadd.xlane.f32.xlu1 %v3051_v62 }
 0x71d   : > { %6667 = vpow2.f32 %v3032_v12  ;;  %v3030_v29 = vmul.f32 1.442695, %v3004_v42  ;;  %v3007_v9 = vsub.f32 %v8408_v0, %v2987_v33  ;;  %v3048_v11 = vsel %vm790_vm0, %v8549_v32, 0.0 }
 0x71e   : > { %v8554_v27 = vpop.eup %6655  ;;  %v2984_v16 = vpop.xlane.xlu0 %2983  ;;  %3049 = vadd.xlane.f32.xlu0 %v3048_v11 }
 0x71f   : > { %6669 = vpow2.f32 %v3030_v29  ;;  %v3036_v36 = vmul.f32 1.442695, %v3007_v9  ;;  %v3006_v2 = vsub.f32 %v8413_v34, %v2984_v16  ;;  %v3057_v46 = vsel %vm790_vm0, %v8554_v27, 0.0 }
 0x720   : > { %v8559_v41 = vpop.eup %6657  ;;  %3058 = vadd.xlane.f32.xlu1 %v3057_v46  ;;  %v2993_v24 = vpop.xlane.xlu1 %2992 }
 0x721   : > { %6671 = vpow2.f32 %v3036_v36  ;;  %v3034_v0 = vmul.f32 1.442695, %v3006_v2  ;;  %v3009_v43 = vsub.f32 %v8418_v45, %v2993_v24  ;;  %v3054_v61 = vsel %vm790_vm0, %v8559_v41, 0.0 }
 0x722   : > { %v8564_v18 = vpop.eup %6659  ;;  %v2990_v57 = vpop.xlane.xlu0 %2989  ;;  %3055 = vadd.xlane.f32.xlu0 %v3054_v61 }
 0x723   : > { %6673 = vpow2.f32 %v3034_v0  ;;  %v3040_v34 = vmul.f32 1.442695, %v3009_v43  ;;  %v3008_v44 = vsub.f32 %v8427_v55, %v2990_v57  ;;  %v3063_v14 = vsel %vm790_vm0, %v8564_v18, 0.0 }
 0x724   : > { %v8569_v6 = vpop.eup %6661  ;;  %3064 = vadd.xlane.f32.xlu1 %v3063_v14  ;;  %v2084_v40 = vpop.xlane.xlu1 %2083  ;;  %v3150_v14 = vld [vmem:[#allocation8 + $0x20] sm:$0xff] }
 0x725   : > { %6675 = vpow2.f32 %v3040_v34  ;;  %v3038_v45 = vmul.f32 1.442695, %v3008_v44  ;;  %v2128_v12 = vsub.f32 %v8424_v23, %v2084_v40  ;;  %v3060_v42 = vsel %vm790_vm0, %v8569_v6, 0.0  ;;  %6232 = vmatprep.subr.mxu0 %v3150_v14 }
 0x726   : > { %v8574_v62 = vpop.eup %6663  ;;  %v2081_v33 = vpop.xlane.xlu0 %2080  ;;  %3061 = vadd.xlane.f32.xlu0 %v3060_v42  ;;  %6233 = vmatpush3.msra.mxu0 %v3150_v14 }
 0x727   : > { %6677 = vpow2.f32 %v3038_v45  ;;  %v2145_v55 = vmul.f32 1.442695, %v2128_v12  ;;  %v2127_v29 = vsub.f32 %v8433_v3, %v2081_v33  ;;  %v3069_v9 = vsel %vm790_vm0, %v8574_v62, 0.0  ;;  %v3149_v33 = vld [vmem:[#allocation8 + $0x18] sm:$0xff] }
 0x728   : > { %v8579_v11 = vpop.eup %6665  ;;  %3070 = vadd.xlane.f32.xlu1 %v3069_v9  ;;  %v2090_v16 = vpop.xlane.xlu1 %2089  ;;  %6234 = vmatprep.subr.mxu0 %v3149_v33 }
 0x729   : > { %6679 = vpow2.f32 %v2145_v55  ;;  %v2143_v23 = vmul.f32 1.442695, %v2127_v29  ;;  %v2130_v36 = vsub.f32 %v8439_v26, %v2090_v16  ;;  %v3066_v2 = vsel %vm790_vm0, %v8579_v11, 0.0  ;;  %6235 = vmatpush3.msra.mxu0 %v3149_v33 }
 0x72a   : > { %v8584_v46 = vpop.eup %6667  ;;  %v2087_v24 = vpop.xlane.xlu0 %2086  ;;  %3067 = vadd.xlane.f32.xlu0 %v3066_v2  ;;  %v3147_v2 = vld [vmem:[#allocation8 + $0x8] sm:$0xff] }
 0x72b   : > { %6681 = vpow2.f32 %v2143_v23  ;;  %v2149_v3 = vmul.f32 1.442695, %v2130_v36  ;;  %v2129_v0 = vsub.f32 %v8445_v19, %v2087_v24  ;;  %v3075_v43 = vsel %vm790_vm0, %v8584_v46, 0.0  ;;  %v3148_v23 = vld [vmem:[#allocation8 + $0x10] sm:$0xff] }
 0x72c   : > { %v8589_v61 = vpop.eup %6669  ;;  %3076 = vadd.xlane.f32.xlu1 %v3075_v43  ;;  %v2096_v57 = vpop.xlane.xlu1 %2095  ;;  %6236 = vmatprep.subr.mxu0 %v3148_v23 }
 0x72d   : > { %6683 = vpow2.f32 %v2149_v3  ;;  %v2147_v26 = vmul.f32 1.442695, %v2129_v0  ;;  %v2132_v34 = vsub.f32 %v8451_v58, %v2096_v57  ;;  %v3072_v44 = vsel %vm790_vm0, %v8589_v61, 0.0  ;;  %6237 = vmatpush3.msra.mxu0 %v3148_v23  ;;  %v3146_v57 = vld [vmem:[#allocation8] sm:$0xff] }
 0x72e   : > { %v8594_v40 = vpop.eup %6671  ;;  %v2093_v45 = vpop.xlane.xlu0 %2092  ;;  %3073 = vadd.xlane.f32.xlu0 %v3072_v44  ;;  %6238 = vmatprep.subr.mxu0 %v3147_v2 }
 0x72f   : > { %6685 = vpow2.f32 %v2147_v26  ;;  %v2153_v19 = vmul.f32 1.442695, %v2132_v34  ;;  %v2131_v12 = vsub.f32 %v8457_v8, %v2093_v45  ;;  %v3081_v42 = vsel %vm790_vm0, %v8594_v40, 0.0  ;;  %6239 = vmatpush3.msra.mxu0 %v3147_v2  ;;  %v3145_v45 = vld [vmem:[#allocation7 + $0x38] sm:$0xff] }
 0x730   : > { %v8599_v55 = vpop.eup %6673  ;;  %3082 = vadd.xlane.f32.xlu1 %v3081_v42  ;;  %v2102_v58 = vpop.xlane.xlu1 %2101  ;;  %6240 = vmatprep.subr.mxu0 %v3146_v57 }
 0x731   : > { %6687 = vpow2.f32 %v2153_v19  ;;  %v2151_v29 = vmul.f32 1.442695, %v2131_v12  ;;  %v2134_v9 = vsub.f32 %v8463_v48, %v2102_v58  ;;  %v3078_v16 = vsel %vm790_vm0, %v8599_v55, 0.0  ;;  %6241 = vmatpush3.msra.mxu0 %v3146_v57  ;;  %6266 = vmatprep.subr.mxu1 %v3145_v45  ;;  %v8621_v58 = vld [vmem:[#allocation10] sm:$0xff] }
 0x732   : > { %v8604_v8 = vpop.eup %6675  ;;  %v2099_v36 = vpop.xlane.xlu0 %2098  ;;  %3079 = vadd.xlane.f32.xlu0 %v3078_v16  ;;  %6267 = vmatpush3.msra.mxu1 %v3145_v45 }
 0x733   : > { %6689 = vpow2.f32 %v2151_v29  ;;  %v2157_v24 = vmul.f32 1.442695, %v2134_v9  ;;  %v2133_v3 = vsub.f32 %v8469_v20, %v2099_v36  ;;  %v3087_v0 = vsel %vm790_vm0, %v8604_v8, 0.0  ;;  %6306 = vmatprep.subr.mxu0 %v8621_v58  ;;  %v3144_v36 = vld [vmem:[#allocation7 + $0x30] sm:$0xff] }
 0x734   : > { %v8609_v48 = vpop.eup %6677  ;;  %3088 = vadd.xlane.f32.xlu1 %v3087_v0  ;;  %v2108_v43 = vpop.xlane.xlu1 %2107  ;;  %6268 = vmatprep.subr.mxu1 %v3144_v36 }
 0x735   : > { %6691 = vpow2.f32 %v2157_v24  ;;  %v2155_v26 = vmul.f32 1.442695, %v2133_v3  ;;  %v2136_v34 = vsub.f32 %v8475_v10, %v2108_v43  ;;  %v3084_v44 = vsel %vm790_vm0, %v8609_v48, 0.0  ;;  %6269 = vmatpush3.msra.mxu1 %v3144_v36 }
 0x736   : > { %v8614_v14 = vpop.eup %6679  ;;  %v2105_v20 = vpop.xlane.xlu0 %2104  ;;  %3085 = vadd.xlane.f32.xlu0 %v3084_v44 }
 0x737   : > { %6693 = vpow2.f32 %v2155_v26  ;;  %v2161_v19 = vmul.f32 1.442695, %v2136_v34  ;;  %v2135_v12 = vsub.f32 %v8481_v49, %v2105_v20  ;;  %v2178_v42 = vsel %vm790_vm0, %v8614_v14, 0.0 }
 0x738   : > { %v8619_v10 = vpop.eup %6681  ;;  %2179 = vadd.xlane.f32.xlu1 %v2178_v42  ;;  %v2114_v33 = vpop.xlane.xlu1 %2113 }
 0x739   : > { %6695 = vpow2.f32 %v2161_v19  ;;  %v2159_v29 = vmul.f32 1.442695, %v2135_v12  ;;  %v2138_v9 = vsub.f32 %v8487_v37, %v2114_v33  ;;  %v2175_v16 = vsel %vm790_vm0, %v8619_v10, 0.0 }
 0x73a   : > { %v8627_v49 = vpop.eup %6683  ;;  %v2111_v23 = vpop.xlane.xlu0 %2110  ;;  %2176 = vadd.xlane.f32.xlu0 %v2175_v16 }
 0x73b   : > { %6697 = vpow2.f32 %v2159_v29  ;;  %v2165_v2 = vmul.f32 1.442695, %v2138_v9  ;;  %v2137_v24 = vsub.f32 %v8493_v25, %v2111_v23  ;;  %v2184_v3 = vsel %vm790_vm0, %v8627_v49, 0.0  ;;  %v3143_v25 = vld [vmem:[#allocation7 + $0x28] sm:$0xff] }
 0x73c   : > { %v8632_v0 = vpop.eup %6685  ;;  %2185 = vadd.xlane.f32.xlu1 %v2184_v3  ;;  %v2120_v37 = vpop.xlane.xlu1 %2119  ;;  %6270 = vmatprep.subr.mxu1 %v3143_v25 }
 0x73d   : > { %6699 = vpow2.f32 %v2165_v2  ;;  %v2163_v43 = vmul.f32 1.442695, %v2137_v24  ;;  %v2140_v57 = vsub.f32 %v8499_v13, %v2120_v37  ;;  %v2181_v26 = vsel %vm790_vm0, %v8632_v0, 0.0  ;;  %6271 = vmatpush3.msra.mxu1 %v3143_v25 }
 0x73e   : > { %v8637_v34 = vpop.eup %6687  ;;  %v2117_v44 = vpop.xlane.xlu0 %2116  ;;  %2182 = vadd.xlane.f32.xlu0 %v2181_v26 }
 0x73f   : > { %6701 = vpow2.f32 %v2163_v43  ;;  %v2169_v20 = vmul.f32 1.442695, %v2140_v57  ;;  %v2139_v45 = vsub.f32 %v8505_v28, %v2117_v44  ;;  %v2190_v19 = vsel %vm790_vm0, %v8637_v34, 0.0 }
 0x740   : > { %v8642_v12 = vpop.eup %6689  ;;  %2191 = vadd.xlane.f32.xlu1 %v2190_v19  ;;  %v2126_v13 = vpop.xlane.xlu1 %2125 }
 0x741   : > { %6703 = vpow2.f32 %v2169_v20  ;;  %v2167_v42 = vmul.f32 1.442695, %v2139_v45  ;;  %v2142_v33 = vsub.f32 %v8511_v39, %v2126_v13  ;;  %v2187_v29 = vsel %vm790_vm0, %v8642_v12, 0.0  ;;  %v3142_v20 = vld [vmem:[#allocation7 + $0x20] sm:$0xff]  ;;  %v3141_v13 = vld [vmem:[#allocation7 + $0x18] sm:$0xff] }
 0x742   : > { %v8647_v9 = vpop.eup %6691  ;;  %2188 = vadd.xlane.f32.xlu0 %v2187_v29  ;;  %v2123_v28 = vpop.xlane.xlu0 %2122  ;;  %6272 = vmatprep.subr.mxu1 %v3142_v20  ;;  %v3140_v29 = vld [vmem:[#allocation7 + $0x10] sm:$0xff] }
 0x743   : > { %6705 = vpow2.f32 %v2167_v42  ;;  %v2173_v16 = vmul.f32 1.442695, %v2142_v33  ;;  %v2141_v23 = vsub.f32 %v8517_v7, %v2123_v28  ;;  %v2196_v36 = vsel %vm790_vm0, %v8647_v9, 0.0  ;;  %6273 = vmatpush3.msra.mxu1 %v3142_v20 }
 0x744   : > { %v8652_v2 = vpop.eup %6693  ;;  %2197 = vadd.xlane.f32.xlu1 %v2196_v36  ;;  %6274 = vmatprep.subr.mxu1 %v3141_v13  ;;  %v3138_v36 = vld [vmem:[#allocation7] sm:$0xff] }
 0x745   : > { %6707 = vpow2.f32 %v2173_v16  ;;  %v2171_v24 = vmul.f32 1.442695, %v2141_v23  ;;  %v2193_v39 = vsel %vm790_vm0, %v8652_v2, 0.0  ;;  %6275 = vmatpush3.msra.mxu1 %v3141_v13  ;;  %v3139_v16 = vld [vmem:[#allocation7 + $0x8] sm:$0xff] }
 0x746   : > { %v8656_v3 = vpop.eup %6695  ;;  %2194 = vadd.xlane.f32.xlu0 %v2193_v39  ;;  %6276 = vmatprep.subr.mxu1 %v3140_v29 }
 0x747   : > { %6709 = vpow2.f32 %v2171_v24  ;;  %v2202_v37 = vsel %vm790_vm0, %v8656_v3, 0.0  ;;  %6277 = vmatpush3.msra.mxu1 %v3140_v29 }
 0x748   : > { %v8660_v43 = vpop.eup %6697  ;;  %2203 = vadd.xlane.f32.xlu1 %v2202_v37  ;;  %6278 = vmatprep.subr.mxu1 %v3139_v16 }
 0x749   : > { %v2199_v7 = vsel %vm790_vm0, %v8660_v43, 0.0  ;;  %6279 = vmatpush3.msra.mxu1 %v3139_v16 }
 0x74a   : > { %v8664_v57 = vpop.eup %6699  ;;  %2200 = vadd.xlane.f32.xlu0 %v2199_v7  ;;  %6280 = vmatprep.subr.mxu1 %v3138_v36 }
 0x74b   : > { %v2208_v26 = vsel %vm790_vm0, %v8664_v57, 0.0  ;;  %6281 = vmatpush3.msra.mxu1 %v3138_v36 }
 0x74c   : > { %v8668_v44 = vpop.eup %6701  ;;  %2209 = vadd.xlane.f32.xlu1 %v2208_v26 }
 0x74d   : > { %v2205_v25 = vsel %vm790_vm0, %v8668_v44, 0.0 }
 0x74e   : > { %v8672_v45 = vpop.eup %6703  ;;  %2206 = vadd.xlane.f32.xlu0 %v2205_v25 }
 0x74f   : > { %v2214_v19 = vsel %vm790_vm0, %v8672_v45, 0.0 }
 0x750   : > { %v8676_v42 = vpop.eup %6705  ;;  %2215 = vadd.xlane.f32.xlu1 %v2214_v19 }
 0x751   : > { %v2211_v33 = vsel %vm790_vm0, %v8676_v42, 0.0 }
 0x752   : > { %v8680_v28 = vpop.eup %6707  ;;  %2212 = vadd.xlane.f32.xlu0 %v2211_v33 }
 0x753   : > { %v2220_v23 = vsel %vm790_vm0, %v8680_v28, 0.0 }
 0x754   : > { %v8684_v24 = vpop.eup %6709  ;;  %2221 = vadd.xlane.f32.xlu1 %v2220_v23 }
 0x755   : > { %v2217_v39 = vsel %vm790_vm0, %v8684_v24, 0.0 }
 0x756   : > { %2218 = vadd.xlane.f32.xlu0 %v2217_v39 }
 0x7a1   : > { %v3047_v37 = vpop.xlane.xlu1 %3046 }
 0x7a2   : > { %6711 = vrcp.f32 %v3047_v37 }
 0x7a3   : > { %v3044_v7 = vpop.xlane.xlu0 %3043 }
 0x7a4   : > { %6713 = vrcp.f32 %v3044_v7 }
 0x7a5   : > { %v3053_v26 = vpop.xlane.xlu1 %3052 }
 0x7a6   : > { %6715 = vrcp.f32 %v3053_v26 }
 0x7a7   : > { %v3050_v25 = vpop.xlane.xlu0 %3049 }
 0x7a8   : > { %6717 = vrcp.f32 %v3050_v25 }
 0x7a9   : > { %v3059_v20 = vpop.xlane.xlu1 %3058 }
 0x7aa   : > { %6719 = vrcp.f32 %v3059_v20 }
 0x7ab   : > { %v3056_v19 = vpop.xlane.xlu0 %3055 }
 0x7ac   : > { %6721 = vrcp.f32 %v3056_v19 }
 0x7ad   : > { %v3065_v13 = vpop.xlane.xlu1 %3064 }
 0x7ae   : > { %6723 = vrcp.f32 %v3065_v13 }
 0x7af   : > { %v6712_v33 = vpop.eup %6711  ;;  %v3062_v29 = vpop.xlane.xlu0 %3061 }
 0x7b0   : > { %6725 = vrcp.f32 %v3062_v29  ;;  %v3107_v23 = vmul.f32 %v6712_v33, %v8534_v53 }
 0x7b1   : > { %v6714_v16 = vpop.eup %6713  ;;  %v3071_v36 = vpop.xlane.xlu1 %3070 }
 0x7b2   : > { %6727 = vrcp.f32 %v3071_v36  ;;  %v3106_v39 = vmul.f32 %v6714_v16, %v8539_v38  ;;  %v3123_v20 = vmul.f32 %v3107_v23, %v7613_v30 }
 0x7b3   : > { %v6716_v37 = vpop.eup %6715  ;;  %v3068_v7 = vpop.xlane.xlu0 %3067 }
 0x7b4   : > { %6729 = vrcp.f32 %v3068_v7  ;;  %v3122_v26 = vmul.f32 %v3106_v39, %v7607_v22  ;;  %v3109_v13 = vmul.f32 %v6716_v37, %v8544_v59 }
 0x7b5   : > { %v6718_v25 = vpop.eup %6717  ;;  %v3077_v19 = vpop.xlane.xlu1 %3076 }
 0x7b6   : > { %6731 = vrcp.f32 %v3077_v19  ;;  %6242 = vmatprep.mubr.msk.f32.mxu0 %vm790_vm0, %v3122_v26  ;;  %v3108_v53 = vmul.f32 %v6718_v25, %v8549_v32  ;;  %v3125_v30 = vmul.f32 %v3109_v13, %v7638_v50 }
 0x7b7   : > { %v6720_v33 = vpop.eup %6719  ;;  %6243 = vmatmul.mubr.msk.f32.vlgmr.msra.gmra.mxu0 %vm790_vm0, %v3123_v20  ;;  %v3074_v38 = vpop.xlane.xlu0 %3073 }
 0x7b8   : > { %6733 = vrcp.f32 %v3074_v38  ;;  %6307 = vmatpush3.msra.mxu0 %v8621_v58  ;;  %v3124_v22 = vmul.f32 %v3108_v53, %v7641_v51  ;;  %v3111_v59 = vmul.f32 %v6720_v33, %v8554_v27 }
 0x7b9   : > { %v6722_v29 = vpop.eup %6721  ;;  %v3083_v16 = vpop.xlane.xlu1 %3082 }
 0x7ba   : > { %6735 = vrcp.f32 %v3083_v16  ;;  %6245 = vmatprep.mubr.msk.f32.mxu0 %vm790_vm0, %v3124_v22  ;;  %v3110_v32 = vmul.f32 %v6722_v29, %v8559_v41  ;;  %v3127_v37 = vmul.f32 %v3111_v59, %v7677_v35 }
 0x7bb   : > { %v6724_v23 = vpop.eup %6723  ;;  %6246 = vmatmul.mubr.msk.f32.gmra.mxu0 %vm790_vm0, %v3125_v30  ;;  %v3080_v36 = vpop.xlane.xlu0 %3079 }
 0x7bc   : > { %6737 = vrcp.f32 %v3080_v36  ;;  %v3126_v58 = vmul.f32 %v3110_v32, %v7669_v31  ;;  %v3113_v50 = vmul.f32 %v6724_v23, %v8564_v18 }
 0x7bd   : > { %v6726_v39 = vpop.eup %6725  ;;  %v3089_v51 = vpop.xlane.xlu1 %3088 }
 0x7be   : > { %6739 = vrcp.f32 %v3089_v51  ;;  %6248 = vmatprep.mubr.msk.f32.mxu0 %vm790_vm0, %v3126_v58  ;;  %v3112_v27 = vmul.f32 %v6726_v39, %v8569_v6  ;;  %v3129_v20 = vmul.f32 %v3113_v50, %v7702_v56  ;;  %v3540_v39 = vld [vmem:[%s8736_s0] sm:$0xff] }
 0x7bf   : > { %v6728_v7 = vpop.eup %6727  ;;  %6249 = vmatmul.mubr.msk.f32.gmra.mxu0 %vm790_vm0, %v3127_v37  ;;  %v3086_v41 = vpop.xlane.xlu0 %3085 }
 0x7c0   : > { %6741 = vrcp.f32 %v3086_v41  ;;  %v3128_v26 = vmul.f32 %v3112_v27, %v7705_v1  ;;  %v3115_v35 = vmul.f32 %v6728_v7, %v8574_v62 }
 0x7c1   : > { %v6730_v25 = vpop.eup %6729  ;;  %v2180_v31 = vpop.xlane.xlu1 %2179 }
 0x7c2   : > { %6743 = vrcp.f32 %v2180_v31  ;;  %6251 = vmatprep.mubr.msk.f32.mxu0 %vm790_vm0, %v3128_v26  ;;  %v3114_v18 = vmul.f32 %v6730_v25, %v8579_v11  ;;  %v3131_v33 = vmul.f32 %v3115_v35, %v7742_v47  ;;  %v3542_v26 = vld [vmem:[%s8736_s0 + $0x10] sm:$0xff] }
 0x7c3   : > { %v6732_v19 = vpop.eup %6731  ;;  %6252 = vmatmul.mubr.msk.f32.gmra.mxu0 %vm790_vm0, %v3129_v20  ;;  %v2177_v6 = vpop.xlane.xlu0 %2176  ;;  %v9597_v31 = vld [vmem:[#allocation38_spill] sm:$0xff] }
 0x7c4   : > { %6745 = vrcp.f32 %v2177_v6  ;;  %v3130_v13 = vmul.f32 %v3114_v18, %v7735_v63  ;;  %v3117_v56 = vmul.f32 %v6732_v19, %v8584_v46  ;;  %v9598_v18 = vld [vmem:[#allocation39_spill] sm:$0xff] }
 0x7c5   : > { %v6734_v53 = vpop.eup %6733  ;;  %v2186_v1 = vpop.xlane.xlu1 %2185 }
 0x7c6   : > { %6747 = vrcp.f32 %v2186_v1  ;;  %6254 = vmatprep.mubr.msk.f32.mxu0 %vm790_vm0, %v3130_v13  ;;  %v3116_v62 = vmul.f32 %v6734_v53, %v8589_v61  ;;  %v3133_v16 = vmul.f32 %v3117_v56, %v7773_v54 }
 0x7c7   : > { %v6736_v38 = vpop.eup %6735  ;;  %6255 = vmatmul.mubr.msk.f32.gmra.mxu0 %vm790_vm0, %v3131_v33  ;;  %v2183_v11 = vpop.xlane.xlu0 %2182  ;;  %v9599_v33 = vld [vmem:[#allocation27_spill] sm:$0xff] }
 0x7c8   : > { %6749 = vrcp.f32 %v2183_v11  ;;  %v3132_v22 = vmul.f32 %v3116_v62, %v7764_v4  ;;  %v3119_v47 = vmul.f32 %v6736_v38, %v8594_v40  ;;  %v3545_v62 = vld [vmem:[%s8736_s0 + $0x28] sm:$0xff]  ;;  %v9600_v11 = vld [vmem:[#allocation26_spill] sm:$0xff] }
 0x7c9   : > { %v6738_v29 = vpop.eup %6737  ;;  %v2192_v63 = vpop.xlane.xlu1 %2191 }
 0x7ca   : > { %6751 = vrcp.f32 %v2192_v63  ;;  %6257 = vmatprep.mubr.msk.f32.mxu0 %vm790_vm0, %v3132_v22  ;;  %v3118_v46 = vmul.f32 %v6738_v29, %v8599_v55  ;;  %v3135_v23 = vmul.f32 %v3119_v47, %v7798_v17 }
 0x7cb   : > { %v6740_v61 = vpop.eup %6739  ;;  %6258 = vmatmul.mubr.msk.f32.gmra.mxu0 %vm790_vm0, %v3133_v16  ;;  %v2189_v30 = vpop.xlane.xlu0 %2188 }
 0x7cc   : > { %6753 = vrcp.f32 %v2189_v30  ;;  %v3134_v59 = vmul.f32 %v3118_v46, %v7792_v15  ;;  %v3121_v54 = vmul.f32 %v6740_v61, %v8604_v8  ;;  %v9601_v46 = vld [vmem:[#allocation29_spill] sm:$0xff] }
 0x7cd   : > { %v6742_v4 = vpop.eup %6741  ;;  %v2198_v32 = vpop.xlane.xlu1 %2197 }
 0x7ce   : > { %6755 = vrcp.f32 %v2198_v32  ;;  %6260 = vmatprep.mubr.msk.f32.mxu0 %vm790_vm0, %v3134_v59  ;;  %v3120_v40 = vmul.f32 %v6742_v4, %v8609_v48  ;;  %v3137_v48 = vmul.f32 %v3121_v54, %v7820_v21  ;;  %v9602_v59 = vld [vmem:[#allocation28_spill] sm:$0xff] }
 0x7cf   : > { %v6744_v55 = vpop.eup %6743  ;;  %6261 = vmatmul.mubr.msk.f32.gmra.mxu0 %vm790_vm0, %v3135_v23  ;;  %v2195_v15 = vpop.xlane.xlu0 %2194 }
 0x7d0   : > { %6757 = vrcp.f32 %v2195_v15  ;;  %v3136_v17 = vmul.f32 %v3120_v40, %v7816_v5  ;;  %v2240_v36 = vmul.f32 %v6744_v55, %v8614_v14  ;;  %v3541_v14 = vld [vmem:[%s8736_s0 + $0x8] sm:$0xff]  ;;  %v9603_v40 = vld [vmem:[#allocation31_spill] sm:$0xff] }
 0x7d1   : > { %v6746_v8 = vpop.eup %6745  ;;  %v2204_v58 = vpop.xlane.xlu1 %2203  ;;  %v3549_v15 = vld [vmem:[%s8736_s0 + $0x48] sm:$0xff] }
 0x7d2   : > { %6759 = vrcp.f32 %v2204_v58  ;;  %6263 = vmatprep.mubr.msk.f32.mxu0 %vm790_vm0, %v3136_v17  ;;  %v2239_v51 = vmul.f32 %v6746_v8, %v8619_v10  ;;  %v2256_v27 = vmul.f32 %v2240_v36, %v7770_v52  ;;  %v3543_v52 = vld [vmem:[%s8736_s0 + $0x18] sm:$0xff]  ;;  %v9604_v8 = vld [vmem:[#allocation30_spill] sm:$0xff] }
 0x7d3   : > { %v6748_v37 = vpop.eup %6747  ;;  %6264 = vmatmul.mubr.msk.f32.gmra.mxu0 %vm790_vm0, %v3137_v48  ;;  %v2201_v50 = vpop.xlane.xlu0 %2200  ;;  %v3550_v58 = vld [vmem:[%s8736_s0 + $0x50] sm:$0xff] }
 0x7d4   : > { %6761 = vrcp.f32 %v2201_v50  ;;  %v2255_v5 = vmul.f32 %v2239_v51, %v7761_v60  ;;  %6308 = vmatprep.mubr.msk.f32.mxu0 %vm3557_vm2, %v3540_v39  ;;  %v2242_v41 = vmul.f32 %v6748_v37, %v8627_v49  ;;  %v9605_v39 = vld [vmem:[#allocation33_spill] sm:$0xff]  ;;  %v3551_v37 = vld [vmem:[%s8736_s0 + $0x58] sm:$0xff] }
 0x7d5   : > { %v6750_v21 = vpop.eup %6749  ;;  %v2210_v7 = vpop.xlane.xlu1 %2209 }
 0x7d6   : > { %6763 = vrcp.f32 %v2210_v7  ;;  %6282 = vmatprep.mubr.msk.f32.mxu1 %vm790_vm0, %v2255_v5  ;;  %v2241_v10 = vmul.f32 %v6750_v21, %v8632_v0  ;;  %v2258_v19 = vmul.f32 %v2242_v41, %v9598_v18  ;;  %v3544_v0 = vld [vmem:[%s8736_s0 + $0x20] sm:$0xff]  ;;  %v9607_v7 = vld [vmem:[#allocation35_spill] sm:$0xff] }
 0x7d7   : > { %v6752_v25 = vpop.eup %6751  ;;  %6283 = vmatmul.mubr.msk.f32.vlgmr.msra.gmra.mxu1 %vm790_vm0, %v2256_v27  ;;  %6309 = vmatmul.mubr.msk.f32.vlgmr.msra.gmra.mxu0 %vm3557_vm2, %v3541_v14  ;;  %v2207_v60 = vpop.xlane.xlu0 %2206  ;;  %v9606_v5 = vld [vmem:[#allocation32_spill] sm:$0xff] }
 0x7d8   : > { %6765 = vrcp.f32 %v2207_v60  ;;  %v2257_v20 = vmul.f32 %v2241_v10, %v9597_v31  ;;  %6311 = vmatprep.mubr.msk.f32.mxu0 %vm3557_vm2, %v3542_v26  ;;  %v2244_v6 = vmul.f32 %v6752_v25, %v8637_v34  ;;  %v3552_v21 = vld [vmem:[%s8736_s0 + $0x60] sm:$0xff]  ;;  %v3553_v26 = vld [vmem:[%s8736_s0 + $0x68] sm:$0xff]  ;;  %v9608_v25 = vld [vmem:[#allocation34_spill] sm:$0xff] }
 0x7d9   : > { %v6754_v49 = vpop.eup %6753  ;;  %v2216_v35 = vpop.xlane.xlu1 %2215  ;;  %v3554_v31 = vld [vmem:[%s8736_s0 + $0x70] sm:$0xff] }
 0x7da   : > { %6767 = vrcp.f32 %v2216_v35  ;;  %6285 = vmatprep.mubr.msk.f32.mxu1 %vm790_vm0, %v2257_v20  ;;  %v2243_v13 = vmul.f32 %v6754_v49, %v8642_v12  ;;  %v2260_v22 = vmul.f32 %v2244_v6, %v9600_v11  ;;  %v3546_v12 = vld [vmem:[%s8736_s0 + $0x30] sm:$0xff]  ;;  %v9609_v20 = vld [vmem:[#allocation36_spill] sm:$0xff]  ;;  %v3555_v49 = vld [vmem:[%s8736_s0 + $0x78] sm:$0xff] }
 0x7db   : > { %v6756_v53 = vpop.eup %6755  ;;  %6286 = vmatmul.mubr.msk.f32.gmra.mxu1 %vm790_vm0, %v2258_v19  ;;  %v2213_v1 = vpop.xlane.xlu0 %2212  ;;  %6312 = vmatmul.mubr.msk.f32.gmra.mxu0 %vm3557_vm2, %v3543_v52  ;;  %v9610_v35 = vld [vmem:[#allocation37_spill] sm:$0xff]  ;;  %v3851_v19 = vld [vmem:[%s9519_s11 + $0xe0] sm:$0xff]  ;;  %v3853_v6 = vld [vmem:[%s9519_s11 + $0xf0] sm:$0xff] }
 0x7dc   : > { %6769 = vrcp.f32 %v2213_v1  ;;  %v2259_v56 = vmul.f32 %v2243_v13, %v9599_v33  ;;  %6314 = vmatprep.mubr.msk.f32.mxu0 %vm3557_vm2, %v3544_v0  ;;  %v2246_v29 = vmul.f32 %v6756_v53, %v8647_v9  ;;  %v3547_v9 = vld [vmem:[%s8736_s0 + $0x38] sm:$0xff]  ;;  %v3848_v0 = vld [vmem:[%s9519_s11 + $0xc8] sm:$0xff]  ;;  %v3847_v53 = vld [vmem:[%s9519_s11 + $0xc0] sm:$0xff] }
 0x7dd   : > { %v6758_v34 = vpop.eup %6757  ;;  %v2222_v38 = vpop.xlane.xlu1 %2221  ;;  %v3850_v13 = vld [vmem:[%s9519_s11 + $0xd8] sm:$0xff]  ;;  %v3849_v1 = vld [vmem:[%s9519_s11 + $0xd0] sm:$0xff]  ;;  %v3844_v33 = vld [vmem:[%s9519_s11 + $0xa8] sm:$0xff] }
 0x7de   : > { %6771 = vrcp.f32 %v2222_v38  ;;  %6288 = vmatprep.mubr.msk.f32.mxu1 %vm790_vm0, %v2259_v56  ;;  %v2245_v63 = vmul.f32 %v6758_v34, %v8652_v2  ;;  %v2262_v4 = vmul.f32 %v2246_v29, %v9602_v59  ;;  %v3548_v2 = vld [vmem:[%s8736_s0 + $0x40] sm:$0xff]  ;;  %v3846_v56 = vld [vmem:[%s9519_s11 + $0xb8] sm:$0xff]  ;;  %v3845_v34 = vld [vmem:[%s9519_s11 + $0xb0] sm:$0xff]  ;;  %s9611_s0 = sld [smem:[#allocation45_spill]] }
 0x7df   : > { %v6760_v16 = vpop.eup %6759  ;;  %6289 = vmatmul.mubr.msk.f32.gmra.mxu1 %vm790_vm0, %v2260_v22  ;;  %v2219_v47 = vpop.xlane.xlu0 %2218  ;;  %6315 = vmatmul.mubr.msk.f32.gmra.mxu0 %vm3557_vm2, %v3545_v62  ;;  %v3843_v62 = vld [vmem:[%s9519_s11 + $0xa0] sm:$0xff]  ;;  %v3840_v38 = vld [vmem:[%s9519_s11 + $0x88] sm:$0xff]  ;;  %v3842_v11 = vld [vmem:[%s9519_s11 + $0x98] sm:$0xff] }
 0x7e0   : > { %6773 = vrcp.f32 %v2219_v47  ;;  %v2261_v61 = vmul.f32 %v2245_v63, %v9601_v46  ;;  %6317 = vmatprep.mubr.msk.f32.mxu0 %vm3557_vm2, %v3546_v12  ;;  %v2248_v32 = vmul.f32 %v6760_v16, %v8656_v3  ;;  %v3839_v22 = vld [vmem:[%s9519_s11 + $0x80] sm:$0xff]  ;;  %v3841_v29 = vld [vmem:[%s9519_s11 + $0x90] sm:$0xff]  ;;  %v3836_v12 = vld [vmem:[%s9519_s11 + $0x68] sm:$0xff] }
 0x7e1   : > { %v6762_v30 = vpop.eup %6761  ;;  %v3838_v63 = vld [vmem:[%s9519_s11 + $0x78] sm:$0xff]  ;;  %v3835_v16 = vld [vmem:[%s9519_s11 + $0x60] sm:$0xff]  ;;  %v3837_v47 = vld [vmem:[%s9519_s11 + $0x70] sm:$0xff] }
 0x7e2   : > { %6291 = vmatprep.mubr.msk.f32.mxu1 %vm790_vm0, %v2261_v61  ;;  %v2247_v23 = vmul.f32 %v6762_v30, %v8660_v43  ;;  %v2264_v3 = vmul.f32 %v2248_v32, %v9604_v8  ;;  %v3832_v46 = vld [vmem:[%s9519_s11 + $0x48] sm:$0xff]  ;;  %v3834_v61 = vld [vmem:[%s9519_s11 + $0x58] sm:$0xff]  ;;  %v3833_v30 = vld [vmem:[%s9519_s11 + $0x50] sm:$0xff] }
 0x7e3   : > { %v6764_v54 = vpop.eup %6763  ;;  %6292 = vmatmul.mubr.msk.f32.gmra.mxu1 %vm790_vm0, %v2262_v4  ;;  %6318 = vmatmul.mubr.msk.f32.gmra.mxu0 %vm3557_vm2, %v3547_v9  ;;  %v3831_v9 = vld [vmem:[%s9519_s11 + $0x40] sm:$0xff]  ;;  %v3828_v59 = vld [vmem:[%s9519_s11 + $0x28] sm:$0xff]  ;;  %v3830_v4 = vld [vmem:[%s9519_s11 + $0x38] sm:$0xff] }
 0x7e4   : > { %v2263_v55 = vmul.f32 %v2247_v23, %v9603_v40  ;;  %6320 = vmatprep.mubr.msk.f32.mxu0 %vm3557_vm2, %v3548_v2  ;;  %v2250_v36 = vmul.f32 %v6764_v54, %v8664_v57  ;;  %v3827_v32 = vld [vmem:[%s9519_s11 + $0x20] sm:$0xff]  ;;  %v3829_v2 = vld [vmem:[%s9519_s11 + $0x30] sm:$0xff]  ;;  %v3824_v23 = vld [vmem:[%s9519_s11 + $0x8] sm:$0xff]  ;;  %s9612_s22 = smov %s9611_s0  ;;  %s9460_s2 = scalar_lea.hbm %s9611_s0, %s5456_s24 }
 0x7e5   : > { %v6766_v17 = vpop.eup %6765  ;;  %v3826_v54 = vld [vmem:[%s9519_s11 + $0x18] sm:$0xff]  ;;  %v3823_v40 = vld [vmem:[%s9519_s11] sm:$0xff] }
 0x7e6   : > { %6294 = vmatprep.mubr.msk.f32.mxu1 %vm790_vm0, %v2263_v55  ;;  %v2249_v43 = vmul.f32 %v6766_v17, %v8668_v44  ;;  %v2266_v57 = vmul.f32 %v2250_v36, %v9606_v5  ;;  %v3825_v55 = vld [vmem:[%s9519_s11 + $0x10] sm:$0xff]  ;;  %v4490_v17 = vld [vmem:[%s9520_s12 + $0xf8] sm:$0xff] }
 0x7e7   : > { %v6768_v48 = vpop.eup %6767  ;;  %6295 = vmatmul.mubr.msk.f32.gmra.mxu1 %vm790_vm0, %v2264_v3  ;;  %6321 = vmatmul.mubr.msk.f32.gmra.mxu0 %vm3557_vm2, %v3549_v15  ;;  %v7052_v15 = vmov 0.0   ;;  %v4522_v8 = vld [vmem:[%s9520_s12 + $0x1f8] sm:$0xff] }
 0x7e8   : > { %v2265_v51 = vmul.f32 %v2249_v43, %v9605_v39  ;;  %6323 = vmatprep.mubr.msk.f32.mxu0 %vm3557_vm2, %v3550_v58  ;;  %v2252_v14 = vmul.f32 %v6768_v48, %v8672_v45 }
 0x7e9   : > { %v6770_v50 = vpop.eup %6769 }
 0x7ea   : > { %6297 = vmatprep.mubr.msk.f32.mxu1 %vm790_vm0, %v2265_v51  ;;  %v2251_v44 = vmul.f32 %v6770_v50, %v8676_v42  ;;  %v2268_v60 = vmul.f32 %v2252_v14, %v9608_v25 }
 0x7eb   : > { %v6772_v27 = vpop.eup %6771  ;;  %6298 = vmatmul.mubr.msk.f32.gmra.mxu1 %vm790_vm0, %v2266_v57  ;;  %6324 = vmatmul.mubr.msk.f32.gmra.mxu0 %vm3557_vm2, %v3551_v37 }
 0x7ec   : > { %v2267_v41 = vmul.f32 %v2251_v44, %v9607_v7  ;;  %6326 = vmatprep.mubr.msk.f32.mxu0 %vm3557_vm2, %v3552_v21  ;;  %v2254_v45 = vmul.f32 %v6772_v27, %v8680_v28  ;;  %v3852_v28 = vld [vmem:[%s9519_s11 + $0xe8] sm:$0xff] }
 0x7ed   : > { %v6774_v10 = vpop.eup %6773  ;;  %3919 = vmatprep.subr.mxu1 %v3852_v28 }
 0x7ee   : > { %6300 = vmatprep.mubr.msk.f32.mxu1 %vm790_vm0, %v2267_v41  ;;  %v2253_v42 = vmul.f32 %v6774_v10, %v8684_v24  ;;  %v2270_v18 = vmul.f32 %v2254_v45, %v9610_v35  ;;  %v3854_v24 = vld [vmem:[%s9519_s11 + $0xf8] sm:$0xff]  ;;  %3920 = vmatpush1.msra.mxu1 %v3851_v19 }
 0x7ef   : > { %6301 = vmatmul.mubr.msk.f32.gmra.mxu1 %vm790_vm0, %v2268_v60  ;;  %6327 = vmatmul.mubr.msk.f32.gmra.mxu0 %vm3557_vm2, %v3553_v26 }
 0x7f0   : > { %v2269_v52 = vmul.f32 %v2253_v42, %v9609_v20  ;;  %6329 = vmatprep.mubr.msk.f32.mxu0 %vm3557_vm2, %v3554_v31  ;;  %4080 = vmatprep.subr.mxu0 %v3854_v24  ;;  %v8950_v42 = vld [vmem:[%s9522_s14 + $0x7] ss:$0 sm:$0xff] }
 0x7f1   : > { %4081 = vmatpush1.msra.mxu0 %v3853_v6  ;;  %3921 = vmatprep.subr.mxu1 %v3848_v0  ;;  %v8957_v0 = vld [vmem:[%s9522_s14 + $0x8] ss:$0 sm:$0xff] }
 0x7f2   : > { %6303 = vmatprep.mubr.msk.f32.mxu1 %vm790_vm0, %v2269_v52  ;;  %4082 = vmatprep.subr.mxu0 %v3850_v13 }
 0x7f3   : > { %6304 = vmatmul.mubr.msk.f32.gmra.mxu1 %vm790_vm0, %v2270_v18  ;;  %6330 = vmatmul.mubr.msk.f32.gmra.mxu0 %vm3557_vm2, %v3555_v49 }
 0x7f4   : > { %3922 = vmatpush1.msra.mxu1 %v3847_v53  ;;  %4083 = vmatpush1.msra.mxu0 %v3849_v1 }
 0x7f5   : > { %3923 = vmatprep.subr.mxu1 %v3844_v33  ;;  %4084 = vmatprep.subr.mxu0 %v3846_v56 }
 0x7f6   : > { %3924 = vmatpush1.msra.mxu1 %v3843_v62  ;;  %4085 = vmatpush1.msra.mxu0 %v3845_v34 }
 0x7f7   : > { %3925 = vmatprep.subr.mxu1 %v3840_v38  ;;  %4086 = vmatprep.subr.mxu0 %v3842_v11 }
 0x7f8   : > { %3926 = vmatpush1.msra.mxu1 %v3839_v22  ;;  %4087 = vmatpush1.msra.mxu0 %v3841_v29 }
 0x7f9   : > { %3927 = vmatprep.subr.mxu1 %v3836_v12  ;;  %4088 = vmatprep.subr.mxu0 %v3838_v63  ;;  %v4474_v63 = vld [vmem:[%s9520_s12 + $0x78] sm:$0xff] }
 0x7fa   : > { %3928 = vmatpush1.msra.mxu1 %v3835_v16  ;;  %4089 = vmatpush1.msra.mxu0 %v3837_v47  ;;  %v4506_v16 = vld [vmem:[%s9520_s12 + $0x178] sm:$0xff]  ;;  %v4489_v47 = vld [vmem:[%s9520_s12 + $0xf0] sm:$0xff] }
 0x7fb   : > { %3929 = vmatprep.subr.mxu1 %v3832_v46  ;;  %4090 = vmatprep.subr.mxu0 %v3834_v61 }
 0x7fc   : > { %3930 = vmatpush1.msra.mxu1 %v3831_v9  ;;  %4091 = vmatpush1.msra.mxu0 %v3833_v30 }
 0x7fd   : > { %3931 = vmatprep.subr.mxu1 %v3828_v59  ;;  %4092 = vmatprep.subr.mxu0 %v3830_v4 }
 0x7fe   : > { %3932 = vmatpush1.msra.mxu1 %v3827_v32  ;;  %4093 = vmatpush1.msra.mxu0 %v3829_v2  ;;  %v4521_v2 = vld [vmem:[%s9520_s12 + $0x1f0] sm:$0xff] }
 0x7ff   : > { %3933 = vmatprep.subr.mxu1 %v3824_v23  ;;  %4094 = vmatprep.subr.mxu0 %v3826_v54  ;;  %v4473_v23 = vld [vmem:[%s9520_s12 + $0x70] sm:$0xff] }
 0x800   : > { %3934 = vmatpush1.msra.mxu1 %v3823_v40  ;;  %4095 = vmatpush1.msra.mxu0 %v3825_v55  ;;  %v4505_v54 = vld [vmem:[%s9520_s12 + $0x170] sm:$0xff]  ;;  %v4488_v40 = vld [vmem:[%s9520_s12 + $0xe8] sm:$0xff] }
 0x801   : > { %3967 = vmatprep.mubr.f32.mxu1 %v7052_v15  ;;  %4128 = vmatprep.mubr.f32.mxu0 %v7052_v15 }
 0x802   : > { %5714 = vmatprep.subr.mxu1 %v4490_v17  ;;  %5794 = vmatprep.subr.mxu0 %v4522_v8 }
 0x877   : > { %v6244_v3 = vpop.f32.mrf.mxu0 }
 0x879   : > { %v3268_v36 = vpop.f32.mrf.mxu0 }
 0x87b   : > { %v6247_v58 = vpop.f32.mrf.mxu0 }
 0x87d   : > { %v3278_v43 = vpop.f32.mrf.mxu0 }
 0x87f   : > { %v6250_v48 = vpop.f32.mrf.mxu0 }
 0x881   : > { %v3288_v39 = vpop.f32.mrf.mxu0 }
 0x883   : > { %v8927_v51 = vpop.f32.mrf.mxu0 }
 0x885   : > { %v8929_v37 = vpop.f32.mrf.mxu0 }
 0x887   : > { %v8931_v50 = vpop.f32.mrf.mxu0 }
 0x889   : > { %v8933_v5 = vpop.f32.mrf.mxu0 }
 0x88b   : > { %v8935_v57 = vpop.f32.mrf.mxu0 }
 0x88d   : > { %v8937_v14 = vpop.f32.mrf.mxu0 }
 0x88f   : > { %v8939_v21 = vpop.f32.mrf.mxu0 }
 0x891   : > { %v8941_v44 = vpop.f32.mrf.mxu0 }
 0x893   : > { %v8943_v27 = vpop.f32.mrf.mxu0 }
 0x895   : > { %v8945_v7 = vpop.f32.mrf.mxu0 }
 0x897   : > { %v6284_v41 = vpop.f32.mrf.mxu1  ;;  %v6310_v26 = vpop.f32.mrf.mxu0 }
 0x898   : > { %v3467_v10 = vadd.f32 %v6284_v41, %v6244_v3 }
 0x899   : > { %v3461_v25 = vpop.f32.mrf.mxu1  ;;  %v3672_v60 = vpop.f32.mrf.mxu0 }
 0x89a   : > { %v3752_v45 = vadd.f32 %v6310_v26, %v3467_v10  ;;  %v3462_v31 = vadd.f32 %v3461_v25, %v3268_v36 }
 0x89b   : > { %v6287_v20 = vpop.f32.mrf.mxu1  ;;  %v6313_v52 = vpop.f32.mrf.mxu0 }
 0x89c   : > { %v3751_v49 = vadd.f32 %v3672_v60, %v3462_v31  ;;  %v3772_v28 = vmul.f32 %v8950_v42, %v3752_v45  ;;  %v3477_v19 = vadd.f32 %v6287_v20, %v6247_v58  ;;  %v4487_v20 = vld [vmem:[%s9520_s12 + $0xe0] sm:$0xff] }
 0x89d   : > { %v3471_v35 = vpop.f32.mrf.mxu1  ;;  %v3682_v18 = vpop.f32.mrf.mxu0 }
 0x89e   : > { %v3771_v24 = vmul.f32 %v8950_v42, %v3751_v49  ;;  %v3472_v6 = vadd.f32 %v3471_v35, %v3278_v43  ;;  %v3792_v62 = vadd.f32 %v8957_v0, %v3772_v28  ;;  %v3754_v38 = vadd.f32 %v6313_v52, %v3477_v19  ;;  %v4519_v52 = vld [vmem:[%s9520_s12 + $0x1e0] sm:$0xff] }
 0x89f   : > { %v6290_v13 = vpop.f32.mrf.mxu1  ;;  %v6316_v53 = vpop.f32.mrf.mxu0  ;;  %v4503_v49 = vld [vmem:[%s9520_s12 + $0x160] sm:$0xff] }
 0x8a0   : > { %v3791_v1 = vadd.f32 %v8957_v0, %v3771_v24  ;;  %v3753_v33 = vadd.f32 %v3682_v18, %v3472_v6  ;;  %v3487_v46 = vadd.f32 %v6290_v13, %v6250_v48  ;;  %v3808_v61 = vmax.f32 %v3792_v62, 0.0  ;;  %v4520_v48 = vld [vmem:[%s9520_s12 + $0x1e8] sm:$0xff] }
 0x8a1   : > { %v3481_v56 = vpop.f32.mrf.mxu1  ;;  %v3692_v12 = vpop.f32.mrf.mxu0  ;;  %v3774_v9 = vmul.f32 %v8950_v42, %v3754_v38 }
 0x8a2   : > { %v3807_v34 = vmax.f32 %v3791_v1, 0.0  ;;  %v3482_v11 = vadd.f32 %v3481_v56, %v3288_v39  ;;  %v3773_v22 = vmul.f32 %v8950_v42, %v3753_v33  ;;  %v3756_v55 = vadd.f32 %v6316_v53, %v3487_v46  ;;  %v4472_v39 = vld [vmem:[%s9520_s12 + $0x68] sm:$0xff]  ;;  %v4486_v53 = vld [vmem:[%s9520_s12 + $0xd8] sm:$0xff] }
 0x8a3   : > { %v6293_v29 = vpop.f32.mrf.mxu1  ;;  %v6319_v32 = vpop.f32.mrf.mxu0  ;;  %v3794_v17 = vadd.f32 %v8957_v0, %v3774_v9  ;;  %v4518_v1 = vld [vmem:[%s9520_s12 + $0x1d8] sm:$0xff] }
 0x8a4   : > { %5416 = vmatmul.mubr.msk.f32.vlgmr.msra.gmra.mxu1 %vm790_vm0, %v3807_v34  ;;  %5432 = vmatmul.mubr.msk.f32.vlgmr.msra.gmra.mxu0 %vm790_vm0, %v3807_v34  ;;  %v3793_v30 = vadd.f32 %v8957_v0, %v3773_v22  ;;  %v3755_v59 = vadd.f32 %v3692_v12, %v3482_v11  ;;  %v3776_v41 = vmul.f32 %v8950_v42, %v3756_v55  ;;  %v4517_v12 = vld [vmem:[%s9520_s12 + $0x1d0] sm:$0xff] }
 0x8a5   : > { %3973 = vmatprep.mubr.f32.mxu1 %v7052_v15  ;;  %4134 = vmatprep.mubr.f32.mxu0 %v7052_v15  ;;  %v3491_v4 = vpop.f32.mrf.mxu1  ;;  %v3702_v43 = vpop.f32.mrf.mxu0  ;;  %v3810_v26 = vmax.f32 %v3794_v17, 0.0  ;;  %v3497_v10 = vadd.f32 %v6293_v29, %v8927_v51  ;;  %v4471_v51 = vld [vmem:[%s9520_s12 + $0x60] sm:$0xff]  ;;  %v4502_v29 = vld [vmem:[%s9520_s12 + $0x158] sm:$0xff] }
 0x8a6   : > { %5715 = vmatpush3.msra.mxu1 %v4474_v63  ;;  %5795 = vmatpush3.msra.mxu0 %v4506_v16  ;;  %v3809_v8 = vmax.f32 %v3793_v30, 0.0  ;;  %v3775_v3 = vmul.f32 %v8950_v42, %v3755_v59  ;;  %v3492_v36 = vadd.f32 %v3491_v4, %v8929_v37  ;;  %v4504_v37 = vld [vmem:[%s9520_s12 + $0x168] sm:$0xff]  ;;  %v3796_v35 = vadd.f32 %v8957_v0, %v3776_v41  ;;  %v4469_v63 = vld [vmem:[%s9520_s12 + $0x50] sm:$0xff] }
 0x8a7   : > { %5716 = vmatprep.subr.mxu1 %v4489_v47  ;;  %5796 = vmatprep.subr.mxu0 %v4521_v2  ;;  %v6296_v58 = vpop.f32.mrf.mxu1  ;;  %v6322_v31 = vpop.f32.mrf.mxu0  ;;  %v3758_v28 = vadd.f32 %v6319_v32, %v3497_v10  ;;  %v4501_v4 = vld [vmem:[%s9520_s12 + $0x150] sm:$0xff]  ;;  %v4484_v32 = vld [vmem:[%s9520_s12 + $0xc8] sm:$0xff] }
 0x8a8   : > { %5417 = vmatmul.mubr.msk.f32.gmra.mxu1 %vm790_vm0, %v3808_v61  ;;  %5433 = vmatmul.mubr.msk.f32.gmra.mxu0 %vm790_vm0, %v3808_v61  ;;  %v3795_v25 = vadd.f32 %v8957_v0, %v3775_v3  ;;  %v3757_v60 = vadd.f32 %v3702_v43, %v3492_v36  ;;  %v3507_v33 = vadd.f32 %v6296_v58, %v8931_v50  ;;  %v3812_v56 = vmax.f32 %v3796_v35, 0.0  ;;  %v4485_v50 = vld [vmem:[%s9520_s12 + $0xd0] sm:$0xff]  ;;  %v4468_v2 = vld [vmem:[%s9520_s12 + $0x48] sm:$0xff]  ;;  %v4483_v58 = vld [vmem:[%s9520_s12 + $0xc0] sm:$0xff] }
 0x8a9   : > { %3979 = vmatprep.mubr.f32.mxu1 %v7052_v15  ;;  %4140 = vmatprep.mubr.f32.mxu0 %v7052_v15  ;;  %v3501_v45 = vpop.f32.mrf.mxu1  ;;  %v3712_v13 = vpop.f32.mrf.mxu0  ;;  %v3778_v62 = vmul.f32 %v8950_v42, %v3758_v28  ;;  %v4500_v36 = vld [vmem:[%s9520_s12 + $0x148] sm:$0xff]  ;;  %v4467_v43 = vld [vmem:[%s9520_s12 + $0x40] sm:$0xff] }
 0x8aa   : > { %5717 = vmatpush3.msra.mxu1 %v4473_v23  ;;  %5797 = vmatpush3.msra.mxu0 %v4505_v54  ;;  %v3811_v18 = vmax.f32 %v3795_v25, 0.0  ;;  %v3777_v24 = vmul.f32 %v8950_v42, %v3757_v60  ;;  %v3502_v19 = vadd.f32 %v3501_v45, %v8933_v5  ;;  %v4470_v5 = vld [vmem:[%s9520_s12 + $0x58] sm:$0xff]  ;;  %v3760_v16 = vadd.f32 %v6322_v31, %v3507_v33  ;;  %v4499_v60 = vld [vmem:[%s9520_s12 + $0x140] sm:$0xff] }
 0x8ab   : > { %5718 = vmatprep.subr.mxu1 %v4488_v40  ;;  %5798 = vmatprep.subr.mxu0 %v4520_v48  ;;  %v6299_v6 = vpop.f32.mrf.mxu1  ;;  %v6325_v22 = vpop.f32.mrf.mxu0  ;;  %v3798_v47 = vadd.f32 %v8957_v0, %v3778_v62  ;;  %v4482_v45 = vld [vmem:[%s9520_s12 + $0xb8] sm:$0xff]  ;;  %v4497_v62 = vld [vmem:[%s9520_s12 + $0x130] sm:$0xff] }
 0x8ac   : > { %5418 = vmatmul.mubr.msk.f32.gmra.mxu1 %vm790_vm0, %v3809_v8  ;;  %5434 = vmatmul.mubr.msk.f32.gmra.mxu0 %vm790_vm0, %v3809_v8  ;;  %v3797_v34 = vadd.f32 %v8957_v0, %v3777_v24  ;;  %v3759_v38 = vadd.f32 %v3712_v13, %v3502_v19  ;;  %v3780_v23 = vmul.f32 %v8950_v42, %v3760_v16  ;;  %v4466_v31 = vld [vmem:[%s9520_s12 + $0x38] sm:$0xff]  ;;  %v4481_v24 = vld [vmem:[%s9520_s12 + $0xb0] sm:$0xff]  ;;  %v4479_v16 = vld [vmem:[%s9520_s12 + $0xa0] sm:$0xff] }
 0x8ad   : > { %3985 = vmatprep.mubr.f32.mxu1 %v7052_v15  ;;  %4146 = vmatprep.mubr.f32.mxu0 %v7052_v15  ;;  %v3511_v11 = vpop.f32.mrf.mxu1  ;;  %v3722_v59 = vpop.f32.mrf.mxu0  ;;  %v3814_v54 = vmax.f32 %v3798_v47, 0.0  ;;  %v3517_v40 = vadd.f32 %v6299_v6, %v8935_v57  ;;  %v4515_v57 = vld [vmem:[%s9520_s12 + $0x1c0] sm:$0xff]  ;;  %v4513_v19 = vld [vmem:[%s9520_s12 + $0x1b0] sm:$0xff] }
 0x8ae   : > { %5719 = vmatpush3.msra.mxu1 %v4472_v39  ;;  %5799 = vmatpush3.msra.mxu0 %v4504_v37  ;;  %v3813_v46 = vmax.f32 %v3797_v34, 0.0  ;;  %v3779_v61 = vmul.f32 %v8950_v42, %v3759_v38  ;;  %v3512_v9 = vadd.f32 %v3511_v11, %v8937_v14  ;;  %v4516_v14 = vld [vmem:[%s9520_s12 + $0x1c8] sm:$0xff]  ;;  %v3800_v48 = vadd.f32 %v8957_v0, %v3780_v23  ;;  %v4465_v6 = vld [vmem:[%s9520_s12 + $0x30] sm:$0xff]  ;;  %v4463_v47 = vld [vmem:[%s9520_s12 + $0x20] sm:$0xff] }
 0x8af   : > { %5720 = vmatprep.subr.mxu1 %v4487_v20  ;;  %5800 = vmatprep.subr.mxu0 %v4519_v52  ;;  %v6302_v30 = vpop.f32.mrf.mxu1  ;;  %v6328_v3 = vpop.f32.mrf.mxu0  ;;  %v3762_v37 = vadd.f32 %v6325_v22, %v3517_v40  ;;  %v4480_v34 = vld [vmem:[%s9520_s12 + $0xa8] sm:$0xff]  ;;  %v4494_v40 = vld [vmem:[%s9520_s12 + $0x118] sm:$0xff] }
 0x8b0   : > { %5419 = vmatmul.mubr.msk.f32.gmra.mxu1 %vm790_vm0, %v3810_v26  ;;  %5435 = vmatmul.mubr.msk.f32.gmra.mxu0 %vm790_vm0, %v3810_v26  ;;  %v3799_v55 = vadd.f32 %v8957_v0, %v3779_v61  ;;  %v3761_v17 = vadd.f32 %v3722_v59, %v3512_v9  ;;  %v3527_v20 = vadd.f32 %v6302_v30, %v8939_v21  ;;  %v3816_v52 = vmax.f32 %v3800_v48, 0.0  ;;  %v4498_v21 = vld [vmem:[%s9520_s12 + $0x138] sm:$0xff]  ;;  %v4464_v38 = vld [vmem:[%s9520_s12 + $0x28] sm:$0xff]  ;;  %v4495_v59 = vld [vmem:[%s9520_s12 + $0x120] sm:$0xff] }
 0x8b1   : > { %3991 = vmatprep.mubr.f32.mxu1 %v7052_v15  ;;  %4152 = vmatprep.mubr.f32.mxu0 %v7052_v15  ;;  %v3521_v8 = vpop.f32.mrf.mxu1  ;;  %v3732_v25 = vpop.f32.mrf.mxu0  ;;  %v4475_v48 = vld [vmem:[%s9520_s12 + $0x80] sm:$0xff] }
 0x8b2   : > { %5721 = vmatpush3.msra.mxu1 %v4471_v51  ;;  %5801 = vmatpush3.msra.mxu0 %v4503_v49  ;;  %v3815_v39 = vmax.f32 %v3799_v55, 0.0  ;;  %v3781_v41 = vmul.f32 %v8950_v42, %v3761_v17  ;;  %v3522_v26 = vadd.f32 %v3521_v8, %v8941_v44  ;;  %v4514_v44 = vld [vmem:[%s9520_s12 + $0x1b8] sm:$0xff]  ;;  %v3782_v51 = vmul.f32 %v8950_v42, %v3762_v37  ;;  %v4477_v55 = vld [vmem:[%s9520_s12 + $0x90] sm:$0xff]  ;;  %v4459_v37 = vld [vmem:[%s9520_s12] sm:$0xff] }
 0x8b3   : > { %5722 = vmatprep.subr.mxu1 %v4486_v53  ;;  %5802 = vmatprep.subr.mxu0 %v4518_v1  ;;  %v6305_v10 = vpop.f32.mrf.mxu1  ;;  %v6331_v28 = vpop.f32.mrf.mxu0  ;;  %v3764_v13 = vadd.f32 %v6328_v3, %v3527_v20  ;;  %v4461_v17 = vld [vmem:[%s9520_s12 + $0x10] sm:$0xff] }
 0x8b4   : > { %5420 = vmatmul.mubr.msk.f32.gmra.mxu1 %vm790_vm0, %v3811_v18  ;;  %5436 = vmatmul.mubr.msk.f32.gmra.mxu0 %vm790_vm0, %v3811_v18  ;;  %v3801_v49 = vadd.f32 %v8957_v0, %v3781_v41  ;;  %v3763_v35 = vadd.f32 %v3732_v25, %v3522_v26  ;;  %v3802_v53 = vadd.f32 %v8957_v0, %v3782_v51  ;;  %v4491_v41 = vld [vmem:[%s9520_s12 + $0x100] sm:$0xff] }
 0x8b5   : > { %3997 = vmatprep.mubr.f32.mxu1 %v7052_v15  ;;  %4158 = vmatprep.mubr.f32.mxu0 %v7052_v15  ;;  %v3531_v18 = vpop.f32.mrf.mxu1  ;;  %v3784_v11 = vmul.f32 %v8950_v42, %v3764_v13  ;;  %v4884_v26 = vld [vmem:[#allocation11 + $0x78] sm:$0xff] }
 0x8b6   : > { %5723 = vmatpush3.msra.mxu1 %v4470_v5  ;;  %5803 = vmatpush3.msra.mxu0 %v4502_v29  ;;  %v3817_v1 = vmax.f32 %v3801_v49, 0.0  ;;  %v3783_v5 = vmul.f32 %v8950_v42, %v3763_v35  ;;  %v3532_v33 = vadd.f32 %v3531_v18, %v8945_v7  ;;  %v4512_v7 = vld [vmem:[%s9520_s12 + $0x1a8] sm:$0xff]  ;;  %v3818_v22 = vmax.f32 %v3802_v53, 0.0 }
 0x8b7   : > { %5724 = vmatprep.subr.mxu1 %v4485_v50  ;;  %5804 = vmatprep.subr.mxu0 %v4517_v12  ;;  %v3537_v29 = vadd.f32 %v6305_v10, %v8943_v27  ;;  %v4511_v27 = vld [vmem:[%s9520_s12 + $0x1a0] sm:$0xff]  ;;  %v4226_v10 = vlaneseq }
 0x8b8   : > { %5421 = vmatmul.mubr.msk.f32.gmra.mxu1 %vm790_vm0, %v3812_v56  ;;  %5437 = vmatmul.mubr.msk.f32.gmra.mxu0 %vm790_vm0, %v3812_v56  ;;  %v3742_v56 = vpop.f32.mrf.mxu0  ;;  %v3803_v50 = vadd.f32 %v8957_v0, %v3783_v5 }
 0x8b9   : > { %4003 = vmatprep.mubr.f32.mxu1 %v7052_v15  ;;  %4164 = vmatprep.mubr.f32.mxu0 %v7052_v15  ;;  %v3765_v12 = vadd.f32 %v3742_v56, %v3532_v33  ;;  %v3766_v9 = vadd.f32 %v6331_v28, %v3537_v29  ;;  %v4227_v25 = vshrl.u32 %v4226_v10, 7 }
 0x8ba   : > { %5725 = vmatpush3.msra.mxu1 %v4469_v63  ;;  %5805 = vmatpush3.msra.mxu0 %v4501_v4  ;;  %v4496_v63 = vld [vmem:[%s9520_s12 + $0x128] sm:$0xff]  ;;  %v3819_v61 = vmax.f32 %v3803_v50, 0.0  ;;  %v4478_v4 = vld [vmem:[%s9520_s12 + $0x98] sm:$0xff] }
 0x8bb   : > { %5726 = vmatprep.subr.mxu1 %v4484_v32  ;;  %5806 = vmatprep.subr.mxu0 %v4516_v14  ;;  %v3785_v30 = vmul.f32 %v8950_v42, %v3765_v12  ;;  %v4510_v32 = vld [vmem:[%s9520_s12 + $0x198] sm:$0xff]  ;;  %v3786_v23 = vmul.f32 %v8950_v42, %v3766_v9  ;;  %v4509_v42 = vld [vmem:[%s9520_s12 + $0x190] sm:$0xff]  ;;  %v4240_v20 = vsub.s32 3, %v4227_v25 }
 0x8bc   : > { %5422 = vmatmul.mubr.msk.f32.gmra.mxu1 %vm790_vm0, %v3813_v46  ;;  %5438 = vmatmul.mubr.msk.f32.gmra.mxu0 %vm790_vm0, %v3813_v46  ;;  %v3804_v46 = vadd.f32 %v8957_v0, %v3784_v11  ;;  %v4462_v14 = vld [vmem:[%s9520_s12 + $0x18] sm:$0xff] }
 0x8bd   : > { %4009 = vmatprep.mubr.f32.mxu1 %v7052_v15  ;;  %4170 = vmatprep.mubr.f32.mxu0 %v7052_v15  ;;  %v3806_v8 = vadd.f32 %v8957_v0, %v3786_v23 }
 0x8be   : > { %5727 = vmatpush3.msra.mxu1 %v4468_v2  ;;  %5807 = vmatpush3.msra.mxu0 %v4500_v36  ;;  %v3820_v2 = vmax.f32 %v3804_v46, 0.0  ;;  %v4493_v36 = vld [vmem:[%s9520_s12 + $0x110] sm:$0xff] }
 0x8bf   : > { %5728 = vmatprep.subr.mxu1 %v4483_v58  ;;  %5808 = vmatprep.subr.mxu0 %v4515_v57  ;;  %v3822_v58 = vmax.f32 %v3806_v8, 0.0  ;;  %v4508_v57 = vld [vmem:[%s9520_s12 + $0x188] sm:$0xff] }
 0x8c0   : > { %5423 = vmatmul.mubr.msk.f32.gmra.mxu1 %vm790_vm0, %v3814_v54  ;;  %5439 = vmatmul.mubr.msk.f32.gmra.mxu0 %vm790_vm0, %v3814_v54  ;;  %v3805_v54 = vadd.f32 %v8957_v0, %v3785_v30  ;;  %v4476_v0 = vld [vmem:[%s9520_s12 + $0x88] sm:$0xff] }
 0x8c1   : > { %4015 = vmatprep.mubr.f32.mxu1 %v7052_v15  ;;  %4176 = vmatprep.mubr.f32.mxu0 %v7052_v15 }
 0x8c2   : > { %5729 = vmatpush3.msra.mxu1 %v4467_v43  ;;  %5809 = vmatpush3.msra.mxu0 %v4499_v60  ;;  %v3821_v3 = vmax.f32 %v3805_v54, 0.0  ;;  %v4492_v43 = vld [vmem:[%s9520_s12 + $0x108] sm:$0xff]  ;;  %v4228_v60 = vsub.s32 0, %v4227_v25 }
 0x8c3   : > { %5730 = vmatprep.subr.mxu1 %v4482_v45  ;;  %5810 = vmatprep.subr.mxu0 %v4514_v44  ;;  %v4236_v45 = vsub.s32 2, %v4227_v25  ;;  %v756_v44 = vld [vmem:[#allocation13] ss:$2 sm:$0xf] }
 0x8c4   : > { %5424 = vmatmul.mubr.msk.f32.gmra.mxu1 %vm790_vm0, %v3815_v39  ;;  %5440 = vmatmul.mubr.msk.f32.gmra.mxu0 %vm790_vm0, %v3815_v39  ;;  %v4507_v39 = vld [vmem:[%s9520_s12 + $0x180] sm:$0xff]  ;;  %v9247_v51 = vrot.slane %v756_v44, %v4228_v60  ;;  %v9253_v18 = vrot.slane %v756_v44, %v4240_v20 }
 0x8c5   : > { %4021 = vmatprep.mubr.f32.mxu1 %v7052_v15  ;;  %4182 = vmatprep.mubr.f32.mxu0 %v7052_v15  ;;  %v9249_v49 = vrot.slane %v756_v44, %v4236_v45 }
 0x8c6   : > { %5731 = vmatpush3.msra.mxu1 %v4466_v31  ;;  %5811 = vmatpush3.msra.mxu0 %v4498_v21  ;;  %v4232_v31 = vsub.s32 1, %v4227_v25 }
 0x8c7   : > { %5732 = vmatprep.subr.mxu1 %v4481_v24  ;;  %5812 = vmatprep.subr.mxu0 %v4513_v19 }
 0x8c8   : > { %5425 = vmatmul.mubr.msk.f32.gmra.mxu1 %vm790_vm0, %v3816_v52  ;;  %5441 = vmatmul.mubr.msk.f32.gmra.mxu0 %vm790_vm0, %v3816_v52  ;;  %v758_v52 = vld [vmem:[#allocation13 + $0x1] ss:$2 sm:$0xf]  ;;  %v9251_v35 = vrot.slane %v756_v44, %v4232_v31 }
 0x8c9   : > { %4027 = vmatprep.mubr.f32.mxu1 %v7052_v15  ;;  %4188 = vmatprep.mubr.f32.mxu0 %v7052_v15  ;;  %v9255_v21 = vrot.slane %v758_v52, %v4228_v60  ;;  %v9257_v19 = vrot.slane %v758_v52, %v4236_v45  ;;  %v9261_v53 = vrot.slane %v758_v52, %v4232_v31  ;;  %v4882_v45 = vld [vmem:[#allocation11 + $0x68] sm:$0xff] }
 0x8ca   : > { %5733 = vmatpush3.msra.mxu1 %v4465_v6  ;;  %5813 = vmatpush3.msra.mxu0 %v4497_v62 }
 0x8cb   : > { %5734 = vmatprep.subr.mxu1 %v4480_v34  ;;  %5814 = vmatprep.subr.mxu0 %v4512_v7 }
 0x8cc   : > { %5426 = vmatmul.mubr.msk.f32.gmra.mxu1 %vm790_vm0, %v3817_v1  ;;  %5442 = vmatmul.mubr.msk.f32.gmra.mxu0 %vm790_vm0, %v3817_v1  ;;  %v9263_v1 = vrot.slane %v758_v52, %v4240_v20 }
 0x8cd   : > { %4033 = vmatprep.mubr.f32.mxu1 %v7052_v15  ;;  %4194 = vmatprep.mubr.f32.mxu0 %v7052_v15 }
 0x8ce   : > { %5735 = vmatpush3.msra.mxu1 %v4464_v38  ;;  %5815 = vmatpush3.msra.mxu0 %v4496_v63 }
 0x8cf   : > { %5736 = vmatprep.subr.mxu1 %v4479_v16  ;;  %5816 = vmatprep.subr.mxu0 %v4511_v27 }
 0x8d0   : > { %5427 = vmatmul.mubr.msk.f32.gmra.mxu1 %vm790_vm0, %v3818_v22  ;;  %5443 = vmatmul.mubr.msk.f32.gmra.mxu0 %vm790_vm0, %v3818_v22 }
 0x8d1   : > { %4039 = vmatprep.mubr.f32.mxu1 %v7052_v15  ;;  %4200 = vmatprep.mubr.f32.mxu0 %v7052_v15 }
 0x8d2   : > { %5737 = vmatpush3.msra.mxu1 %v4463_v47  ;;  %5817 = vmatpush3.msra.mxu0 %v4495_v59 }
 0x8d3   : > { %5738 = vmatprep.subr.mxu1 %v4478_v4  ;;  %5818 = vmatprep.subr.mxu0 %v4510_v32 }
 0x8d4   : > { %5428 = vmatmul.mubr.msk.f32.gmra.mxu1 %vm790_vm0, %v3819_v61  ;;  %5444 = vmatmul.mubr.msk.f32.gmra.mxu0 %vm790_vm0, %v3819_v61 }
 0x8d5   : > { %4045 = vmatprep.mubr.f32.mxu1 %v7052_v15  ;;  %4206 = vmatprep.mubr.f32.mxu0 %v7052_v15 }
 0x8d6   : > { %5739 = vmatpush3.msra.mxu1 %v4462_v14  ;;  %5819 = vmatpush3.msra.mxu0 %v4494_v40 }
 0x8d7   : > { %5740 = vmatprep.subr.mxu1 %v4477_v55  ;;  %5820 = vmatprep.subr.mxu0 %v4509_v42  ;;  %v4883_v55 = vld [vmem:[#allocation11 + $0x70] sm:$0xff] }
 0x8d8   : > { %5429 = vmatmul.mubr.msk.f32.gmra.mxu1 %vm790_vm0, %v3820_v2  ;;  %5445 = vmatmul.mubr.msk.f32.gmra.mxu0 %vm790_vm0, %v3820_v2 }
 0x8d9   : > { %4051 = vmatprep.mubr.f32.mxu1 %v7052_v15  ;;  %4212 = vmatprep.mubr.f32.mxu0 %v7052_v15 }
 0x8da   : > { %5741 = vmatpush3.msra.mxu1 %v4461_v17  ;;  %5821 = vmatpush3.msra.mxu0 %v4493_v36 }
 0x8db   : > { %5742 = vmatprep.subr.mxu1 %v4476_v0  ;;  %5822 = vmatprep.subr.mxu0 %v4508_v57 }
 0x8dc   : > { %5430 = vmatmul.mubr.msk.f32.gmra.mxu1 %vm790_vm0, %v3821_v3  ;;  %5446 = vmatmul.mubr.msk.f32.gmra.mxu0 %vm790_vm0, %v3821_v3 }
 0x8dd   : > { %4057 = vmatprep.mubr.f32.mxu1 %v7052_v15  ;;  %4218 = vmatprep.mubr.f32.mxu0 %v7052_v15  ;;  %v4460_v15 = vld [vmem:[%s9520_s12 + $0x8] sm:$0xff] }
 0x8de   : > { %5743 = vmatpush3.msra.mxu1 %v4460_v15  ;;  %5823 = vmatpush3.msra.mxu0 %v4492_v43 }
 0x8df   : > { %5744 = vmatprep.subr.mxu1 %v4475_v48  ;;  %5824 = vmatprep.subr.mxu0 %v4507_v39 }
 0x8e0   : > { %5431 = vmatmul.mubr.msk.f32.gmra.mxu1 %vm790_vm0, %v3822_v58  ;;  %5447 = vmatmul.mubr.msk.f32.gmra.mxu0 %vm790_vm0, %v3822_v58 }
 0x8e1   : > { %5745 = vmatpush3.msra.mxu1 %v4459_v37  ;;  %5825 = vmatpush3.msra.mxu0 %v4491_v41 }
 0x8e2   : > { %6332 = vmatprep.subr.mxu1 %v4884_v26 }
 0x964   : > { %v3969_v28 = vpop.f32.mrf.mxu1  ;;  %v4130_v24 = vpop.f32.mrf.mxu0 }
 0x965   : > { %v4246_v6 = vmul.f32 %v9247_v51, %v3969_v28  ;;  %v4248_v13 = vmul.f32 %v9249_v49, %v4130_v24 }
 0x966   : > { %v3971_v5 = vpop.f32.mrf.mxu1  ;;  %v4132_v33 = vpop.f32.mrf.mxu0 }
 0x967   : > { %v4247_v56 = vmul.f32 %v9251_v35, %v3971_v5  ;;  %v4249_v62 = vmul.f32 %v9253_v18, %v4132_v33  ;;  %v4331_v34 = vadd.f32 %v9255_v21, %v4246_v6  ;;  %v4333_v7 = vadd.f32 %v9257_v19, %v4248_v13 }
 0x968   : > { %v3975_v38 = vpop.f32.mrf.mxu1  ;;  %v4136_v11 = vpop.f32.mrf.mxu0 }
 0x969   : > { %v4332_v22 = vadd.f32 %v9261_v53, %v4247_v56  ;;  %v4334_v29 = vadd.f32 %v9263_v1, %v4249_v62  ;;  %v4250_v50 = vmul.f32 %v9247_v51, %v3975_v38  ;;  %v4252_v12 = vmul.f32 %v9249_v49, %v4136_v11 }
 0x96a   : > { %v3977_v63 = vpop.f32.mrf.mxu1  ;;  %v4138_v16 = vpop.f32.mrf.mxu0  ;;  %v4395_v9 = vmax.f32 %v4331_v34, 0.0  ;;  %v4397_v30 = vmax.f32 %v4333_v7, 0.0 }
 0x96b   : > { %v4396_v27 = vmax.f32 %v4332_v22, 0.0  ;;  %v4398_v47 = vmax.f32 %v4334_v29, 0.0  ;;  %v4251_v46 = vmul.f32 %v9251_v35, %v3977_v63  ;;  %v4253_v61 = vmul.f32 %v9253_v18, %v4138_v16  ;;  %v4881_v63 = vld [vmem:[#allocation11 + $0x60] sm:$0xff] }
 0x96c   : > { %v4335_v59 = vadd.f32 %v9255_v21, %v4250_v50  ;;  %v4337_v4 = vadd.f32 %v9257_v19, %v4252_v12  ;;  %v3981_v32 = vpop.f32.mrf.mxu1  ;;  %v4142_v14 = vpop.f32.mrf.mxu0 }
 0x96d   : > { %v4336_v2 = vadd.f32 %v9261_v53, %v4251_v46  ;;  %v4338_v23 = vadd.f32 %v9263_v1, %v4253_v61  ;;  %v4254_v54 = vmul.f32 %v9247_v51, %v3981_v32  ;;  %v4256_v40 = vmul.f32 %v9249_v49, %v4142_v14  ;;  %4587 = vmatprep.mubr.f32.mxu1 %v4396_v27 }
 0x96e   : > { %4732 = vmatprep.mubr.f32.mxu0 %v4398_v47  ;;  %v3983_v42 = vpop.f32.mrf.mxu1  ;;  %v4144_v17 = vpop.f32.mrf.mxu0  ;;  %4588 = vmatmul.mubr.f32.vlgmr.msra.gmra.mxu1 %v4395_v9  ;;  %v4399_v36 = vmax.f32 %v4335_v59, 0.0  ;;  %v4401_v48 = vmax.f32 %v4337_v4, 0.0 }
 0x96f   : > { %v4400_v8 = vmax.f32 %v4336_v2, 0.0  ;;  %v4402_v3 = vmax.f32 %v4338_v23, 0.0  ;;  %4733 = vmatmul.mubr.f32.vlgmr.msra.gmra.mxu0 %v4397_v30  ;;  %6333 = vmatpush3.msra.mxu1 %v4884_v26  ;;  %v4339_v58 = vadd.f32 %v9255_v21, %v4254_v54  ;;  %v4255_v0 = vmul.f32 %v9251_v35, %v3983_v42 }
 0x970   : > { %v4257_v57 = vmul.f32 %v9253_v18, %v4144_v17  ;;  %v3987_v15 = vpop.f32.mrf.mxu1  ;;  %v4148_v43 = vpop.f32.mrf.mxu0  ;;  %6334 = vmatprep.subr.mxu1 %v4883_v55  ;;  %v4341_v39 = vadd.f32 %v9257_v19, %v4256_v40  ;;  %v4880_v40 = vld [vmem:[#allocation11 + $0x58] sm:$0xff] }
 0x971   : > { %v4258_v37 = vmul.f32 %v9247_v51, %v3987_v15  ;;  %v4260_v41 = vmul.f32 %v9249_v49, %v4148_v43  ;;  %4592 = vmatprep.mubr.f32.mxu1 %v4400_v8  ;;  %4737 = vmatprep.mubr.f32.mxu0 %v4402_v3  ;;  %v4340_v26 = vadd.f32 %v9261_v53, %v4255_v0  ;;  %v4403_v5 = vmax.f32 %v4339_v58, 0.0 }
 0x972   : > { %v4342_v10 = vadd.f32 %v9263_v1, %v4257_v57  ;;  %v3989_v25 = vpop.f32.mrf.mxu1  ;;  %v4150_v60 = vpop.f32.mrf.mxu0  ;;  %4593 = vmatmul.mubr.f32.gmra.mxu1 %v4399_v36  ;;  %v4405_v33 = vmax.f32 %v4341_v39, 0.0 }
 0x973   : > { %v4259_v44 = vmul.f32 %v9251_v35, %v3989_v25  ;;  %v4261_v31 = vmul.f32 %v9253_v18, %v4150_v60  ;;  %4738 = vmatmul.mubr.f32.gmra.mxu0 %v4401_v48  ;;  %v4404_v20 = vmax.f32 %v4340_v26, 0.0  ;;  %v4343_v28 = vadd.f32 %v9255_v21, %v4258_v37  ;;  %6335 = vmatpush3.msra.mxu1 %v4883_v55 }
 0x974   : > { %v4406_v52 = vmax.f32 %v4342_v10, 0.0  ;;  %v4345_v24 = vadd.f32 %v9257_v19, %v4260_v41  ;;  %v3993_v6 = vpop.f32.mrf.mxu1  ;;  %v4154_v13 = vpop.f32.mrf.mxu0  ;;  %6336 = vmatprep.subr.mxu1 %v4882_v45  ;;  %v4879_v41 = vld [vmem:[#allocation11 + $0x50] sm:$0xff] }
 0x975   : > { %v4344_v56 = vadd.f32 %v9261_v53, %v4259_v44  ;;  %v4346_v62 = vadd.f32 %v9263_v1, %v4261_v31  ;;  %v4262_v34 = vmul.f32 %v9247_v51, %v3993_v6  ;;  %v4264_v7 = vmul.f32 %v9249_v49, %v4154_v13  ;;  %4597 = vmatprep.mubr.f32.mxu1 %v4404_v20 }
 0x976   : > { %4742 = vmatprep.mubr.f32.mxu0 %v4406_v52  ;;  %v3995_v38 = vpop.f32.mrf.mxu1  ;;  %v4156_v11 = vpop.f32.mrf.mxu0  ;;  %4598 = vmatmul.mubr.f32.gmra.mxu1 %v4403_v5  ;;  %v4407_v16 = vmax.f32 %v4343_v28, 0.0  ;;  %v4409_v27 = vmax.f32 %v4345_v24, 0.0 }
 0x977   : > { %v4408_v22 = vmax.f32 %v4344_v56, 0.0  ;;  %v4410_v29 = vmax.f32 %v4346_v62, 0.0  ;;  %v4263_v50 = vmul.f32 %v9251_v35, %v3995_v38  ;;  %v4265_v12 = vmul.f32 %v9253_v18, %v4156_v11  ;;  %4743 = vmatmul.mubr.f32.gmra.mxu0 %v4405_v33  ;;  %6337 = vmatpush3.msra.mxu1 %v4882_v45  ;;  %v4878_v11 = vld [vmem:[#allocation11 + $0x48] sm:$0xff] }
 0x978   : > { %v4347_v47 = vadd.f32 %v9255_v21, %v4262_v34  ;;  %v3999_v46 = vpop.f32.mrf.mxu1  ;;  %v4160_v61 = vpop.f32.mrf.mxu0  ;;  %v4349_v9 = vadd.f32 %v9257_v19, %v4264_v7  ;;  %6338 = vmatprep.subr.mxu1 %v4881_v63 }
 0x979   : > { %v4348_v30 = vadd.f32 %v9261_v53, %v4263_v50  ;;  %v4350_v59 = vadd.f32 %v9263_v1, %v4265_v12  ;;  %v4266_v4 = vmul.f32 %v9247_v51, %v3999_v46  ;;  %4602 = vmatprep.mubr.f32.mxu1 %v4408_v22  ;;  %v4268_v32 = vmul.f32 %v9249_v49, %v4160_v61 }
 0x97a   : > { %4747 = vmatprep.mubr.f32.mxu0 %v4410_v29  ;;  %v4001_v14 = vpop.f32.mrf.mxu1  ;;  %v4162_v2 = vpop.f32.mrf.mxu0  ;;  %4603 = vmatmul.mubr.f32.gmra.mxu1 %v4407_v16  ;;  %v4411_v3 = vmax.f32 %v4347_v47, 0.0  ;;  %v4413_v36 = vmax.f32 %v4349_v9, 0.0 }
 0x97b   : > { %v4412_v23 = vmax.f32 %v4348_v30, 0.0  ;;  %v4414_v54 = vmax.f32 %v4350_v59, 0.0  ;;  %4748 = vmatmul.mubr.f32.gmra.mxu0 %v4409_v27  ;;  %v4267_v55 = vmul.f32 %v9251_v35, %v4001_v14  ;;  %v4269_v42 = vmul.f32 %v9253_v18, %v4162_v2  ;;  %6339 = vmatpush3.msra.mxu1 %v4881_v63 }
 0x97c   : > { %v4005_v17 = vpop.f32.mrf.mxu1  ;;  %v4166_v8 = vpop.f32.mrf.mxu0  ;;  %v4351_v58 = vadd.f32 %v9255_v21, %v4266_v4  ;;  %v4353_v57 = vadd.f32 %v9257_v19, %v4268_v32  ;;  %6340 = vmatprep.subr.mxu1 %v4880_v40  ;;  %v4877_v32 = vld [vmem:[#allocation11 + $0x40] sm:$0xff] }
 0x97d   : > { %v4270_v0 = vmul.f32 %v9247_v51, %v4005_v17  ;;  %4607 = vmatprep.mubr.f32.mxu1 %v4412_v23  ;;  %4752 = vmatprep.mubr.f32.mxu0 %v4414_v54  ;;  %v4352_v15 = vadd.f32 %v9261_v53, %v4267_v55  ;;  %v4354_v43 = vadd.f32 %v9263_v1, %v4269_v42 }
 0x97e   : > { %v4272_v48 = vmul.f32 %v9249_v49, %v4166_v8  ;;  %v4007_v39 = vpop.f32.mrf.mxu1  ;;  %v4168_v37 = vpop.f32.mrf.mxu0  ;;  %4608 = vmatmul.mubr.f32.gmra.mxu1 %v4411_v3  ;;  %v4415_v20 = vmax.f32 %v4351_v58, 0.0  ;;  %v4417_v24 = vmax.f32 %v4353_v57, 0.0 }
 0x97f   : > { %v4271_v26 = vmul.f32 %v9251_v35, %v4007_v39  ;;  %v4273_v10 = vmul.f32 %v9253_v18, %v4168_v37  ;;  %v4416_v25 = vmax.f32 %v4352_v15, 0.0  ;;  %v4418_v60 = vmax.f32 %v4354_v43, 0.0  ;;  %4753 = vmatmul.mubr.f32.gmra.mxu0 %v4413_v36  ;;  %6341 = vmatpush3.msra.mxu1 %v4880_v40 }
 0x980   : > { %v4355_v45 = vadd.f32 %v9255_v21, %v4270_v0  ;;  %v4011_v44 = vpop.f32.mrf.mxu1  ;;  %v4172_v31 = vpop.f32.mrf.mxu0  ;;  %6342 = vmatprep.subr.mxu1 %v4879_v41  ;;  %v4357_v6 = vadd.f32 %v9257_v19, %v4272_v48 }
 0x981   : > { %v4356_v52 = vadd.f32 %v9261_v53, %v4271_v26  ;;  %v4358_v28 = vadd.f32 %v9263_v1, %v4273_v10  ;;  %v4274_v13 = vmul.f32 %v9247_v51, %v4011_v44  ;;  %v4276_v5 = vmul.f32 %v9249_v49, %v4172_v31  ;;  %4612 = vmatprep.mubr.f32.mxu1 %v4416_v25 }
 0x982   : > { %4757 = vmatprep.mubr.f32.mxu0 %v4418_v60  ;;  %v4013_v33 = vpop.f32.mrf.mxu1  ;;  %v4174_v56 = vpop.f32.mrf.mxu0  ;;  %4613 = vmatmul.mubr.f32.gmra.mxu1 %v4415_v20  ;;  %v4419_v22 = vmax.f32 %v4355_v45, 0.0  ;;  %v4421_v46 = vmax.f32 %v4357_v6, 0.0 }
 0x983   : > { %v4420_v62 = vmax.f32 %v4356_v52, 0.0  ;;  %v4422_v34 = vmax.f32 %v4358_v28, 0.0  ;;  %v4275_v7 = vmul.f32 %v9251_v35, %v4013_v33  ;;  %v4277_v38 = vmul.f32 %v9253_v18, %v4174_v56  ;;  %4758 = vmatmul.mubr.f32.gmra.mxu0 %v4417_v24  ;;  %6343 = vmatpush3.msra.mxu1 %v4879_v41 }
 0x984   : > { %v4359_v29 = vadd.f32 %v9255_v21, %v4274_v13  ;;  %v4017_v50 = vpop.f32.mrf.mxu1  ;;  %v4178_v12 = vpop.f32.mrf.mxu0  ;;  %v4361_v63 = vadd.f32 %v9257_v19, %v4276_v5  ;;  %6344 = vmatprep.subr.mxu1 %v4878_v11 }
 0x985   : > { %v4360_v16 = vadd.f32 %v9261_v53, %v4275_v7  ;;  %v4362_v27 = vadd.f32 %v9263_v1, %v4277_v38  ;;  %v4278_v47 = vmul.f32 %v9247_v51, %v4017_v50  ;;  %4617 = vmatprep.mubr.f32.mxu1 %v4420_v62  ;;  %v4280_v61 = vmul.f32 %v9249_v49, %v4178_v12 }
 0x986   : > { %4762 = vmatprep.mubr.f32.mxu0 %v4422_v34  ;;  %v4019_v9 = vpop.f32.mrf.mxu1  ;;  %v4180_v30 = vpop.f32.mrf.mxu0  ;;  %4618 = vmatmul.mubr.f32.gmra.mxu1 %v4419_v22  ;;  %v4423_v40 = vmax.f32 %v4359_v29, 0.0  ;;  %v4425_v55 = vmax.f32 %v4361_v63, 0.0 }
 0x987   : > { %v4424_v59 = vmax.f32 %v4360_v16, 0.0  ;;  %v4426_v4 = vmax.f32 %v4362_v27, 0.0  ;;  %v4279_v14 = vmul.f32 %v9251_v35, %v4019_v9  ;;  %v4281_v2 = vmul.f32 %v9253_v18, %v4180_v30  ;;  %4763 = vmatmul.mubr.f32.gmra.mxu0 %v4421_v46  ;;  %6345 = vmatpush3.msra.mxu1 %v4878_v11 }
 0x988   : > { %v4023_v23 = vpop.f32.mrf.mxu1  ;;  %v4184_v54 = vpop.f32.mrf.mxu0  ;;  %v4363_v42 = vadd.f32 %v9255_v21, %v4278_v47  ;;  %v4365_v8 = vadd.f32 %v9257_v19, %v4280_v61  ;;  %6346 = vmatprep.subr.mxu1 %v4877_v32 }
 0x989   : > { %v4282_v17 = vmul.f32 %v9247_v51, %v4023_v23  ;;  %4622 = vmatprep.mubr.f32.mxu1 %v4424_v59  ;;  %4767 = vmatprep.mubr.f32.mxu0 %v4426_v4  ;;  %v4364_v3 = vadd.f32 %v9261_v53, %v4279_v14  ;;  %v4366_v36 = vadd.f32 %v9263_v1, %v4281_v2 }
 0x98a   : > { %v4284_v58 = vmul.f32 %v9249_v49, %v4184_v54  ;;  %v4025_v0 = vpop.f32.mrf.mxu1  ;;  %v4186_v57 = vpop.f32.mrf.mxu0  ;;  %4623 = vmatmul.mubr.f32.gmra.mxu1 %v4423_v40  ;;  %v4427_v10 = vmax.f32 %v4363_v42, 0.0  ;;  %v4429_v45 = vmax.f32 %v4365_v8, 0.0 }
 0x98b   : > { %v4283_v15 = vmul.f32 %v9251_v35, %v4025_v0  ;;  %v4285_v43 = vmul.f32 %v9253_v18, %v4186_v57  ;;  %v4428_v48 = vmax.f32 %v4364_v3, 0.0  ;;  %v4430_v39 = vmax.f32 %v4366_v36, 0.0  ;;  %4768 = vmatmul.mubr.f32.gmra.mxu0 %v4425_v55  ;;  %6347 = vmatpush3.msra.mxu1 %v4877_v32 }
 0x98c   : > { %v4367_v37 = vadd.f32 %v9255_v21, %v4282_v17  ;;  %v4029_v41 = vpop.f32.mrf.mxu1  ;;  %v4190_v26 = vpop.f32.mrf.mxu0  ;;  %v4369_v44 = vadd.f32 %v9257_v19, %v4284_v58 }
 0x98d   : > { %v4368_v25 = vadd.f32 %v9261_v53, %v4283_v15  ;;  %v4370_v60 = vadd.f32 %v9263_v1, %v4285_v43  ;;  %v4286_v31 = vmul.f32 %v9247_v51, %v4029_v41  ;;  %v4288_v20 = vmul.f32 %v9249_v49, %v4190_v26  ;;  %4627 = vmatprep.mubr.f32.mxu1 %v4428_v48 }
 0x98e   : > { %4772 = vmatprep.mubr.f32.mxu0 %v4430_v39  ;;  %v4031_v52 = vpop.f32.mrf.mxu1  ;;  %v4192_v28 = vpop.f32.mrf.mxu0  ;;  %4628 = vmatmul.mubr.f32.gmra.mxu1 %v4427_v10  ;;  %v4431_v33 = vmax.f32 %v4367_v37, 0.0  ;;  %v4433_v29 = vmax.f32 %v4369_v44, 0.0 }
 0x98f   : > { %v4432_v24 = vmax.f32 %v4368_v25, 0.0  ;;  %v4434_v6 = vmax.f32 %v4370_v60, 0.0  ;;  %v4287_v13 = vmul.f32 %v9251_v35, %v4031_v52  ;;  %v4289_v5 = vmul.f32 %v9253_v18, %v4192_v28  ;;  %4773 = vmatmul.mubr.f32.gmra.mxu0 %v4429_v45 }
 0x990   : > { %v4371_v56 = vadd.f32 %v9255_v21, %v4286_v31  ;;  %v4035_v62 = vpop.f32.mrf.mxu1  ;;  %v4196_v34 = vpop.f32.mrf.mxu0  ;;  %v4373_v7 = vadd.f32 %v9257_v19, %v4288_v20 }
 0x991   : > { %v4372_v38 = vadd.f32 %v9261_v53, %v4287_v13  ;;  %v4374_v11 = vadd.f32 %v9263_v1, %v4289_v5  ;;  %v4290_v22 = vmul.f32 %v9247_v51, %v4035_v62  ;;  %4632 = vmatprep.mubr.f32.mxu1 %v4432_v24  ;;  %v4292_v50 = vmul.f32 %v9249_v49, %v4196_v34 }
 0x992   : > { %4777 = vmatprep.mubr.f32.mxu0 %v4434_v6  ;;  %v4037_v12 = vpop.f32.mrf.mxu1  ;;  %v4198_v63 = vpop.f32.mrf.mxu0  ;;  %4633 = vmatmul.mubr.f32.gmra.mxu1 %v4431_v33  ;;  %v4435_v30 = vmax.f32 %v4371_v56, 0.0  ;;  %v4437_v59 = vmax.f32 %v4373_v7, 0.0 }
 0x993   : > { %v4436_v16 = vmax.f32 %v4372_v38, 0.0  ;;  %v4438_v27 = vmax.f32 %v4374_v11, 0.0  ;;  %v4291_v47 = vmul.f32 %v9251_v35, %v4037_v12  ;;  %v4293_v46 = vmul.f32 %v9253_v18, %v4198_v63  ;;  %4778 = vmatmul.mubr.f32.gmra.mxu0 %v4433_v29 }
 0x994   : > { %v4041_v61 = vpop.f32.mrf.mxu1  ;;  %v4202_v9 = vpop.f32.mrf.mxu0  ;;  %v4375_v4 = vadd.f32 %v9255_v21, %v4290_v22  ;;  %v4377_v14 = vadd.f32 %v9257_v19, %v4292_v50 }
 0x995   : > { %v4294_v32 = vmul.f32 %v9247_v51, %v4041_v61  ;;  %4637 = vmatprep.mubr.f32.mxu1 %v4436_v16  ;;  %4782 = vmatprep.mubr.f32.mxu0 %v4438_v27  ;;  %v4376_v2 = vadd.f32 %v9261_v53, %v4291_v47  ;;  %v4378_v23 = vadd.f32 %v9263_v1, %v4293_v46 }
 0x996   : > { %v4296_v54 = vmul.f32 %v9249_v49, %v4202_v9  ;;  %v4043_v40 = vpop.f32.mrf.mxu1  ;;  %v4204_v55 = vpop.f32.mrf.mxu0  ;;  %4638 = vmatmul.mubr.f32.gmra.mxu1 %v4435_v30  ;;  %v4439_v57 = vmax.f32 %v4375_v4, 0.0  ;;  %v4441_v48 = vmax.f32 %v4377_v14, 0.0 }
 0x997   : > { %v4295_v42 = vmul.f32 %v9251_v35, %v4043_v40  ;;  %v4297_v17 = vmul.f32 %v9253_v18, %v4204_v55  ;;  %v4440_v8 = vmax.f32 %v4376_v2, 0.0  ;;  %v4442_v3 = vmax.f32 %v4378_v23, 0.0  ;;  %4783 = vmatmul.mubr.f32.gmra.mxu0 %v4437_v59 }
 0x998   : > { %v4379_v36 = vadd.f32 %v9255_v21, %v4294_v32  ;;  %v4047_v58 = vpop.f32.mrf.mxu1  ;;  %v4208_v0 = vpop.f32.mrf.mxu0  ;;  %v4381_v39 = vadd.f32 %v9257_v19, %v4296_v54 }
 0x999   : > { %v4380_v15 = vadd.f32 %v9261_v53, %v4295_v42  ;;  %v4382_v43 = vadd.f32 %v9263_v1, %v4297_v17  ;;  %v4298_v37 = vmul.f32 %v9247_v51, %v4047_v58  ;;  %v4300_v41 = vmul.f32 %v9249_v49, %v4208_v0  ;;  %4642 = vmatprep.mubr.f32.mxu1 %v4440_v8  ;;  %v4872_v8 = vld [vmem:[#allocation11 + $0x18] sm:$0xff]  ;;  %v4869_v58 = vld [vmem:[#allocation11] sm:$0xff] }
 0x99a   : > { %4787 = vmatprep.mubr.f32.mxu0 %v4442_v3  ;;  %v4049_v26 = vpop.f32.mrf.mxu1  ;;  %v4210_v10 = vpop.f32.mrf.mxu0  ;;  %4643 = vmatmul.mubr.f32.gmra.mxu1 %v4439_v57  ;;  %v4443_v31 = vmax.f32 %v4379_v36, 0.0  ;;  %v4445_v33 = vmax.f32 %v4381_v39, 0.0  ;;  %v4871_v3 = vld [vmem:[#allocation11 + $0x10] sm:$0xff]  ;;  %v4870_v36 = vld [vmem:[#allocation11 + $0x8] sm:$0xff] }
 0x99b   : > { %v4444_v25 = vmax.f32 %v4380_v15, 0.0  ;;  %v4446_v60 = vmax.f32 %v4382_v43, 0.0  ;;  %v4299_v45 = vmul.f32 %v9251_v35, %v4049_v26  ;;  %v4301_v44 = vmul.f32 %v9253_v18, %v4210_v10  ;;  %4788 = vmatmul.mubr.f32.gmra.mxu0 %v4441_v48 }
 0x99c   : > { %v4383_v20 = vadd.f32 %v9255_v21, %v4298_v37  ;;  %v4053_v52 = vpop.f32.mrf.mxu1  ;;  %v4214_v28 = vpop.f32.mrf.mxu0  ;;  %v4385_v24 = vadd.f32 %v9257_v19, %v4300_v41  ;;  %v9394_v41 = vld [vmem:[%s9525_s17] ss:$0 sm:$0xff] }
 0x99d   : > { %v4384_v6 = vadd.f32 %v9261_v53, %v4299_v45  ;;  %v4386_v13 = vadd.f32 %v9263_v1, %v4301_v44  ;;  %v4302_v5 = vmul.f32 %v9247_v51, %v4053_v52  ;;  %4647 = vmatprep.mubr.f32.mxu1 %v4444_v25  ;;  %v4304_v56 = vmul.f32 %v9249_v49, %v4214_v28  ;;  %v9399_v45 = vld [vmem:[%s9525_s17 + $0x1] ss:$0 sm:$0xff] }
 0x99e   : > { %4792 = vmatprep.mubr.f32.mxu0 %v4446_v60  ;;  %v4055_v62 = vpop.f32.mrf.mxu1  ;;  %v4216_v34 = vpop.f32.mrf.mxu0  ;;  %4648 = vmatmul.mubr.f32.gmra.mxu1 %v4443_v31  ;;  %v4447_v12 = vmax.f32 %v4383_v20, 0.0  ;;  %v4449_v63 = vmax.f32 %v4385_v24, 0.0 }
 0x99f   : > { %v4448_v7 = vmax.f32 %v4384_v6, 0.0  ;;  %v4450_v38 = vmax.f32 %v4386_v13, 0.0  ;;  %v4303_v11 = vmul.f32 %v9251_v35, %v4055_v62  ;;  %v4305_v22 = vmul.f32 %v9253_v18, %v4216_v34  ;;  %4793 = vmatmul.mubr.f32.gmra.mxu0 %v4445_v33 }
 0x9a0   : > { %v4059_v29 = vpop.f32.mrf.mxu1  ;;  %v4220_v50 = vpop.f32.mrf.mxu0  ;;  %v4387_v16 = vadd.f32 %v9255_v21, %v4302_v5  ;;  %v4389_v47 = vadd.f32 %v9257_v19, %v4304_v56 }
 0x9a1   : > { %v4306_v27 = vmul.f32 %v9247_v51, %v4059_v29  ;;  %4652 = vmatprep.mubr.f32.mxu1 %v4448_v7  ;;  %4797 = vmatprep.mubr.f32.mxu0 %v4450_v38  ;;  %v4388_v46 = vadd.f32 %v9261_v53, %v4303_v11  ;;  %v4390_v61 = vadd.f32 %v9263_v1, %v4305_v22 }
 0x9a2   : > { %v4308_v9 = vmul.f32 %v9249_v49, %v4220_v50  ;;  %v4061_v30 = vpop.f32.mrf.mxu1  ;;  %v4222_v59 = vpop.f32.mrf.mxu0  ;;  %4653 = vmatmul.mubr.f32.gmra.mxu1 %v4447_v12  ;;  %v4451_v51 = vmax.f32 %v4387_v16, 0.0  ;;  %v4453_v55 = vmax.f32 %v4389_v47, 0.0 }
 0x9a3   : > { %v4307_v4 = vmul.f32 %v9251_v35, %v4061_v30  ;;  %v4309_v32 = vmul.f32 %v9253_v18, %v4222_v59  ;;  %v4452_v14 = vmax.f32 %v4388_v46, 0.0  ;;  %v4454_v2 = vmax.f32 %v4390_v61, 0.0  ;;  %4798 = vmatmul.mubr.f32.gmra.mxu0 %v4449_v63 }
 0x9a4   : > { %v4391_v23 = vadd.f32 %v9255_v21, %v4306_v27  ;;  %v4393_v49 = vadd.f32 %v9257_v19, %v4308_v9  ;;  %v4876_v21 = vld [vmem:[#allocation11 + $0x38] sm:$0xff]  ;;  %v4873_v19 = vld [vmem:[#allocation11 + $0x20] sm:$0xff] }
 0x9a5   : > { %v4392_v54 = vadd.f32 %v9261_v53, %v4307_v4  ;;  %v4394_v40 = vadd.f32 %v9263_v1, %v4309_v32  ;;  %4657 = vmatprep.mubr.f32.mxu1 %v4452_v14  ;;  %4802 = vmatprep.mubr.f32.mxu0 %v4454_v2  ;;  %v4875_v53 = vld [vmem:[#allocation11 + $0x30] sm:$0xff]  ;;  %v4874_v1 = vld [vmem:[#allocation11 + $0x28] sm:$0xff] }
 0x9a6   : > { %4658 = vmatmul.mubr.f32.gmra.mxu1 %v4451_v51  ;;  %v4455_v18 = vmax.f32 %v4391_v23, 0.0  ;;  %v4457_v17 = vmax.f32 %v4393_v49, 0.0  ;;  %6348 = vmatprep.subr.mxu1 %v4876_v21 }
 0x9a7   : > { %v4456_v42 = vmax.f32 %v4392_v54, 0.0  ;;  %v4458_v35 = vmax.f32 %v4394_v40, 0.0  ;;  %4803 = vmatmul.mubr.f32.gmra.mxu0 %v4453_v55  ;;  %6349 = vmatpush3.msra.mxu1 %v4876_v21 }
 0x9a8   : > { %6350 = vmatprep.subr.mxu1 %v4875_v53 }
 0x9a9   : > { %4662 = vmatprep.mubr.f32.mxu1 %v4456_v42  ;;  %4807 = vmatprep.mubr.f32.mxu0 %v4458_v35 }
 0x9aa   : > { %4663 = vmatmul.mubr.f32.gmra.mxu1 %v4455_v18 }
 0x9ab   : > { %4808 = vmatmul.mubr.f32.gmra.mxu0 %v4457_v17  ;;  %6351 = vmatpush3.msra.mxu1 %v4875_v53 }
 0x9ac   : > { %6352 = vmatprep.subr.mxu1 %v4874_v1 }
 0x9ad   : > { %6353 = vmatpush3.msra.mxu1 %v4874_v1 }
 0x9ae   : > { %6354 = vmatprep.subr.mxu1 %v4873_v19 }
 0x9af   : > { %6355 = vmatpush3.msra.mxu1 %v4873_v19 }
 0x9b0   : > { %6356 = vmatprep.subr.mxu1 %v4872_v8 }
 0x9b1   : > { %6357 = vmatpush3.msra.mxu1 %v4872_v8 }
 0x9b2   : > { %6358 = vmatprep.subr.mxu1 %v4871_v3 }
 0x9b3   : > { %6359 = vmatpush3.msra.mxu1 %v4871_v3 }
 0x9b4   : > { %6360 = vmatprep.subr.mxu1 %v4870_v36 }
 0x9b5   : > { %6361 = vmatpush3.msra.mxu1 %v4870_v36 }
 0x9b6   : > { %6362 = vmatprep.subr.mxu1 %v4869_v58 }
 0x9b7   : > { %6363 = vmatpush3.msra.mxu1 %v4869_v58 }
 0xa2e   : > { %v5746_v0 = vpop.f32.mrf.mxu1 }
 0xa2f   : > { %v5826_v57 = vpop.f32.mrf.mxu0 }
 0xa30   : > { %v5747_v15 = vpop.f32.mrf.mxu1 }
 0xa31   : > { %v5748_v43 = vadd.f32 %v5747_v15, %v5746_v0  ;;  %v5827_v48 = vpop.f32.mrf.mxu0 }
 0xa32   : > { %v5828_v39 = vadd.f32 %v5827_v48, %v5826_v57  ;;  %v5749_v37 = vpop.f32.mrf.mxu1 }
 0xa33   : > { %v5829_v26 = vpop.f32.mrf.mxu0 }
 0xa34   : > { %v4735_v10 = vadd.f32 %v5828_v39, %v5748_v43  ;;  %v5750_v25 = vpop.f32.mrf.mxu1 }
 0xa35   : > { %v5751_v60 = vadd.f32 %v5750_v25, %v5749_v37  ;;  %v5830_v44 = vpop.f32.mrf.mxu0 }
 0xa36   : > { %v4817_v31 = vmul.f32 %v9394_v41, %v4735_v10  ;;  %v5831_v20 = vadd.f32 %v5830_v44, %v5829_v26  ;;  %v5752_v52 = vpop.f32.mrf.mxu1 }
 0xa37   : > { %v5832_v28 = vpop.f32.mrf.mxu0 }
 0xa38   : > { %v4740_v24 = vadd.f32 %v5831_v20, %v5751_v60  ;;  %v4837_v6 = vadd.f32 %v9399_v45, %v4817_v31  ;;  %v5753_v13 = vpop.f32.mrf.mxu1 }
 0xa39   : > { %v5833_v5 = vpop.f32.mrf.mxu0  ;;  %v5754_v56 = vadd.f32 %v5753_v13, %v5752_v52 }
 0xa3a   : > { %v4818_v33 = vmul.f32 %v9394_v41, %v4740_v24  ;;  %v5834_v62 = vadd.f32 %v5833_v5, %v5832_v28  ;;  %v4853_v34 = vmax.f32 %v4837_v6, 0.0  ;;  %v5755_v7 = vpop.f32.mrf.mxu1 }
 0xa3b   : > { %v5835_v38 = vpop.f32.mrf.mxu0 }
 0xa3c   : > { %v4838_v11 = vadd.f32 %v9399_v45, %v4818_v33  ;;  %v4745_v22 = vadd.f32 %v5834_v62, %v5754_v56  ;;  %6364 = vmatprep.mubr.f32.mxu1 %v4853_v34  ;;  %v5756_v29 = vpop.f32.mrf.mxu1 }
 0xa3d   : > { %v5836_v50 = vpop.f32.mrf.mxu0  ;;  %v5757_v16 = vadd.f32 %v5756_v29, %v5755_v7 }
 0xa3e   : > { %v4854_v12 = vmax.f32 %v4838_v11, 0.0  ;;  %v4819_v63 = vmul.f32 %v9394_v41, %v4745_v22  ;;  %v5837_v27 = vadd.f32 %v5836_v50, %v5835_v38  ;;  %v5758_v47 = vpop.f32.mrf.mxu1 }
 0xa3f   : > { %v5838_v61 = vpop.f32.mrf.mxu0 }
 0xa40   : > { %v4750_v46 = vadd.f32 %v5837_v27, %v5757_v16  ;;  %6365 = vmatmul.mubr.f32.vlgmr.msra.gmra.mxu1 %v4854_v12  ;;  %v4839_v9 = vadd.f32 %v9399_v45, %v4819_v63  ;;  %v5759_v30 = vpop.f32.mrf.mxu1 }
 0xa41   : > { %v5760_v4 = vadd.f32 %v5759_v30, %v5758_v47  ;;  %v5839_v32 = vpop.f32.mrf.mxu0 }
 0xa42   : > { %v4820_v59 = vmul.f32 %v9394_v41, %v4750_v46  ;;  %v4855_v14 = vmax.f32 %v4839_v9, 0.0  ;;  %v5840_v2 = vadd.f32 %v5839_v32, %v5838_v61  ;;  %v5761_v51 = vpop.f32.mrf.mxu1 }
 0xa43   : > { %v5841_v54 = vpop.f32.mrf.mxu0 }
 0xa44   : > { %v4840_v23 = vadd.f32 %v9399_v45, %v4820_v59  ;;  %6367 = vmatprep.mubr.f32.mxu1 %v4855_v14  ;;  %v4755_v40 = vadd.f32 %v5840_v2, %v5760_v4  ;;  %v5762_v55 = vpop.f32.mrf.mxu1 }
 0xa45   : > { %v5763_v42 = vadd.f32 %v5762_v55, %v5761_v51  ;;  %v5842_v35 = vpop.f32.mrf.mxu0 }
 0xa46   : > { %v4856_v49 = vmax.f32 %v4840_v23, 0.0  ;;  %v4821_v18 = vmul.f32 %v9394_v41, %v4755_v40  ;;  %v5843_v17 = vadd.f32 %v5842_v35, %v5841_v54  ;;  %v5764_v21 = vpop.f32.mrf.mxu1 }
 0xa47   : > { %v5844_v53 = vpop.f32.mrf.mxu0 }
 0xa48   : > { %6368 = vmatmul.mubr.f32.gmra.mxu1 %v4856_v49  ;;  %v4760_v1 = vadd.f32 %v5843_v17, %v5763_v42  ;;  %v5765_v19 = vpop.f32.mrf.mxu1  ;;  %v4841_v8 = vadd.f32 %v9399_v45, %v4821_v18 }
 0xa49   : > { %v5766_v3 = vadd.f32 %v5765_v19, %v5764_v21  ;;  %v5845_v36 = vpop.f32.mrf.mxu0 }
 0xa4a   : > { %v4822_v58 = vmul.f32 %v9394_v41, %v4760_v1  ;;  %v5846_v0 = vadd.f32 %v5845_v36, %v5844_v53  ;;  %v5767_v57 = vpop.f32.mrf.mxu1  ;;  %v4857_v15 = vmax.f32 %v4841_v8, 0.0 }
 0xa4b   : > { %v5847_v43 = vpop.f32.mrf.mxu0 }
 0xa4c   : > { %v4842_v48 = vadd.f32 %v9399_v45, %v4822_v58  ;;  %v4765_v39 = vadd.f32 %v5846_v0, %v5766_v3  ;;  %6370 = vmatprep.mubr.f32.mxu1 %v4857_v15  ;;  %v5768_v37 = vpop.f32.mrf.mxu1 }
 0xa4d   : > { %v5769_v26 = vadd.f32 %v5768_v37, %v5767_v57  ;;  %v5848_v10 = vpop.f32.mrf.mxu0 }
 0xa4e   : > { %v4858_v25 = vmax.f32 %v4842_v48, 0.0  ;;  %v4823_v60 = vmul.f32 %v9394_v41, %v4765_v39  ;;  %v5849_v44 = vadd.f32 %v5848_v10, %v5847_v43  ;;  %v5770_v31 = vpop.f32.mrf.mxu1 }
 0xa4f   : > { %v5850_v20 = vpop.f32.mrf.mxu0 }
 0xa50   : > { %v4770_v52 = vadd.f32 %v5849_v44, %v5769_v26  ;;  %6371 = vmatmul.mubr.f32.gmra.mxu1 %v4858_v25  ;;  %v5771_v28 = vpop.f32.mrf.mxu1  ;;  %v4843_v24 = vadd.f32 %v9399_v45, %v4823_v60 }
 0xa51   : > { %v5772_v6 = vadd.f32 %v5771_v28, %v5770_v31  ;;  %v5851_v13 = vpop.f32.mrf.mxu0 }
 0xa52   : > { %v4824_v5 = vmul.f32 %v9394_v41, %v4770_v52  ;;  %v5852_v33 = vadd.f32 %v5851_v13, %v5850_v20  ;;  %v5773_v56 = vpop.f32.mrf.mxu1  ;;  %v4859_v62 = vmax.f32 %v4843_v24, 0.0 }
 0xa53   : > { %v5853_v34 = vpop.f32.mrf.mxu0 }
 0xa54   : > { %v4844_v7 = vadd.f32 %v9399_v45, %v4824_v5  ;;  %v4775_v38 = vadd.f32 %v5852_v33, %v5772_v6  ;;  %6373 = vmatprep.mubr.f32.mxu1 %v4859_v62  ;;  %v5774_v11 = vpop.f32.mrf.mxu1 }
 0xa55   : > { %v5775_v22 = vadd.f32 %v5774_v11, %v5773_v56  ;;  %v5854_v29 = vpop.f32.mrf.mxu0 }
 0xa56   : > { %v4860_v50 = vmax.f32 %v4844_v7, 0.0  ;;  %v4825_v12 = vmul.f32 %v9394_v41, %v4775_v38  ;;  %v5855_v63 = vadd.f32 %v5854_v29, %v5853_v34  ;;  %v5776_v16 = vpop.f32.mrf.mxu1 }
 0xa57   : > { %v5856_v27 = vpop.f32.mrf.mxu0 }
 0xa58   : > { %v4780_v47 = vadd.f32 %v5855_v63, %v5775_v22  ;;  %6374 = vmatmul.mubr.f32.gmra.mxu1 %v4860_v50  ;;  %v5777_v46 = vpop.f32.mrf.mxu1  ;;  %v4845_v61 = vadd.f32 %v9399_v45, %v4825_v12 }
 0xa59   : > { %v5778_v9 = vadd.f32 %v5777_v46, %v5776_v16  ;;  %v5857_v30 = vpop.f32.mrf.mxu0 }
 0xa5a   : > { %v4826_v59 = vmul.f32 %v9394_v41, %v4780_v47  ;;  %v5858_v4 = vadd.f32 %v5857_v30, %v5856_v27  ;;  %v5779_v32 = vpop.f32.mrf.mxu1  ;;  %v4861_v14 = vmax.f32 %v4845_v61, 0.0  ;;  %v5450_v61 = vld [vmem:[%s9526_s18] ss:$0 sm:$0xff] }
 0xa5b   : > { %v5859_v2 = vpop.f32.mrf.mxu0 }
 0xa5c   : > { %v4846_v51 = vadd.f32 %v9399_v45, %v4826_v59  ;;  %v4785_v23 = vadd.f32 %v5858_v4, %v5778_v9  ;;  %6376 = vmatprep.mubr.f32.mxu1 %v4861_v14  ;;  %v5780_v54 = vpop.f32.mrf.mxu1 }
 0xa5d   : > { %v5781_v40 = vadd.f32 %v5780_v54, %v5779_v32  ;;  %v5860_v55 = vpop.f32.mrf.mxu0 }
 0xa5e   : > { %v4862_v49 = vmax.f32 %v4846_v51, 0.0  ;;  %v4827_v42 = vmul.f32 %v9394_v41, %v4785_v23  ;;  %v5861_v35 = vadd.f32 %v5860_v55, %v5859_v2  ;;  %v5782_v18 = vpop.f32.mrf.mxu1 }
 0xa5f   : > { %v5862_v17 = vpop.f32.mrf.mxu0 }
 0xa60   : > { %v4790_v21 = vadd.f32 %v5861_v35, %v5781_v40  ;;  %6377 = vmatmul.mubr.f32.gmra.mxu1 %v4862_v49  ;;  %v5783_v53 = vpop.f32.mrf.mxu1  ;;  %v4847_v1 = vadd.f32 %v9399_v45, %v4827_v42 }
 0xa61   : > { %v5784_v19 = vadd.f32 %v5783_v53, %v5782_v18  ;;  %v5863_v8 = vpop.f32.mrf.mxu0 }
 0xa62   : > { %v4828_v3 = vmul.f32 %v9394_v41, %v4790_v21  ;;  %v5864_v36 = vadd.f32 %v5863_v8, %v5862_v17  ;;  %v5785_v58 = vpop.f32.mrf.mxu1  ;;  %v4863_v0 = vmax.f32 %v4847_v1, 0.0 }
 0xa63   : > { %v5865_v57 = vpop.f32.mrf.mxu0 }
 0xa64   : > { %v4848_v15 = vadd.f32 %v9399_v45, %v4828_v3  ;;  %v4795_v43 = vadd.f32 %v5864_v36, %v5784_v19  ;;  %6379 = vmatprep.mubr.f32.mxu1 %v4863_v0  ;;  %v5786_v48 = vpop.f32.mrf.mxu1 }
 0xa65   : > { %v5787_v39 = vadd.f32 %v5786_v48, %v5785_v58  ;;  %v5866_v37 = vpop.f32.mrf.mxu0 }
 0xa66   : > { %v4864_v26 = vmax.f32 %v4848_v15, 0.0  ;;  %v4829_v10 = vmul.f32 %v9394_v41, %v4795_v43  ;;  %v5867_v25 = vadd.f32 %v5866_v37, %v5865_v57  ;;  %v5788_v60 = vpop.f32.mrf.mxu1 }
 0xa67   : > { %v5868_v44 = vpop.f32.mrf.mxu0 }
 0xa68   : > { %v4800_v31 = vadd.f32 %v5867_v25, %v5787_v39  ;;  %6380 = vmatmul.mubr.f32.gmra.mxu1 %v4864_v26  ;;  %v5789_v20 = vpop.f32.mrf.mxu1  ;;  %v4849_v52 = vadd.f32 %v9399_v45, %v4829_v10 }
 0xa69   : > { %v5790_v28 = vadd.f32 %v5789_v20, %v5788_v60  ;;  %v5869_v24 = vpop.f32.mrf.mxu0 }
 0xa6a   : > { %v4830_v6 = vmul.f32 %v9394_v41, %v4800_v31  ;;  %v5870_v13 = vadd.f32 %v5869_v24, %v5868_v44  ;;  %v5791_v5 = vpop.f32.mrf.mxu1  ;;  %v4865_v33 = vmax.f32 %v4849_v52, 0.0 }
 0xa6b   : > { %v5871_v56 = vpop.f32.mrf.mxu0 }
 0xa6c   : > { %v4850_v62 = vadd.f32 %v9399_v45, %v4830_v6  ;;  %v4805_v34 = vadd.f32 %v5870_v13, %v5790_v28  ;;  %6382 = vmatprep.mubr.f32.mxu1 %v4865_v33  ;;  %v5792_v7 = vpop.f32.mrf.mxu1 }
 0xa6d   : > { %v5793_v38 = vadd.f32 %v5792_v7, %v5791_v5  ;;  %v5872_v11 = vpop.f32.mrf.mxu0 }
 0xa6e   : > { %v4866_v22 = vmax.f32 %v4850_v62, 0.0  ;;  %v4831_v29 = vmul.f32 %v9394_v41, %v4805_v34  ;;  %v5873_v50 = vadd.f32 %v5872_v11, %v5871_v56 }
 0xa70   : > { %v4810_v12 = vadd.f32 %v5873_v50, %v5793_v38  ;;  %6383 = vmatmul.mubr.f32.gmra.mxu1 %v4866_v22  ;;  %v4851_v63 = vadd.f32 %v9399_v45, %v4831_v29 }
 0xa72   : > { %v4832_v16 = vmul.f32 %v9394_v41, %v4810_v12  ;;  %v4867_v27 = vmax.f32 %v4851_v63, 0.0 }
 0xa74   : > { %v4852_v47 = vadd.f32 %v9399_v45, %v4832_v16  ;;  %6385 = vmatprep.mubr.f32.mxu1 %v4867_v27 }
 0xa76   : > { %v4868_v46 = vmax.f32 %v4852_v47, 0.0 }
 0xa78   : > { %6386 = vmatmul.mubr.f32.gmra.mxu1 %v4868_v46 }
 0xb00   : > { %v6366_v9 = vpop.f32.mrf.mxu1 }
 0xb01   : > { %v4963_v30 = vadd.f32 %v6366_v9, %v5450_v61 }
 0xb02   : > { %v4957_v59 = vpop.f32.mrf.mxu1 }
 0xb03   : > { %5037 = vst [vmem:[%s9439_s21 + $0x8] sm:$0xff] %v4963_v30  ;;  %v4958_v41 = vadd.f32 %v5450_v61, %v4957_v59 }
 0xb05   : > { %5036 = vst [vmem:[%s9439_s21] sm:$0xff] %v4958_v41 }
 0xb08   : > { %v6369_v45 = vpop.f32.mrf.mxu1 }
 0xb09   : > { %v4973_v4 = vadd.f32 %v6369_v45, %v5450_v61 }
 0xb0a   : > { %v4967_v32 = vpop.f32.mrf.mxu1 }
 0xb0b   : > { %5039 = vst [vmem:[%s9439_s21 + $0x18] sm:$0xff] %v4973_v4  ;;  %v4968_v14 = vadd.f32 %v5450_v61, %v4967_v32 }
 0xb0d   : > { %5038 = vst [vmem:[%s9439_s21 + $0x10] sm:$0xff] %v4968_v14 }
 0xb10   : > { %v6372_v2 = vpop.f32.mrf.mxu1 }
 0xb11   : > { %v4983_v51 = vadd.f32 %v6372_v2, %v5450_v61 }
 0xb12   : > { %v4977_v23 = vpop.f32.mrf.mxu1 }
 0xb13   : > { %5041 = vst [vmem:[%s9439_s21 + $0x28] sm:$0xff] %v4983_v51  ;;  %v4978_v54 = vadd.f32 %v5450_v61, %v4977_v23 }
 0xb15   : > { %5040 = vst [vmem:[%s9439_s21 + $0x20] sm:$0xff] %v4978_v54 }
 0xb18   : > { %v6375_v40 = vpop.f32.mrf.mxu1 }
 0xb19   : > { %v4993_v55 = vadd.f32 %v6375_v40, %v5450_v61 }
 0xb1a   : > { %v4987_v49 = vpop.f32.mrf.mxu1 }
 0xb1b   : > { %5043 = vst [vmem:[%s9439_s21 + $0x38] sm:$0xff] %v4993_v55  ;;  %v4988_v42 = vadd.f32 %v5450_v61, %v4987_v49 }
 0xb1d   : > { %5042 = vst [vmem:[%s9439_s21 + $0x30] sm:$0xff] %v4988_v42 }
 0xb20   : > { %v6378_v35 = vpop.f32.mrf.mxu1 }
 0xb21   : > { %v5003_v18 = vadd.f32 %v6378_v35, %v5450_v61 }
 0xb22   : > { %v4997_v17 = vpop.f32.mrf.mxu1 }
 0xb23   : > { %5045 = vst [vmem:[%s9439_s21 + $0x48] sm:$0xff] %v5003_v18  ;;  %v4998_v21 = vadd.f32 %v5450_v61, %v4997_v17 }
 0xb25   : > { %5044 = vst [vmem:[%s9439_s21 + $0x40] sm:$0xff] %v4998_v21 }
 0xb28   : > { %v6381_v53 = vpop.f32.mrf.mxu1 }
 0xb29   : > { %v5013_v1 = vadd.f32 %v6381_v53, %v5450_v61 }
 0xb2a   : > { %v5007_v19 = vpop.f32.mrf.mxu1 }
 0xb2b   : > { %5047 = vst [vmem:[%s9439_s21 + $0x58] sm:$0xff] %v5013_v1  ;;  %v5008_v8 = vadd.f32 %v5450_v61, %v5007_v19 }
 0xb2d   : > { %5046 = vst [vmem:[%s9439_s21 + $0x50] sm:$0xff] %v5008_v8 }
 0xb30   : > { %v6384_v3 = vpop.f32.mrf.mxu1 }
 0xb31   : > { %v5023_v36 = vadd.f32 %v6384_v3, %v5450_v61 }
 0xb32   : > { %v5017_v58 = vpop.f32.mrf.mxu1 }
 0xb33   : > { %5049 = vst [vmem:[%s9439_s21 + $0x68] sm:$0xff] %v5023_v36  ;;  %v5018_v0 = vadd.f32 %v5450_v61, %v5017_v58 }
 0xb35   : > { %5048 = vst [vmem:[%s9439_s21 + $0x60] sm:$0xff] %v5018_v0 }
 0xb38   : > { %v6387_v57 = vpop.f32.mrf.mxu1 }
 0xb39   : > { %v5033_v15 = vadd.f32 %v6387_v57, %v5450_v61 }
 0xb3a   : > { %v5027_v43 = vpop.f32.mrf.mxu1 }
 0xb3b   : > { %5051 = vst [vmem:[%s9439_s21 + $0x78] sm:$0xff] %v5033_v15  ;;  %v5028_v48 = vadd.f32 %v5450_v61, %v5027_v43 }
 0xb3d   : > { %5050 = vst [vmem:[%s9439_s21 + $0x70] sm:$0xff] %v5028_v48 }
 0xb3e   : > { %6978 = shalt.err (!%p6975_p4)
}
 0xb3f   : > { %s6979_s28 = scalar_lea.hbm %s9460_s2, 2048  ;;  %s6983_s24 = scalar_lea.hbm %s9612_s22, 4096 }
 0xb40   : > { %p6980_p5 = scmp.ne.s32.totalorder %s9460_s2, %s6979_s28  ;;  %p6984_p12 = scmp.lt.s32.totalorder %s9460_s2, %s9612_s22 }
 0xb41   : > { %p6985_p9 = scmp.lt.s32.totalorder %s6983_s24, %s6979_s28 }
 0xb42   : > { %p6981_p6 = pnand %p6980_p5, %p9613_p11 }
 0xb43   : > { %p6986_p8 = por %p6985_p9, %p6984_p12 }
 0xb44   : > { %p6982_p10 = pneg %p6981_p6 }
 0xb46   : > { %p6987_p7 = pnand %p6986_p8, %p6982_p10 }
 0xb48   : > { %6990 = shalt.err (!%p6987_p7)
}
 0xb49   : > { %s7054_s0 = smov 128   ;;  %s7055_s1 = smov 8  }
 0xb4a   : > { %6432 = dma.vmem_to_hbm [thread:$0]  (%p9613_p11), %s9462_s23, 2048, %s9460_s2, %s9468_s19, %s7054_s0, %s7054_s0, %s7055_s1  }
 0xb4b PF: > { %s9614_s7 = sld [smem:[#allocation22_spill]] }
 0xb4c   : > { %s9615_s25 = sld [smem:[#allocation20_spill]] }
 0xb4d   : > { %s9616_s26 = sld [smem:[#allocation25_spill]] }
 0xb51   : > { %p6474_p0 = scmp.ge.s32.totalorder %s9614_s7, 2 }
 0xb52   : > { %s5081_s27 = sand.u32 1, %s9615_s25  }
 0xb53   : > { %p9617_p3 = scmp.ne.s32.totalorder %s9616_s26, 0  ;;  %s5082_s28 = scalar_lea.sflag [#allocation4], %s5081_s27 }
 0xb55   : > { %p6457_p1 = pnand %p6474_p0, %p9617_p3 }
 0xb57   : > { %p6458_p2 = pneg %p6457_p1 }
 0xb59   : > { %7024 = dma.done.wait (%p6458_p2), %s5082_s28, 2048  }
 0xb5a   : > { %7026 = vsyncadd (%p6458_p2), %s5082_s28, 4294965248  ;;  %s9618_s21 = sld [smem:[#allocation23_spill]]  ;;  %s9621_s0 = smov %s7033_s30 }
 0xb5b   : > { %s9619_s24 = sld [smem:[#allocation21_spill]] }
 0xb5c   : > { %s9620_s20 = sld [smem:[#allocation24_spill]] }
 0xb60   : > { %p33_p13 = scmp.ge.s32.totalorder %s9618_s21, 4  }
 0xb61   : > { %s9622_s30 = smov %s9619_s24 }
 0xb62   :  { %35 = sbr.rel (!%p33_p13) target bundleno = 14 (0xe), region = 167 }
 0xb67   :  { %5087 = vsyncpa [#allocation3], 1 }
 0xb68   :  { %5089 = vsyncpa [#allocation3 + $0x1], 1 }
 0xb69   :  { %5090 = vsyncpa [#allocation6], 1 }
 0xb6a   :  { %5091 = vsyncpa [#allocation9], 1 }
 0xb6b   :  { %5092 = vsyncpa [#allocation12], 1 }
 0xb6c   :  { %5093 = vsyncpa [#allocation4], 1 }
 0xb6d   :  { %5095 = vsyncpa [#allocation4 + $0x1], 1 }

</bundles_post_ra>
